<compile_context>
chip_gen: v5e
topology: v5e:2x2
jax: 0.10.0
libtpu: 0.0.40
codegen_flags: <defaults>
</compile_context>

<pallas_src>
import functools
import math

import jax
import jax.numpy as jnp
from jax.experimental import pallas as pl
from jax.experimental.pallas import tpu as pltpu  # noqa: F401  (TPU backend)

INIT_SCALE = 0.02
LN_EPS = 1e-5
_SUB = 8      # f32 sublane tile
_LANE = 128   # lane tile


# ----------------------- host-side parameter packing ------------------------

class _SlabBuilder:
    """Packs every parameter into one (rows, width) f32 slab.

    One slab == one prologue DMA (the gridless call would otherwise issue one
    descriptor per leaf, each padded to at least one (8,128) tile).  Row
    offsets are 8-aligned so every in-kernel view is a sublane-aligned static
    slice.
    """

    def __init__(self):
        self._items = []  # (name, (r, c) array)

    def add(self, name, arr):
        arr = jnp.asarray(arr, jnp.float32)
        if arr.ndim == 1:
            arr = arr[None, :]
        assert arr.ndim == 2, name
        self._items.append((name, arr))

    def build(self):
        width = max(a.shape[1] for _, a in self._items)
        width = -(-width // _LANE) * _LANE
        offs, blocks, cur = {}, [], 0
        for name, a in self._items:
            r, c = a.shape
            r_pad = -(-r // _SUB) * _SUB
            blocks.append(jnp.pad(a, ((0, r_pad - r), (0, width - c))))
            offs[name] = (cur, r, c)
            cur += r_pad
        return jnp.concatenate(blocks, axis=0), offs


def _fold_block_into_slab(sb, name, bp):
    """Fold LN affines into downstream projections and fuse Wq with Wk|Wv.

    LN(x)*g + b followed by @W + b_lin  ==  norm(x) @ (diag(g) W) + (b@W + b_lin)
    """
    wq, bq = bp["wq"]["w"], bp["wq"]["b"]
    wkv, bkv = bp["wkv"]["w"], bp["wkv"]["b"]
    w1, b1 = bp["w1"]["w"], bp["w1"]["b"]
    q_dim, attn = wq.shape
    kv_dim = wkv.shape[0]

    wq_f = wq * bp["ln_q"]["g"].T
    bq_f = bp["ln_q"]["b"] @ wq + bq
    wkv_f = wkv * bp["ln_kv"]["g"].T
    bkv_f = bp["ln_kv"]["b"] @ wkv + bkv
    w1_f = w1 * bp["ln2"]["g"].T
    b1_f = bp["ln2"]["b"] @ w1 + b1

    fused = (q_dim == kv_dim)  # true for every block at these dims
    if fused:
        sb.add(name + "/wqkv", jnp.concatenate([wq_f, wkv_f], axis=1))
    else:
        sb.add(name + "/wq", wq_f)
        sb.add(name + "/wkv", wkv_f)
    sb.add(name + "/bq", bq_f)
    sb.add(name + "/bkv", bkv_f)
    sb.add(name + "/wo", bp["wo"]["w"])
    sb.add(name + "/bo", bp["wo"]["b"])
    sb.add(name + "/w1", w1_f)
    sb.add(name + "/b1", b1_f)
    sb.add(name + "/w2", bp["w2"]["w"])
    sb.add(name + "/b2", bp["w2"]["b"])
    return {"fused": fused, "attn": attn}


def prepare_double_perceiver(params, args):
    """One-time host-side prep: fold LN affines, fuse QKV, pack one slab."""
    del args
    sb = _SlabBuilder()
    sb.add("token_embedding/w", params["token_embedding"]["w"])
    sb.add("token_embedding/b", params["token_embedding"]["b"])
    sb.add("ally_latent", params["ally_latent"])
    sb.add("enemy_latent", params["enemy_latent"])
    metas = {
        "ally_encoder": _fold_block_into_slab(sb, "ally_encoder",
                                              params["ally_encoder"]),
        "enemy_encoder": _fold_block_into_slab(sb, "enemy_encoder",
                                               params["enemy_encoder"]),
        # The reference loop recomputes x = layer(enemy, ally) every iteration,
        # so only the LAST process layer's output is live.
        "process_last": _fold_block_into_slab(sb, "process_last",
                                              params["process"][-1]),
        "decoder": _fold_block_into_slab(sb, "decoder", params["decoder"]),
    }
    slab, offs = sb.build()
    return {"slab": slab, "offs": offs, "metas": metas}


# --------------------------- in-kernel building blocks -----------------------

def _ln(x):
    """LayerNorm without affine (affine is folded into downstream weights)."""
    mu = jnp.mean(x, axis=-1, keepdims=True)
    var = jnp.mean(jnp.square(x - mu), axis=-1, keepdims=True)
    return (x - mu) * jax.lax.rsqrt(var + LN_EPS)


def _cross_block(get, name, meta, xq, xkv):
    """Pre-LN single-head cross-attention + GELU MLP block, fully in VMEM.

    xq is either (Lq, d) (batch-shared latents) or (B, Lq, d); xkv is (B, Nk, d).
    All linear layers run as flat 2-D matmuls over stacked rows.
    """
    attn = meta["attn"]
    B, Nk, d_kv = xkv.shape
    q_shared = xq.ndim == 2
    Lq, d_q = xq.shape[-2], xq.shape[-1]

    qn = _ln(xq).reshape(-1, d_q)        # (Lq, d) if shared, else (B*Lq, d)
    kn = _ln(xkv).reshape(B * Nk, d_kv)
    Rq = qn.shape[0]

    if meta["fused"]:
        # one (rows, d) @ (d, 3*attn) matmul; unwanted cross-columns discarded
        proj = jnp.dot(jnp.concatenate([qn, kn], axis=0), get(name + "/wqkv"),
                       preferred_element_type=jnp.float32)
        q = proj[:Rq, :attn] + get(name + "/bq")
        kv = proj[Rq:, attn:] + get(name + "/bkv")
    else:
        q = jnp.dot(qn, get(name + "/wq"),
                    preferred_element_type=jnp.float32) + get(name + "/bq")
        kv = jnp.dot(kn, get(name + "/wkv"),
                     preferred_element_type=jnp.float32) + get(name + "/bkv")

    k = kv[:, :attn].reshape(B, Nk, attn)
    v = kv[:, attn:].reshape(B, Nk, attn)
    if q_shared:
        # latent path was batch-independent up to here; broadcast only now
        q3 = jnp.broadcast_to(q.reshape(1, Lq, attn), (B, Lq, attn))
        xq_b = jnp.broadcast_to(xq.reshape(1, Lq, d_q), (B, Lq, d_q))
    else:
        q3 = q.reshape(B, Lq, attn)
        xq_b = xq

    s = jnp.einsum("bqd,bkd->bqk", q3, k,
                   preferred_element_type=jnp.float32) * (1.0 / math.sqrt(attn))
    s = s - jnp.max(s, axis=-1, keepdims=True)
    e = jnp.exp(s)
    p = e / jnp.sum(e, axis=-1, keepdims=True)   # exact reciprocal: cost is nil
    o = jnp.einsum("bqk,bkd->bqd", p, v, preferred_element_type=jnp.float32)

    x1 = xq_b + (jnp.dot(o.reshape(B * Lq, attn), get(name + "/wo"),
                         preferred_element_type=jnp.float32)
                 + get(name + "/bo")).reshape(B, Lq, d_q)

    # TODO(synk): PyTorch nn.GELU defaults to exact erf; tanh approx used here.
    hdn = jax.nn.gelu(
        jnp.dot(_ln(x1).reshape(B * Lq, d_q), get(name + "/w1"),
                preferred_element_type=jnp.float32) + get(name + "/b1"),
        approximate=True)
    y = jnp.dot(hdn, get(name + "/w2"),
                preferred_element_type=jnp.float32) + get(name + "/b2")
    return x1 + y.reshape(B, Lq, d_q)


# ------------------------------ fused forward kernel -------------------------

def _double_perceiver_kernel(tokens_ref, query_ref, slab_ref, out_ref, *,
                             offs, metas, B, n_ally, n_enemy, L, E, emb):
    def get(name):
        off, r, c = offs[name]
        return slab_ref[off:off + r, 0:c]   # static, sublane-aligned view

    tokens = tokens_ref[...].astype(jnp.float32)   # (B*n_ally + B*n_enemy, tok)
    query = query_ref[...].astype(jnp.float32)     # (B, emb)

    # shared token embedding: ONE flat matmul over both token sets
    tok_emb = (jnp.dot(tokens, get("token_embedding/w"),
                       preferred_element_type=jnp.float32)
               + get("token_embedding/b"))
    ally_tok = tok_emb[:B * n_ally].reshape(B, n_ally, emb)
    enemy_tok = tok_emb[B * n_ally:].reshape(B, n_enemy, emb)

    # encoders: batch-shared latents attend over per-batch token sets
    ally_enc = _cross_block(get, "ally_encoder", metas["ally_encoder"],
                            get("ally_latent"), ally_tok)
    enemy_enc = _cross_block(get, "enemy_encoder", metas["enemy_encoder"],
                             get("enemy_latent"), enemy_tok)

    # process: only the last layer is live (reference loop overwrites x)
    x = _cross_block(get, "process_last", metas["process_last"],
                     enemy_enc, ally_enc)

    # decoder: query attends over processed latents
    x = _cross_block(get, "decoder", metas["decoder"],
                     query.reshape(B, 1, emb), x)

    out_ref[...] = x.reshape(B, emb).astype(out_ref.dtype)


def _rough_cost_estimate(prepared, args, B, n_ally, n_enemy):
    """Advisory CostEstimate so XLA schedules around the (tiny) custom call."""
    L, E, emb, tok = (args["latent_length"], args["encode_out"],
                      args["emb"], args["token_dim"])

    def blk(rq, nk, d_q, attn, hid, lq):
        f = 2 * (rq + B * nk) * d_q * 3 * attn      # fused qkv projection
        f += 2 * B * lq * nk * attn * 2             # scores + context
        f += 2 * B * lq * attn * d_q                # output projection
        f += 2 * B * lq * d_q * hid * 2             # MLP
        t = B * lq * nk + B * lq * hid              # softmax exp + gelu tanh
        return f, t

    flops = 2 * B * (n_ally + n_enemy) * tok * emb
    trans = 0
    for rq, nk, d_q, hid, lq in ((L, n_ally, E, 4 * E, L),
                                 (L, n_enemy, E, 4 * E, L),
                                 (B * L, L, E, 4 * E, L),
                                 (B, L, emb, 4 * emb, 1)):
        f, t = blk(rq, nk, d_q, E, hid, lq)
        flops += f
        trans += t
    bytes_accessed = int(prepared["slab"].size * 4
                         + B * (n_ally + n_enemy) * tok * 4
                         + 2 * B * emb * 4)
    return pl.CostEstimate(flops=int(flops), transcendentals=int(trans),
                           bytes_accessed=bytes_accessed)


def double_perceiver_forward(prepared, args, ally, enemy, h, query):
    del h  # unused in the reference forward()
    B, n_ally, tok = ally.shape
    n_enemy = enemy.shape[1]
    emb = args["emb"]

    # Host-side: merge both token sets so the shared token_embedding runs as a
    # single flat matmul (one input DMA); drop query's degenerate middle dim.
    tokens = jnp.concatenate(
        [ally.reshape(B * n_ally, tok), enemy.reshape(B * n_enemy, tok)], axis=0)
    query2d = query.reshape(B, emb)

    kernel = functools.partial(
        _double_perceiver_kernel,
        offs=prepared["offs"], metas=prepared["metas"],
        B=B, n_ally=n_ally, n_enemy=n_enemy,
        L=args["latent_length"], E=args["encode_out"], emb=emb)

    out = pl.pallas_call(
        kernel,
        # gridless call: inputs (tokens, query, param slab) get whole-array
        # VMEM blocks; total footprint < 1 MiB on any generation, so no
        # tiling / vmem_limit / multi-buffering is needed (or wanted).
        out_shape=jax.ShapeDtypeStruct((B, emb), jnp.float32),
        cost_estimate=_rough_cost_estimate(prepared, args, B, n_ally, n_enemy),
    )(tokens, query2d, prepared["slab"])
    return out.reshape(B, 1, emb), None


# --------------------------- parameter construction -------------------------

def _normal(key, shape, std=INIT_SCALE):
    return std * jax.random.normal(key, shape, dtype=jnp.float32)


def make_linear(key, d_in, d_out):
    # PyTorch _init_parameters: weight ~ N(0, 0.02), bias = 0. Bias stored 2-D.
    return {"w": _normal(key, (d_in, d_out)),
            "b": jnp.zeros((1, d_out), jnp.float32)}


def make_ln(d):
    return {"g": jnp.ones((1, d), jnp.float32),
            "b": jnp.zeros((1, d), jnp.float32)}


def make_cross_block(key, q_dim, kv_dim, attn_dim, mlp_hidden):
    ks = jax.random.split(key, 6)
    return {
        "ln_q": make_ln(q_dim),
        "ln_kv": make_ln(kv_dim),
        "wq": make_linear(ks[0], q_dim, attn_dim),
        # K and V projection weights concatenated (standard fused K|V).
        "wkv": {"w": jnp.concatenate([_normal(ks[1], (kv_dim, attn_dim)),
                                      _normal(ks[2], (kv_dim, attn_dim))],
                                     axis=1),
                "b": jnp.zeros((1, 2 * attn_dim), jnp.float32)},
        "wo": make_linear(ks[3], attn_dim, q_dim),
        "ln2": make_ln(q_dim),
        "w1": make_linear(ks[4], q_dim, mlp_hidden),
        "w2": make_linear(ks[5], mlp_hidden, q_dim),
    }


def init_double_perceiver(key, args):
    ks = jax.random.split(key, 7 + args["depth"])
    enc_hidden = 4 * args["encode_out"]
    dec_hidden = 4 * args["emb"]
    return {
        "ally_latent": _normal(ks[0], (args["latent_length"], args["encode_out"])),
        "enemy_latent": _normal(ks[1], (args["latent_length"], args["encode_out"])),
        "token_embedding": make_linear(ks[2], args["token_dim"], args["emb"]),
        "ally_encoder": make_cross_block(
            ks[3], args["encode_out"], args["emb"], args["encode_out"], enc_hidden),
        "enemy_encoder": make_cross_block(
            ks[4], args["encode_out"], args["emb"], args["encode_out"], enc_hidden),
        # hidden_embedding exists in __init__ but is unused in forward();
        # kept for fidelity, never packed into the kernel slab.
        "hidden_embedding": make_linear(
            ks[5], args["latent_length"] * args["encode_out"] * 2, args["emb"]),
        "process": [
            make_cross_block(ks[6 + i], args["encode_out"], args["encode_out"],
                             args["encode_out"], enc_hidden)
            for i in range(args["depth"])
        ],
        "decoder": make_cross_block(
            ks[6 + args["depth"]], args["emb"], args["encode_out"],
            args["encode_out"], dec_hidden),
    }


# --------------------------- pure-JAX reference ------------------------------

def reference_forward(params, args, ally, enemy, h, query):
    """Non-Pallas reference of the same forward (raw, un-folded params)."""
    del h

    def ln(x, lp):
        mu = jnp.mean(x, -1, keepdims=True)
        var = jnp.mean(jnp.square(x - mu), -1, keepdims=True)
        return (x - mu) * jax.lax.rsqrt(var + LN_EPS) * lp["g"] + lp["b"]

    def lin(x, lp):
        return x @ lp["w"] + lp["b"]

    def block(bp, xq, xkv):
        d = bp["wq"]["w"].shape[-1]
        qn, kn = ln(xq, bp["ln_q"]), ln(xkv, bp["ln_kv"])
        q, kvp = lin(qn, bp["wq"]), lin(kn, bp["wkv"])
        k, v = kvp[..., :d], kvp[..., d:]
        s = jnp.einsum("bqd,bkd->bqk", q, k) / math.sqrt(d)
        a = jax.nn.softmax(s, axis=-1)
        o = jnp.einsum("bqk,bkd->bqd", a, v)
        xq = xq + lin(o, bp["wo"])
        return xq + lin(jax.nn.gelu(lin(ln(xq, bp["ln2"]), bp["w1"]),
                                    approximate=True), bp["w2"])

    B = ally.shape[0]
    L, E = args["latent_length"], args["encode_out"]
    at = lin(ally, params["token_embedding"])
    et = lin(enemy, params["token_embedding"])
    la = jnp.broadcast_to(params["ally_latent"][None], (B, L, E))
    le = jnp.broadcast_to(params["enemy_latent"][None], (B, L, E))
    a = block(params["ally_encoder"], la, at)
    e = block(params["enemy_encoder"], le, et)
    x = None
    for bp in params["process"]:   # reproduces the reference loop verbatim
        x = block(bp, e, a)
    x = block(params["decoder"], query, x)
    return x.reshape(B, 1, args["emb"]), None


# ---------------------------------- main -------------------------------------

if __name__ == "__main__":
    args = {
        "latent_length": 8,
        "encode_out": 32,
        "emb": 32,
        "token_dim": 16,
        "depth": 2,
    }
    b, n_ally, n_enemy = 2, 10, 6

    key = jax.random.PRNGKey(0)
    kp, ka, ke, kh, kq = jax.random.split(key, 5)

    params = init_double_perceiver(kp, args)
    prepared = prepare_double_perceiver(params, args)   # one-time packing

    ally = jax.random.normal(ka, (b, n_ally, args["token_dim"]), jnp.float32)
    enemy = jax.random.normal(ke, (b, n_enemy, args["token_dim"]), jnp.float32)
    h = jax.random.normal(kh, (b, args["emb"]), jnp.float32)          # unused
    query = jax.random.normal(kq, (b, 1, args["emb"]), jnp.float32)

    out, none = double_perceiver_forward(prepared, args, ally, enemy, h, query)
    out = jax.block_until_ready(out)

    ref, _ = reference_forward(params, args, ally, enemy, h, query)
    ref = jax.block_until_ready(ref)

    assert out.shape == (b, 1, args["emb"]), out.shape
    assert none is None
    assert bool(jnp.all(jnp.isfinite(out)))
    # exact softmax reciprocal + LN-folding => tight f32 agreement expected
    assert bool(jnp.allclose(out, ref, rtol=1e-3, atol=1e-4)), (
        float(jnp.max(jnp.abs(out - ref))))
    print("KERNEL_OK")
</pallas_src>

<mosaic_0001>
module attributes {stable_mosaic.version = 11 : i64} {
  func.func @_double_perceiver_kernel(%arg0: memref<32x16xf32, #tpu.memory_space<vmem>>, %arg1: memref<2x32xf32, #tpu.memory_space<vmem>>, %arg2: memref<1096x128xf32, #tpu.memory_space<vmem>>, %arg3: memref<2x32xf32, #tpu.memory_space<vmem>>) attributes {dimension_semantics = [], scalar_prefetch = 0 : i64, scratch_operands = 0 : i64, tpu.core_type = #tpu.core_type<tc>} {
    %c0 = arith.constant 0 : index
    %c0_0 = arith.constant 0 : index
    %0 = vector.load %arg0[%c0, %c0_0] : memref<32x16xf32, #tpu.memory_space<vmem>>, vector<32x16xf32>
    %c0_1 = arith.constant 0 : index
    %c0_2 = arith.constant 0 : index
    %1 = vector.load %arg1[%c0_1, %c0_2] : memref<2x32xf32, #tpu.memory_space<vmem>>, vector<2x32xf32>
    %c0_3 = arith.constant 0 : index
    %c0_4 = arith.constant 0 : index
    %2 = vector.load %arg2[%c0_3, %c0_4] : memref<1096x128xf32, #tpu.memory_space<vmem>>, vector<16x32xf32>
    %cst = arith.constant dense<0.000000e+00> : vector<32x32xf32>
    %3 = tpu.matmul %0, %2, %cst {dimension_numbers = #tpu.dot_dimension_numbers<[1], [0], [0], [1], [0, 0, 1, 1], [], []>} : vector<32x16xf32>, vector<16x32xf32>, vector<32x32xf32> -> vector<32x32xf32>
    %c16 = arith.constant 16 : index
    %c0_5 = arith.constant 0 : index
    %4 = vector.load %arg2[%c16, %c0_5] : memref<1096x128xf32, #tpu.memory_space<vmem>>, vector<1x32xf32>
    %5 = vector.broadcast %4 : vector<1x32xf32> to vector<32x32xf32>
    %6 = arith.addf %3, %5 : vector<32x32xf32>
    %7 = vector.extract_strided_slice %6 {offsets = [0, 0], sizes = [20, 32], strides = [1, 1]} : vector<32x32xf32> to vector<20x32xf32>
    %8 = vector.shape_cast %7 : vector<20x32xf32> to vector<2x10x32xf32>
    %9 = vector.extract_strided_slice %6 {offsets = [20, 0], sizes = [12, 32], strides = [1, 1]} : vector<32x32xf32> to vector<12x32xf32>
    %10 = vector.shape_cast %9 : vector<12x32xf32> to vector<2x6x32xf32>
    %c24 = arith.constant 24 : index
    %c0_6 = arith.constant 0 : index
    %11 = vector.load %arg2[%c24, %c0_6] : memref<1096x128xf32, #tpu.memory_space<vmem>>, vector<8x32xf32>
    %cst_7 = arith.constant dense<0.000000e+00> : vector<8xf32>
    %12 = vector.multi_reduction <add>, %11, %cst_7 [1] : vector<8x32xf32> to vector<8xf32>
    %13 = vector.shape_cast %12 : vector<8xf32> to vector<8x1xf32>
    %cst_8 = arith.constant 3.200000e+01 : f32
    %14 = vector.broadcast %cst_8 : f32 to vector<8x1xf32>
    %15 = arith.divf %13, %14 : vector<8x1xf32>
    %16 = vector.broadcast %15 : vector<8x1xf32> to vector<8x32xf32>
    %17 = arith.subf %11, %16 : vector<8x32xf32>
    %18 = arith.mulf %17, %17 : vector<8x32xf32>
    %cst_9 = arith.constant dense<0.000000e+00> : vector<8xf32>
    %19 = vector.multi_reduction <add>, %18, %cst_9 [1] : vector<8x32xf32> to vector<8xf32>
    %20 = vector.shape_cast %19 : vector<8xf32> to vector<8x1xf32>
    %cst_10 = arith.constant 3.200000e+01 : f32
    %21 = vector.broadcast %cst_10 : f32 to vector<8x1xf32>
    %22 = arith.divf %20, %21 : vector<8x1xf32>
    %23 = vector.broadcast %15 : vector<8x1xf32> to vector<8x32xf32>
    %24 = arith.subf %11, %23 : vector<8x32xf32>
    %cst_11 = arith.constant 9.99999974E-6 : f32
    %25 = vector.broadcast %cst_11 : f32 to vector<8x1xf32>
    %26 = arith.addf %22, %25 : vector<8x1xf32>
    %27 = math.rsqrt %26 : vector<8x1xf32>
    %28 = vector.broadcast %27 : vector<8x1xf32> to vector<8x32xf32>
    %29 = arith.mulf %24, %28 : vector<8x32xf32>
    %cst_12 = arith.constant dense<0.000000e+00> : vector<2x10xf32>
    %30 = vector.multi_reduction <add>, %8, %cst_12 [2] : vector<2x10x32xf32> to vector<2x10xf32>
    %31 = vector.shape_cast %30 : vector<2x10xf32> to vector<2x10x1xf32>
    %cst_13 = arith.constant 3.200000e+01 : f32
    %32 = vector.broadcast %cst_13 : f32 to vector<2x10x1xf32>
    %33 = arith.divf %31, %32 : vector<2x10x1xf32>
    %34 = vector.broadcast %33 : vector<2x10x1xf32> to vector<2x10x32xf32>
    %35 = arith.subf %8, %34 : vector<2x10x32xf32>
    %36 = arith.mulf %35, %35 : vector<2x10x32xf32>
    %cst_14 = arith.constant dense<0.000000e+00> : vector<2x10xf32>
    %37 = vector.multi_reduction <add>, %36, %cst_14 [2] : vector<2x10x32xf32> to vector<2x10xf32>
    %38 = vector.shape_cast %37 : vector<2x10xf32> to vector<2x10x1xf32>
    %cst_15 = arith.constant 3.200000e+01 : f32
    %39 = vector.broadcast %cst_15 : f32 to vector<2x10x1xf32>
    %40 = arith.divf %38, %39 : vector<2x10x1xf32>
    %41 = vector.broadcast %33 : vector<2x10x1xf32> to vector<2x10x32xf32>
    %42 = arith.subf %8, %41 : vector<2x10x32xf32>
    %cst_16 = arith.constant 9.99999974E-6 : f32
    %43 = vector.broadcast %cst_16 : f32 to vector<2x10x1xf32>
    %44 = arith.addf %40, %43 : vector<2x10x1xf32>
    %45 = math.rsqrt %44 : vector<2x10x1xf32>
    %46 = vector.broadcast %45 : vector<2x10x1xf32> to vector<2x10x32xf32>
    %47 = arith.mulf %42, %46 : vector<2x10x32xf32>
    %48 = vector.shape_cast %47 : vector<2x10x32xf32> to vector<20x32xf32>
    %49 = tpu.concatenate %29, %48 in 0 : vector<8x32xf32>, vector<20x32xf32> -> vector<28x32xf32>
    %c40 = arith.constant 40 : index
    %c0_17 = arith.constant 0 : index
    %50 = vector.load %arg2[%c40, %c0_17] : memref<1096x128xf32, #tpu.memory_space<vmem>>, vector<32x96xf32>
    %cst_18 = arith.constant dense<0.000000e+00> : vector<28x96xf32>
    %51 = tpu.matmul %49, %50, %cst_18 {dimension_numbers = #tpu.dot_dimension_numbers<[1], [0], [0], [1], [0, 0, 1, 1], [], []>} : vector<28x32xf32>, vector<32x96xf32>, vector<28x96xf32> -> vector<28x96xf32>
    %52 = vector.extract_strided_slice %51 {offsets = [0, 0], sizes = [8, 32], strides = [1, 1]} : vector<28x96xf32> to vector<8x32xf32>
    %c72 = arith.constant 72 : index
    %c0_19 = arith.constant 0 : index
    %53 = vector.load %arg2[%c72, %c0_19] : memref<1096x128xf32, #tpu.memory_space<vmem>>, vector<1x32xf32>
    %54 = vector.broadcast %53 : vector<1x32xf32> to vector<8x32xf32>
    %55 = arith.addf %52, %54 : vector<8x32xf32>
    %56 = vector.extract_strided_slice %51 {offsets = [8, 32], sizes = [20, 64], strides = [1, 1]} : vector<28x96xf32> to vector<20x64xf32>
    %c80 = arith.constant 80 : index
    %c0_20 = arith.constant 0 : index
    %57 = vector.load %arg2[%c80, %c0_20] : memref<1096x128xf32, #tpu.memory_space<vmem>>, vector<1x64xf32>
    %58 = vector.broadcast %57 : vector<1x64xf32> to vector<20x64xf32>
    %59 = arith.addf %56, %58 : vector<20x64xf32>
    %60 = vector.extract_strided_slice %59 {offsets = [0, 0], sizes = [20, 32], strides = [1, 1]} : vector<20x64xf32> to vector<20x32xf32>
    %61 = vector.shape_cast %60 : vector<20x32xf32> to vector<2x10x32xf32>
    %62 = vector.extract_strided_slice %59 {offsets = [0, 32], sizes = [20, 32], strides = [1, 1]} : vector<20x64xf32> to vector<20x32xf32>
    %63 = vector.shape_cast %62 : vector<20x32xf32> to vector<2x10x32xf32>
    %64 = vector.shape_cast %55 : vector<8x32xf32> to vector<1x8x32xf32>
    %65 = vector.shape_cast %64 : vector<1x8x32xf32> to vector<1x8x32xf32>
    %66 = vector.broadcast %65 : vector<1x8x32xf32> to vector<2x8x32xf32>
    %67 = vector.shape_cast %11 : vector<8x32xf32> to vector<1x8x32xf32>
    %68 = vector.shape_cast %67 : vector<1x8x32xf32> to vector<1x8x32xf32>
    %69 = vector.broadcast %68 : vector<1x8x32xf32> to vector<2x8x32xf32>
    "tpu.trace_start"() <{level = 10 : i32, message = "bqd,bkd->bqk"}> : () -> ()
    %cst_21 = arith.constant dense<0.000000e+00> : vector<2x8x10xf32>
    %70 = tpu.matmul %66, %61, %cst_21 {dimension_numbers = #tpu.dot_dimension_numbers<[2], [2], [1], [1], [0, 0, 0, 1, 1, 1], [0], [0]>} : vector<2x8x32xf32>, vector<2x10x32xf32>, vector<2x8x10xf32> -> vector<2x8x10xf32>
    "tpu.trace_stop"() : () -> ()
    %cst_22 = arith.constant 0.176776692 : f32
    %71 = vector.broadcast %cst_22 : f32 to vector<2x8x10xf32>
    %72 = arith.mulf %70, %71 : vector<2x8x10xf32>
    %cst_23 = arith.constant dense<0xFF800000> : vector<2x8xf32>
    %73 = vector.multi_reduction <maximumf>, %72, %cst_23 [2] : vector<2x8x10xf32> to vector<2x8xf32>
    %74 = vector.shape_cast %73 : vector<2x8xf32> to vector<2x8x1xf32>
    %75 = vector.broadcast %74 : vector<2x8x1xf32> to vector<2x8x10xf32>
    %76 = arith.subf %72, %75 : vector<2x8x10xf32>
    %77 = math.exp %76 : vector<2x8x10xf32>
    %cst_24 = arith.constant dense<0.000000e+00> : vector<2x8xf32>
    %78 = vector.multi_reduction <add>, %77, %cst_24 [2] : vector<2x8x10xf32> to vector<2x8xf32>
    %79 = vector.shape_cast %78 : vector<2x8xf32> to vector<2x8x1xf32>
    %80 = vector.broadcast %79 : vector<2x8x1xf32> to vector<2x8x10xf32>
    %81 = arith.divf %77, %80 : vector<2x8x10xf32>
    "tpu.trace_start"() <{level = 10 : i32, message = "bqk,bkd->bqd"}> : () -> ()
    %cst_25 = arith.constant dense<0.000000e+00> : vector<2x8x32xf32>
    %82 = tpu.matmul %81, %63, %cst_25 {dimension_numbers = #tpu.dot_dimension_numbers<[2], [1], [1], [2], [0, 0, 0, 1, 1, 2], [0], [0]>} : vector<2x8x10xf32>, vector<2x10x32xf32>, vector<2x8x32xf32> -> vector<2x8x32xf32>
    "tpu.trace_stop"() : () -> ()
    %83 = vector.shape_cast %82 : vector<2x8x32xf32> to vector<16x32xf32>
    %c88 = arith.constant 88 : index
    %c0_26 = arith.constant 0 : index
    %84 = vector.load %arg2[%c88, %c0_26] : memref<1096x128xf32, #tpu.memory_space<vmem>>, vector<32x32xf32>
    %cst_27 = arith.constant dense<0.000000e+00> : vector<16x32xf32>
    %85 = tpu.matmul %83, %84, %cst_27 {dimension_numbers = #tpu.dot_dimension_numbers<[1], [0], [0], [1], [0, 0, 1, 1], [], []>} : vector<16x32xf32>, vector<32x32xf32>, vector<16x32xf32> -> vector<16x32xf32>
    %c120 = arith.constant 120 : index
    %c0_28 = arith.constant 0 : index
    %86 = vector.load %arg2[%c120, %c0_28] : memref<1096x128xf32, #tpu.memory_space<vmem>>, vector<1x32xf32>
    %87 = vector.broadcast %86 : vector<1x32xf32> to vector<16x32xf32>
    %88 = arith.addf %85, %87 : vector<16x32xf32>
    %89 = vector.shape_cast %88 : vector<16x32xf32> to vector<2x8x32xf32>
    %90 = arith.addf %69, %89 : vector<2x8x32xf32>
    %cst_29 = arith.constant dense<0.000000e+00> : vector<2x8xf32>
    %91 = vector.multi_reduction <add>, %90, %cst_29 [2] : vector<2x8x32xf32> to vector<2x8xf32>
    %92 = vector.shape_cast %91 : vector<2x8xf32> to vector<2x8x1xf32>
    %cst_30 = arith.constant 3.200000e+01 : f32
    %93 = vector.broadcast %cst_30 : f32 to vector<2x8x1xf32>
    %94 = arith.divf %92, %93 : vector<2x8x1xf32>
    %95 = vector.broadcast %94 : vector<2x8x1xf32> to vector<2x8x32xf32>
    %96 = arith.subf %90, %95 : vector<2x8x32xf32>
    %97 = arith.mulf %96, %96 : vector<2x8x32xf32>
    %cst_31 = arith.constant dense<0.000000e+00> : vector<2x8xf32>
    %98 = vector.multi_reduction <add>, %97, %cst_31 [2] : vector<2x8x32xf32> to vector<2x8xf32>
    %99 = vector.shape_cast %98 : vector<2x8xf32> to vector<2x8x1xf32>
    %cst_32 = arith.constant 3.200000e+01 : f32
    %100 = vector.broadcast %cst_32 : f32 to vector<2x8x1xf32>
    %101 = arith.divf %99, %100 : vector<2x8x1xf32>
    %102 = vector.broadcast %94 : vector<2x8x1xf32> to vector<2x8x32xf32>
    %103 = arith.subf %90, %102 : vector<2x8x32xf32>
    %cst_33 = arith.constant 9.99999974E-6 : f32
    %104 = vector.broadcast %cst_33 : f32 to vector<2x8x1xf32>
    %105 = arith.addf %101, %104 : vector<2x8x1xf32>
    %106 = math.rsqrt %105 : vector<2x8x1xf32>
    %107 = vector.broadcast %106 : vector<2x8x1xf32> to vector<2x8x32xf32>
    %108 = arith.mulf %103, %107 : vector<2x8x32xf32>
    %109 = vector.shape_cast %108 : vector<2x8x32xf32> to vector<16x32xf32>
    %c128 = arith.constant 128 : index
    %c0_34 = arith.constant 0 : index
    %110 = vector.load %arg2[%c128, %c0_34] : memref<1096x128xf32, #tpu.memory_space<vmem>>, vector<32x128xf32>
    %cst_35 = arith.constant dense<0.000000e+00> : vector<16x128xf32>
    %111 = tpu.matmul %109, %110, %cst_35 {dimension_numbers = #tpu.dot_dimension_numbers<[1], [0], [0], [1], [0, 0, 1, 1], [], []>} : vector<16x32xf32>, vector<32x128xf32>, vector<16x128xf32> -> vector<16x128xf32>
    %c160 = arith.constant 160 : index
    %c0_36 = arith.constant 0 : index
    %112 = vector.load %arg2[%c160, %c0_36] : memref<1096x128xf32, #tpu.memory_space<vmem>>, vector<1x128xf32>
    %113 = vector.broadcast %112 : vector<1x128xf32> to vector<16x128xf32>
    %114 = arith.addf %111, %113 : vector<16x128xf32>
    %115 = arith.mulf %114, %114 : vector<16x128xf32>
    %116 = arith.mulf %114, %115 : vector<16x128xf32>
    %cst_37 = arith.constant 4.471500e-02 : f32
    %117 = vector.broadcast %cst_37 : f32 to vector<16x128xf32>
    %118 = arith.mulf %117, %116 : vector<16x128xf32>
    %119 = arith.addf %114, %118 : vector<16x128xf32>
    %cst_38 = arith.constant 0.797884583 : f32
    %120 = vector.broadcast %cst_38 : f32 to vector<16x128xf32>
    %121 = arith.mulf %120, %119 : vector<16x128xf32>
    %122 = math.tanh %121 : vector<16x128xf32>
    %cst_39 = arith.constant 1.000000e+00 : f32
    %123 = vector.broadcast %cst_39 : f32 to vector<16x128xf32>
    %124 = arith.addf %123, %122 : vector<16x128xf32>
    %cst_40 = arith.constant 5.000000e-01 : f32
    %125 = vector.broadcast %cst_40 : f32 to vector<16x128xf32>
    %126 = arith.mulf %125, %124 : vector<16x128xf32>
    %127 = arith.mulf %114, %126 : vector<16x128xf32>
    %c168 = arith.constant 168 : index
    %c0_41 = arith.constant 0 : index
    %128 = vector.load %arg2[%c168, %c0_41] : memref<1096x128xf32, #tpu.memory_space<vmem>>, vector<128x32xf32>
    %cst_42 = arith.constant dense<0.000000e+00> : vector<16x32xf32>
    %129 = tpu.matmul %127, %128, %cst_42 {dimension_numbers = #tpu.dot_dimension_numbers<[1], [0], [0], [1], [0, 0, 1, 1], [], []>} : vector<16x128xf32>, vector<128x32xf32>, vector<16x32xf32> -> vector<16x32xf32>
    %c296 = arith.constant 296 : index
    %c0_43 = arith.constant 0 : index
    %130 = vector.load %arg2[%c296, %c0_43] : memref<1096x128xf32, #tpu.memory_space<vmem>>, vector<1x32xf32>
    %131 = vector.broadcast %130 : vector<1x32xf32> to vector<16x32xf32>
    %132 = arith.addf %129, %131 : vector<16x32xf32>
    %133 = vector.shape_cast %132 : vector<16x32xf32> to vector<2x8x32xf32>
    %134 = arith.addf %90, %133 : vector<2x8x32xf32>
    %c32 = arith.constant 32 : index
    %c0_44 = arith.constant 0 : index
    %135 = vector.load %arg2[%c32, %c0_44] : memref<1096x128xf32, #tpu.memory_space<vmem>>, vector<8x32xf32>
    %cst_45 = arith.constant dense<0.000000e+00> : vector<8xf32>
    %136 = vector.multi_reduction <add>, %135, %cst_45 [1] : vector<8x32xf32> to vector<8xf32>
    %137 = vector.shape_cast %136 : vector<8xf32> to vector<8x1xf32>
    %cst_46 = arith.constant 3.200000e+01 : f32
    %138 = vector.broadcast %cst_46 : f32 to vector<8x1xf32>
    %139 = arith.divf %137, %138 : vector<8x1xf32>
    %140 = vector.broadcast %139 : vector<8x1xf32> to vector<8x32xf32>
    %141 = arith.subf %135, %140 : vector<8x32xf32>
    %142 = arith.mulf %141, %141 : vector<8x32xf32>
    %cst_47 = arith.constant dense<0.000000e+00> : vector<8xf32>
    %143 = vector.multi_reduction <add>, %142, %cst_47 [1] : vector<8x32xf32> to vector<8xf32>
    %144 = vector.shape_cast %143 : vector<8xf32> to vector<8x1xf32>
    %cst_48 = arith.constant 3.200000e+01 : f32
    %145 = vector.broadcast %cst_48 : f32 to vector<8x1xf32>
    %146 = arith.divf %144, %145 : vector<8x1xf32>
    %147 = vector.broadcast %139 : vector<8x1xf32> to vector<8x32xf32>
    %148 = arith.subf %135, %147 : vector<8x32xf32>
    %cst_49 = arith.constant 9.99999974E-6 : f32
    %149 = vector.broadcast %cst_49 : f32 to vector<8x1xf32>
    %150 = arith.addf %146, %149 : vector<8x1xf32>
    %151 = math.rsqrt %150 : vector<8x1xf32>
    %152 = vector.broadcast %151 : vector<8x1xf32> to vector<8x32xf32>
    %153 = arith.mulf %148, %152 : vector<8x32xf32>
    %cst_50 = arith.constant dense<0.000000e+00> : vector<2x6xf32>
    %154 = vector.multi_reduction <add>, %10, %cst_50 [2] : vector<2x6x32xf32> to vector<2x6xf32>
    %155 = vector.shape_cast %154 : vector<2x6xf32> to vector<2x6x1xf32>
    %cst_51 = arith.constant 3.200000e+01 : f32
    %156 = vector.broadcast %cst_51 : f32 to vector<2x6x1xf32>
    %157 = arith.divf %155, %156 : vector<2x6x1xf32>
    %158 = vector.broadcast %157 : vector<2x6x1xf32> to vector<2x6x32xf32>
    %159 = arith.subf %10, %158 : vector<2x6x32xf32>
    %160 = arith.mulf %159, %159 : vector<2x6x32xf32>
    %cst_52 = arith.constant dense<0.000000e+00> : vector<2x6xf32>
    %161 = vector.multi_reduction <add>, %160, %cst_52 [2] : vector<2x6x32xf32> to vector<2x6xf32>
    %162 = vector.shape_cast %161 : vector<2x6xf32> to vector<2x6x1xf32>
    %cst_53 = arith.constant 3.200000e+01 : f32
    %163 = vector.broadcast %cst_53 : f32 to vector<2x6x1xf32>
    %164 = arith.divf %162, %163 : vector<2x6x1xf32>
    %165 = vector.broadcast %157 : vector<2x6x1xf32> to vector<2x6x32xf32>
    %166 = arith.subf %10, %165 : vector<2x6x32xf32>
    %cst_54 = arith.constant 9.99999974E-6 : f32
    %167 = vector.broadcast %cst_54 : f32 to vector<2x6x1xf32>
    %168 = arith.addf %164, %167 : vector<2x6x1xf32>
    %169 = math.rsqrt %168 : vector<2x6x1xf32>
    %170 = vector.broadcast %169 : vector<2x6x1xf32> to vector<2x6x32xf32>
    %171 = arith.mulf %166, %170 : vector<2x6x32xf32>
    %172 = vector.shape_cast %171 : vector<2x6x32xf32> to vector<12x32xf32>
    %173 = tpu.concatenate %153, %172 in 0 : vector<8x32xf32>, vector<12x32xf32> -> vector<20x32xf32>
    %c304 = arith.constant 304 : index
    %c0_55 = arith.constant 0 : index
    %174 = vector.load %arg2[%c304, %c0_55] : memref<1096x128xf32, #tpu.memory_space<vmem>>, vector<32x96xf32>
    %cst_56 = arith.constant dense<0.000000e+00> : vector<20x96xf32>
    %175 = tpu.matmul %173, %174, %cst_56 {dimension_numbers = #tpu.dot_dimension_numbers<[1], [0], [0], [1], [0, 0, 1, 1], [], []>} : vector<20x32xf32>, vector<32x96xf32>, vector<20x96xf32> -> vector<20x96xf32>
    %176 = vector.extract_strided_slice %175 {offsets = [0, 0], sizes = [8, 32], strides = [1, 1]} : vector<20x96xf32> to vector<8x32xf32>
    %c336 = arith.constant 336 : index
    %c0_57 = arith.constant 0 : index
    %177 = vector.load %arg2[%c336, %c0_57] : memref<1096x128xf32, #tpu.memory_space<vmem>>, vector<1x32xf32>
    %178 = vector.broadcast %177 : vector<1x32xf32> to vector<8x32xf32>
    %179 = arith.addf %176, %178 : vector<8x32xf32>
    %180 = vector.extract_strided_slice %175 {offsets = [8, 32], sizes = [12, 64], strides = [1, 1]} : vector<20x96xf32> to vector<12x64xf32>
    %c344 = arith.constant 344 : index
    %c0_58 = arith.constant 0 : index
    %181 = vector.load %arg2[%c344, %c0_58] : memref<1096x128xf32, #tpu.memory_space<vmem>>, vector<1x64xf32>
    %182 = vector.broadcast %181 : vector<1x64xf32> to vector<12x64xf32>
    %183 = arith.addf %180, %182 : vector<12x64xf32>
    %184 = vector.extract_strided_slice %183 {offsets = [0, 0], sizes = [12, 32], strides = [1, 1]} : vector<12x64xf32> to vector<12x32xf32>
    %185 = vector.shape_cast %184 : vector<12x32xf32> to vector<2x6x32xf32>
    %186 = vector.extract_strided_slice %183 {offsets = [0, 32], sizes = [12, 32], strides = [1, 1]} : vector<12x64xf32> to vector<12x32xf32>
    %187 = vector.shape_cast %186 : vector<12x32xf32> to vector<2x6x32xf32>
    %188 = vector.shape_cast %179 : vector<8x32xf32> to vector<1x8x32xf32>
    %189 = vector.shape_cast %188 : vector<1x8x32xf32> to vector<1x8x32xf32>
    %190 = vector.broadcast %189 : vector<1x8x32xf32> to vector<2x8x32xf32>
    %191 = vector.shape_cast %135 : vector<8x32xf32> to vector<1x8x32xf32>
    %192 = vector.shape_cast %191 : vector<1x8x32xf32> to vector<1x8x32xf32>
    %193 = vector.broadcast %192 : vector<1x8x32xf32> to vector<2x8x32xf32>
    "tpu.trace_start"() <{level = 10 : i32, message = "bqd,bkd->bqk"}> : () -> ()
    %cst_59 = arith.constant dense<0.000000e+00> : vector<2x8x6xf32>
    %194 = tpu.matmul %190, %185, %cst_59 {dimension_numbers = #tpu.dot_dimension_numbers<[2], [2], [1], [1], [0, 0, 0, 1, 1, 1], [0], [0]>} : vector<2x8x32xf32>, vector<2x6x32xf32>, vector<2x8x6xf32> -> vector<2x8x6xf32>
    "tpu.trace_stop"() : () -> ()
    %cst_60 = arith.constant 0.176776692 : f32
    %195 = vector.broadcast %cst_60 : f32 to vector<2x8x6xf32>
    %196 = arith.mulf %194, %195 : vector<2x8x6xf32>
    %cst_61 = arith.constant dense<0xFF800000> : vector<2x8xf32>
    %197 = vector.multi_reduction <maximumf>, %196, %cst_61 [2] : vector<2x8x6xf32> to vector<2x8xf32>
    %198 = vector.shape_cast %197 : vector<2x8xf32> to vector<2x8x1xf32>
    %199 = vector.broadcast %198 : vector<2x8x1xf32> to vector<2x8x6xf32>
    %200 = arith.subf %196, %199 : vector<2x8x6xf32>
    %201 = math.exp %200 : vector<2x8x6xf32>
    %cst_62 = arith.constant dense<0.000000e+00> : vector<2x8xf32>
    %202 = vector.multi_reduction <add>, %201, %cst_62 [2] : vector<2x8x6xf32> to vector<2x8xf32>
    %203 = vector.shape_cast %202 : vector<2x8xf32> to vector<2x8x1xf32>
    %204 = vector.broadcast %203 : vector<2x8x1xf32> to vector<2x8x6xf32>
    %205 = arith.divf %201, %204 : vector<2x8x6xf32>
    "tpu.trace_start"() <{level = 10 : i32, message = "bqk,bkd->bqd"}> : () -> ()
    %cst_63 = arith.constant dense<0.000000e+00> : vector<2x8x32xf32>
    %206 = tpu.matmul %205, %187, %cst_63 {dimension_numbers = #tpu.dot_dimension_numbers<[2], [1], [1], [2], [0, 0, 0, 1, 1, 2], [0], [0]>} : vector<2x8x6xf32>, vector<2x6x32xf32>, vector<2x8x32xf32> -> vector<2x8x32xf32>
    "tpu.trace_stop"() : () -> ()
    %207 = vector.shape_cast %206 : vector<2x8x32xf32> to vector<16x32xf32>
    %c352 = arith.constant 352 : index
    %c0_64 = arith.constant 0 : index
    %208 = vector.load %arg2[%c352, %c0_64] : memref<1096x128xf32, #tpu.memory_space<vmem>>, vector<32x32xf32>
    %cst_65 = arith.constant dense<0.000000e+00> : vector<16x32xf32>
    %209 = tpu.matmul %207, %208, %cst_65 {dimension_numbers = #tpu.dot_dimension_numbers<[1], [0], [0], [1], [0, 0, 1, 1], [], []>} : vector<16x32xf32>, vector<32x32xf32>, vector<16x32xf32> -> vector<16x32xf32>
    %c384 = arith.constant 384 : index
    %c0_66 = arith.constant 0 : index
    %210 = vector.load %arg2[%c384, %c0_66] : memref<1096x128xf32, #tpu.memory_space<vmem>>, vector<1x32xf32>
    %211 = vector.broadcast %210 : vector<1x32xf32> to vector<16x32xf32>
    %212 = arith.addf %209, %211 : vector<16x32xf32>
    %213 = vector.shape_cast %212 : vector<16x32xf32> to vector<2x8x32xf32>
    %214 = arith.addf %193, %213 : vector<2x8x32xf32>
    %cst_67 = arith.constant dense<0.000000e+00> : vector<2x8xf32>
    %215 = vector.multi_reduction <add>, %214, %cst_67 [2] : vector<2x8x32xf32> to vector<2x8xf32>
    %216 = vector.shape_cast %215 : vector<2x8xf32> to vector<2x8x1xf32>
    %cst_68 = arith.constant 3.200000e+01 : f32
    %217 = vector.broadcast %cst_68 : f32 to vector<2x8x1xf32>
    %218 = arith.divf %216, %217 : vector<2x8x1xf32>
    %219 = vector.broadcast %218 : vector<2x8x1xf32> to vector<2x8x32xf32>
    %220 = arith.subf %214, %219 : vector<2x8x32xf32>
    %221 = arith.mulf %220, %220 : vector<2x8x32xf32>
    %cst_69 = arith.constant dense<0.000000e+00> : vector<2x8xf32>
    %222 = vector.multi_reduction <add>, %221, %cst_69 [2] : vector<2x8x32xf32> to vector<2x8xf32>
    %223 = vector.shape_cast %222 : vector<2x8xf32> to vector<2x8x1xf32>
    %cst_70 = arith.constant 3.200000e+01 : f32
    %224 = vector.broadcast %cst_70 : f32 to vector<2x8x1xf32>
    %225 = arith.divf %223, %224 : vector<2x8x1xf32>
    %226 = vector.broadcast %218 : vector<2x8x1xf32> to vector<2x8x32xf32>
    %227 = arith.subf %214, %226 : vector<2x8x32xf32>
    %cst_71 = arith.constant 9.99999974E-6 : f32
    %228 = vector.broadcast %cst_71 : f32 to vector<2x8x1xf32>
    %229 = arith.addf %225, %228 : vector<2x8x1xf32>
    %230 = math.rsqrt %229 : vector<2x8x1xf32>
    %231 = vector.broadcast %230 : vector<2x8x1xf32> to vector<2x8x32xf32>
    %232 = arith.mulf %227, %231 : vector<2x8x32xf32>
    %233 = vector.shape_cast %232 : vector<2x8x32xf32> to vector<16x32xf32>
    %c392 = arith.constant 392 : index
    %c0_72 = arith.constant 0 : index
    %234 = vector.load %arg2[%c392, %c0_72] : memref<1096x128xf32, #tpu.memory_space<vmem>>, vector<32x128xf32>
    %cst_73 = arith.constant dense<0.000000e+00> : vector<16x128xf32>
    %235 = tpu.matmul %233, %234, %cst_73 {dimension_numbers = #tpu.dot_dimension_numbers<[1], [0], [0], [1], [0, 0, 1, 1], [], []>} : vector<16x32xf32>, vector<32x128xf32>, vector<16x128xf32> -> vector<16x128xf32>
    %c424 = arith.constant 424 : index
    %c0_74 = arith.constant 0 : index
    %236 = vector.load %arg2[%c424, %c0_74] : memref<1096x128xf32, #tpu.memory_space<vmem>>, vector<1x128xf32>
    %237 = vector.broadcast %236 : vector<1x128xf32> to vector<16x128xf32>
    %238 = arith.addf %235, %237 : vector<16x128xf32>
    %239 = arith.mulf %238, %238 : vector<16x128xf32>
    %240 = arith.mulf %238, %239 : vector<16x128xf32>
    %cst_75 = arith.constant 4.471500e-02 : f32
    %241 = vector.broadcast %cst_75 : f32 to vector<16x128xf32>
    %242 = arith.mulf %241, %240 : vector<16x128xf32>
    %243 = arith.addf %238, %242 : vector<16x128xf32>
    %cst_76 = arith.constant 0.797884583 : f32
    %244 = vector.broadcast %cst_76 : f32 to vector<16x128xf32>
    %245 = arith.mulf %244, %243 : vector<16x128xf32>
    %246 = math.tanh %245 : vector<16x128xf32>
    %cst_77 = arith.constant 1.000000e+00 : f32
    %247 = vector.broadcast %cst_77 : f32 to vector<16x128xf32>
    %248 = arith.addf %247, %246 : vector<16x128xf32>
    %cst_78 = arith.constant 5.000000e-01 : f32
    %249 = vector.broadcast %cst_78 : f32 to vector<16x128xf32>
    %250 = arith.mulf %249, %248 : vector<16x128xf32>
    %251 = arith.mulf %238, %250 : vector<16x128xf32>
    %c432 = arith.constant 432 : index
    %c0_79 = arith.constant 0 : index
    %252 = vector.load %arg2[%c432, %c0_79] : memref<1096x128xf32, #tpu.memory_space<vmem>>, vector<128x32xf32>
    %cst_80 = arith.constant dense<0.000000e+00> : vector<16x32xf32>
    %253 = tpu.matmul %251, %252, %cst_80 {dimension_numbers = #tpu.dot_dimension_numbers<[1], [0], [0], [1], [0, 0, 1, 1], [], []>} : vector<16x128xf32>, vector<128x32xf32>, vector<16x32xf32> -> vector<16x32xf32>
    %c560 = arith.constant 560 : index
    %c0_81 = arith.constant 0 : index
    %254 = vector.load %arg2[%c560, %c0_81] : memref<1096x128xf32, #tpu.memory_space<vmem>>, vector<1x32xf32>
    %255 = vector.broadcast %254 : vector<1x32xf32> to vector<16x32xf32>
    %256 = arith.addf %253, %255 : vector<16x32xf32>
    %257 = vector.shape_cast %256 : vector<16x32xf32> to vector<2x8x32xf32>
    %258 = arith.addf %214, %257 : vector<2x8x32xf32>
    %cst_82 = arith.constant dense<0.000000e+00> : vector<2x8xf32>
    %259 = vector.multi_reduction <add>, %258, %cst_82 [2] : vector<2x8x32xf32> to vector<2x8xf32>
    %260 = vector.shape_cast %259 : vector<2x8xf32> to vector<2x8x1xf32>
    %cst_83 = arith.constant 3.200000e+01 : f32
    %261 = vector.broadcast %cst_83 : f32 to vector<2x8x1xf32>
    %262 = arith.divf %260, %261 : vector<2x8x1xf32>
    %263 = vector.broadcast %262 : vector<2x8x1xf32> to vector<2x8x32xf32>
    %264 = arith.subf %258, %263 : vector<2x8x32xf32>
    %265 = arith.mulf %264, %264 : vector<2x8x32xf32>
    %cst_84 = arith.constant dense<0.000000e+00> : vector<2x8xf32>
    %266 = vector.multi_reduction <add>, %265, %cst_84 [2] : vector<2x8x32xf32> to vector<2x8xf32>
    %267 = vector.shape_cast %266 : vector<2x8xf32> to vector<2x8x1xf32>
    %cst_85 = arith.constant 3.200000e+01 : f32
    %268 = vector.broadcast %cst_85 : f32 to vector<2x8x1xf32>
    %269 = arith.divf %267, %268 : vector<2x8x1xf32>
    %270 = vector.broadcast %262 : vector<2x8x1xf32> to vector<2x8x32xf32>
    %271 = arith.subf %258, %270 : vector<2x8x32xf32>
    %cst_86 = arith.constant 9.99999974E-6 : f32
    %272 = vector.broadcast %cst_86 : f32 to vector<2x8x1xf32>
    %273 = arith.addf %269, %272 : vector<2x8x1xf32>
    %274 = math.rsqrt %273 : vector<2x8x1xf32>
    %275 = vector.broadcast %274 : vector<2x8x1xf32> to vector<2x8x32xf32>
    %276 = arith.mulf %271, %275 : vector<2x8x32xf32>
    %277 = vector.shape_cast %276 : vector<2x8x32xf32> to vector<16x32xf32>
    %cst_87 = arith.constant dense<0.000000e+00> : vector<2x8xf32>
    %278 = vector.multi_reduction <add>, %134, %cst_87 [2] : vector<2x8x32xf32> to vector<2x8xf32>
    %279 = vector.shape_cast %278 : vector<2x8xf32> to vector<2x8x1xf32>
    %cst_88 = arith.constant 3.200000e+01 : f32
    %280 = vector.broadcast %cst_88 : f32 to vector<2x8x1xf32>
    %281 = arith.divf %279, %280 : vector<2x8x1xf32>
    %282 = vector.broadcast %281 : vector<2x8x1xf32> to vector<2x8x32xf32>
    %283 = arith.subf %134, %282 : vector<2x8x32xf32>
    %284 = arith.mulf %283, %283 : vector<2x8x32xf32>
    %cst_89 = arith.constant dense<0.000000e+00> : vector<2x8xf32>
    %285 = vector.multi_reduction <add>, %284, %cst_89 [2] : vector<2x8x32xf32> to vector<2x8xf32>
    %286 = vector.shape_cast %285 : vector<2x8xf32> to vector<2x8x1xf32>
    %cst_90 = arith.constant 3.200000e+01 : f32
    %287 = vector.broadcast %cst_90 : f32 to vector<2x8x1xf32>
    %288 = arith.divf %286, %287 : vector<2x8x1xf32>
    %289 = vector.broadcast %281 : vector<2x8x1xf32> to vector<2x8x32xf32>
    %290 = arith.subf %134, %289 : vector<2x8x32xf32>
    %cst_91 = arith.constant 9.99999974E-6 : f32
    %291 = vector.broadcast %cst_91 : f32 to vector<2x8x1xf32>
    %292 = arith.addf %288, %291 : vector<2x8x1xf32>
    %293 = math.rsqrt %292 : vector<2x8x1xf32>
    %294 = vector.broadcast %293 : vector<2x8x1xf32> to vector<2x8x32xf32>
    %295 = arith.mulf %290, %294 : vector<2x8x32xf32>
    %296 = vector.shape_cast %295 : vector<2x8x32xf32> to vector<16x32xf32>
    %297 = tpu.concatenate %277, %296 in 0 : vector<16x32xf32>, vector<16x32xf32> -> vector<32x32xf32>
    %c568 = arith.constant 568 : index
    %c0_92 = arith.constant 0 : index
    %298 = vector.load %arg2[%c568, %c0_92] : memref<1096x128xf32, #tpu.memory_space<vmem>>, vector<32x96xf32>
    %cst_93 = arith.constant dense<0.000000e+00> : vector<32x96xf32>
    %299 = tpu.matmul %297, %298, %cst_93 {dimension_numbers = #tpu.dot_dimension_numbers<[1], [0], [0], [1], [0, 0, 1, 1], [], []>} : vector<32x32xf32>, vector<32x96xf32>, vector<32x96xf32> -> vector<32x96xf32>
    %300 = vector.extract_strided_slice %299 {offsets = [0, 0], sizes = [16, 32], strides = [1, 1]} : vector<32x96xf32> to vector<16x32xf32>
    %c600 = arith.constant 600 : index
    %c0_94 = arith.constant 0 : index
    %301 = vector.load %arg2[%c600, %c0_94] : memref<1096x128xf32, #tpu.memory_space<vmem>>, vector<1x32xf32>
    %302 = vector.broadcast %301 : vector<1x32xf32> to vector<16x32xf32>
    %303 = arith.addf %300, %302 : vector<16x32xf32>
    %304 = vector.extract_strided_slice %299 {offsets = [16, 32], sizes = [16, 64], strides = [1, 1]} : vector<32x96xf32> to vector<16x64xf32>
    %c608 = arith.constant 608 : index
    %c0_95 = arith.constant 0 : index
    %305 = vector.load %arg2[%c608, %c0_95] : memref<1096x128xf32, #tpu.memory_space<vmem>>, vector<1x64xf32>
    %306 = vector.broadcast %305 : vector<1x64xf32> to vector<16x64xf32>
    %307 = arith.addf %304, %306 : vector<16x64xf32>
    %308 = vector.extract_strided_slice %307 {offsets = [0, 0], sizes = [16, 32], strides = [1, 1]} : vector<16x64xf32> to vector<16x32xf32>
    %309 = vector.shape_cast %308 : vector<16x32xf32> to vector<2x8x32xf32>
    %310 = vector.extract_strided_slice %307 {offsets = [0, 32], sizes = [16, 32], strides = [1, 1]} : vector<16x64xf32> to vector<16x32xf32>
    %311 = vector.shape_cast %310 : vector<16x32xf32> to vector<2x8x32xf32>
    %312 = vector.shape_cast %303 : vector<16x32xf32> to vector<2x8x32xf32>
    "tpu.trace_start"() <{level = 10 : i32, message = "bqd,bkd->bqk"}> : () -> ()
    %cst_96 = arith.constant dense<0.000000e+00> : vector<2x8x8xf32>
    %313 = tpu.matmul %312, %309, %cst_96 {dimension_numbers = #tpu.dot_dimension_numbers<[2], [2], [1], [1], [0, 0, 0, 1, 1, 1], [0], [0]>} : vector<2x8x32xf32>, vector<2x8x32xf32>, vector<2x8x8xf32> -> vector<2x8x8xf32>
    "tpu.trace_stop"() : () -> ()
    %cst_97 = arith.constant 0.176776692 : f32
    %314 = vector.broadcast %cst_97 : f32 to vector<2x8x8xf32>
    %315 = arith.mulf %313, %314 : vector<2x8x8xf32>
    %cst_98 = arith.constant dense<0xFF800000> : vector<2x8xf32>
    %316 = vector.multi_reduction <maximumf>, %315, %cst_98 [2] : vector<2x8x8xf32> to vector<2x8xf32>
    %317 = vector.shape_cast %316 : vector<2x8xf32> to vector<2x8x1xf32>
    %318 = vector.broadcast %317 : vector<2x8x1xf32> to vector<2x8x8xf32>
    %319 = arith.subf %315, %318 : vector<2x8x8xf32>
    %320 = math.exp %319 : vector<2x8x8xf32>
    %cst_99 = arith.constant dense<0.000000e+00> : vector<2x8xf32>
    %321 = vector.multi_reduction <add>, %320, %cst_99 [2] : vector<2x8x8xf32> to vector<2x8xf32>
    %322 = vector.shape_cast %321 : vector<2x8xf32> to vector<2x8x1xf32>
    %323 = vector.broadcast %322 : vector<2x8x1xf32> to vector<2x8x8xf32>
    %324 = arith.divf %320, %323 : vector<2x8x8xf32>
    "tpu.trace_start"() <{level = 10 : i32, message = "bqk,bkd->bqd"}> : () -> ()
    %cst_100 = arith.constant dense<0.000000e+00> : vector<2x8x32xf32>
    %325 = tpu.matmul %324, %311, %cst_100 {dimension_numbers = #tpu.dot_dimension_numbers<[2], [1], [1], [2], [0, 0, 0, 1, 1, 2], [0], [0]>} : vector<2x8x8xf32>, vector<2x8x32xf32>, vector<2x8x32xf32> -> vector<2x8x32xf32>
    "tpu.trace_stop"() : () -> ()
    %326 = vector.shape_cast %325 : vector<2x8x32xf32> to vector<16x32xf32>
    %c616 = arith.constant 616 : index
    %c0_101 = arith.constant 0 : index
    %327 = vector.load %arg2[%c616, %c0_101] : memref<1096x128xf32, #tpu.memory_space<vmem>>, vector<32x32xf32>
    %cst_102 = arith.constant dense<0.000000e+00> : vector<16x32xf32>
    %328 = tpu.matmul %326, %327, %cst_102 {dimension_numbers = #tpu.dot_dimension_numbers<[1], [0], [0], [1], [0, 0, 1, 1], [], []>} : vector<16x32xf32>, vector<32x32xf32>, vector<16x32xf32> -> vector<16x32xf32>
    %c648 = arith.constant 648 : index
    %c0_103 = arith.constant 0 : index
    %329 = vector.load %arg2[%c648, %c0_103] : memref<1096x128xf32, #tpu.memory_space<vmem>>, vector<1x32xf32>
    %330 = vector.broadcast %329 : vector<1x32xf32> to vector<16x32xf32>
    %331 = arith.addf %328, %330 : vector<16x32xf32>
    %332 = vector.shape_cast %331 : vector<16x32xf32> to vector<2x8x32xf32>
    %333 = arith.addf %258, %332 : vector<2x8x32xf32>
    %cst_104 = arith.constant dense<0.000000e+00> : vector<2x8xf32>
    %334 = vector.multi_reduction <add>, %333, %cst_104 [2] : vector<2x8x32xf32> to vector<2x8xf32>
    %335 = vector.shape_cast %334 : vector<2x8xf32> to vector<2x8x1xf32>
    %cst_105 = arith.constant 3.200000e+01 : f32
    %336 = vector.broadcast %cst_105 : f32 to vector<2x8x1xf32>
    %337 = arith.divf %335, %336 : vector<2x8x1xf32>
    %338 = vector.broadcast %337 : vector<2x8x1xf32> to vector<2x8x32xf32>
    %339 = arith.subf %333, %338 : vector<2x8x32xf32>
    %340 = arith.mulf %339, %339 : vector<2x8x32xf32>
    %cst_106 = arith.constant dense<0.000000e+00> : vector<2x8xf32>
    %341 = vector.multi_reduction <add>, %340, %cst_106 [2] : vector<2x8x32xf32> to vector<2x8xf32>
    %342 = vector.shape_cast %341 : vector<2x8xf32> to vector<2x8x1xf32>
    %cst_107 = arith.constant 3.200000e+01 : f32
    %343 = vector.broadcast %cst_107 : f32 to vector<2x8x1xf32>
    %344 = arith.divf %342, %343 : vector<2x8x1xf32>
    %345 = vector.broadcast %337 : vector<2x8x1xf32> to vector<2x8x32xf32>
    %346 = arith.subf %333, %345 : vector<2x8x32xf32>
    %cst_108 = arith.constant 9.99999974E-6 : f32
    %347 = vector.broadcast %cst_108 : f32 to vector<2x8x1xf32>
    %348 = arith.addf %344, %347 : vector<2x8x1xf32>
    %349 = math.rsqrt %348 : vector<2x8x1xf32>
    %350 = vector.broadcast %349 : vector<2x8x1xf32> to vector<2x8x32xf32>
    %351 = arith.mulf %346, %350 : vector<2x8x32xf32>
    %352 = vector.shape_cast %351 : vector<2x8x32xf32> to vector<16x32xf32>
    %c656 = arith.constant 656 : index
    %c0_109 = arith.constant 0 : index
    %353 = vector.load %arg2[%c656, %c0_109] : memref<1096x128xf32, #tpu.memory_space<vmem>>, vector<32x128xf32>
    %cst_110 = arith.constant dense<0.000000e+00> : vector<16x128xf32>
    %354 = tpu.matmul %352, %353, %cst_110 {dimension_numbers = #tpu.dot_dimension_numbers<[1], [0], [0], [1], [0, 0, 1, 1], [], []>} : vector<16x32xf32>, vector<32x128xf32>, vector<16x128xf32> -> vector<16x128xf32>
    %c688 = arith.constant 688 : index
    %c0_111 = arith.constant 0 : index
    %355 = vector.load %arg2[%c688, %c0_111] : memref<1096x128xf32, #tpu.memory_space<vmem>>, vector<1x128xf32>
    %356 = vector.broadcast %355 : vector<1x128xf32> to vector<16x128xf32>
    %357 = arith.addf %354, %356 : vector<16x128xf32>
    %358 = arith.mulf %357, %357 : vector<16x128xf32>
    %359 = arith.mulf %357, %358 : vector<16x128xf32>
    %cst_112 = arith.constant 4.471500e-02 : f32
    %360 = vector.broadcast %cst_112 : f32 to vector<16x128xf32>
    %361 = arith.mulf %360, %359 : vector<16x128xf32>
    %362 = arith.addf %357, %361 : vector<16x128xf32>
    %cst_113 = arith.constant 0.797884583 : f32
    %363 = vector.broadcast %cst_113 : f32 to vector<16x128xf32>
    %364 = arith.mulf %363, %362 : vector<16x128xf32>
    %365 = math.tanh %364 : vector<16x128xf32>
    %cst_114 = arith.constant 1.000000e+00 : f32
    %366 = vector.broadcast %cst_114 : f32 to vector<16x128xf32>
    %367 = arith.addf %366, %365 : vector<16x128xf32>
    %cst_115 = arith.constant 5.000000e-01 : f32
    %368 = vector.broadcast %cst_115 : f32 to vector<16x128xf32>
    %369 = arith.mulf %368, %367 : vector<16x128xf32>
    %370 = arith.mulf %357, %369 : vector<16x128xf32>
    %c696 = arith.constant 696 : index
    %c0_116 = arith.constant 0 : index
    %371 = vector.load %arg2[%c696, %c0_116] : memref<1096x128xf32, #tpu.memory_space<vmem>>, vector<128x32xf32>
    %cst_117 = arith.constant dense<0.000000e+00> : vector<16x32xf32>
    %372 = tpu.matmul %370, %371, %cst_117 {dimension_numbers = #tpu.dot_dimension_numbers<[1], [0], [0], [1], [0, 0, 1, 1], [], []>} : vector<16x128xf32>, vector<128x32xf32>, vector<16x32xf32> -> vector<16x32xf32>
    %c824 = arith.constant 824 : index
    %c0_118 = arith.constant 0 : index
    %373 = vector.load %arg2[%c824, %c0_118] : memref<1096x128xf32, #tpu.memory_space<vmem>>, vector<1x32xf32>
    %374 = vector.broadcast %373 : vector<1x32xf32> to vector<16x32xf32>
    %375 = arith.addf %372, %374 : vector<16x32xf32>
    %376 = vector.shape_cast %375 : vector<16x32xf32> to vector<2x8x32xf32>
    %377 = arith.addf %333, %376 : vector<2x8x32xf32>
    %378 = vector.shape_cast %1 : vector<2x32xf32> to vector<2x1x32xf32>
    %cst_119 = arith.constant dense<0.000000e+00> : vector<2x1xf32>
    %379 = vector.multi_reduction <add>, %378, %cst_119 [2] : vector<2x1x32xf32> to vector<2x1xf32>
    %380 = vector.shape_cast %379 : vector<2x1xf32> to vector<2x1x1xf32>
    %cst_120 = arith.constant 3.200000e+01 : f32
    %381 = vector.broadcast %cst_120 : f32 to vector<2x1x1xf32>
    %382 = arith.divf %380, %381 : vector<2x1x1xf32>
    %383 = vector.broadcast %382 : vector<2x1x1xf32> to vector<2x1x32xf32>
    %384 = arith.subf %378, %383 : vector<2x1x32xf32>
    %385 = arith.mulf %384, %384 : vector<2x1x32xf32>
    %cst_121 = arith.constant dense<0.000000e+00> : vector<2x1xf32>
    %386 = vector.multi_reduction <add>, %385, %cst_121 [2] : vector<2x1x32xf32> to vector<2x1xf32>
    %387 = vector.shape_cast %386 : vector<2x1xf32> to vector<2x1x1xf32>
    %cst_122 = arith.constant 3.200000e+01 : f32
    %388 = vector.broadcast %cst_122 : f32 to vector<2x1x1xf32>
    %389 = arith.divf %387, %388 : vector<2x1x1xf32>
    %390 = vector.broadcast %382 : vector<2x1x1xf32> to vector<2x1x32xf32>
    %391 = arith.subf %378, %390 : vector<2x1x32xf32>
    %cst_123 = arith.constant 9.99999974E-6 : f32
    %392 = vector.broadcast %cst_123 : f32 to vector<2x1x1xf32>
    %393 = arith.addf %389, %392 : vector<2x1x1xf32>
    %394 = math.rsqrt %393 : vector<2x1x1xf32>
    %395 = vector.broadcast %394 : vector<2x1x1xf32> to vector<2x1x32xf32>
    %396 = arith.mulf %391, %395 : vector<2x1x32xf32>
    %397 = vector.shape_cast %396 : vector<2x1x32xf32> to vector<2x32xf32>
    %cst_124 = arith.constant dense<0.000000e+00> : vector<2x8xf32>
    %398 = vector.multi_reduction <add>, %377, %cst_124 [2] : vector<2x8x32xf32> to vector<2x8xf32>
    %399 = vector.shape_cast %398 : vector<2x8xf32> to vector<2x8x1xf32>
    %cst_125 = arith.constant 3.200000e+01 : f32
    %400 = vector.broadcast %cst_125 : f32 to vector<2x8x1xf32>
    %401 = arith.divf %399, %400 : vector<2x8x1xf32>
    %402 = vector.broadcast %401 : vector<2x8x1xf32> to vector<2x8x32xf32>
    %403 = arith.subf %377, %402 : vector<2x8x32xf32>
    %404 = arith.mulf %403, %403 : vector<2x8x32xf32>
    %cst_126 = arith.constant dense<0.000000e+00> : vector<2x8xf32>
    %405 = vector.multi_reduction <add>, %404, %cst_126 [2] : vector<2x8x32xf32> to vector<2x8xf32>
    %406 = vector.shape_cast %405 : vector<2x8xf32> to vector<2x8x1xf32>
    %cst_127 = arith.constant 3.200000e+01 : f32
    %407 = vector.broadcast %cst_127 : f32 to vector<2x8x1xf32>
    %408 = arith.divf %406, %407 : vector<2x8x1xf32>
    %409 = vector.broadcast %401 : vector<2x8x1xf32> to vector<2x8x32xf32>
    %410 = arith.subf %377, %409 : vector<2x8x32xf32>
    %cst_128 = arith.constant 9.99999974E-6 : f32
    %411 = vector.broadcast %cst_128 : f32 to vector<2x8x1xf32>
    %412 = arith.addf %408, %411 : vector<2x8x1xf32>
    %413 = math.rsqrt %412 : vector<2x8x1xf32>
    %414 = vector.broadcast %413 : vector<2x8x1xf32> to vector<2x8x32xf32>
    %415 = arith.mulf %410, %414 : vector<2x8x32xf32>
    %416 = vector.shape_cast %415 : vector<2x8x32xf32> to vector<16x32xf32>
    %417 = tpu.concatenate %397, %416 in 0 : vector<2x32xf32>, vector<16x32xf32> -> vector<18x32xf32>
    %c832 = arith.constant 832 : index
    %c0_129 = arith.constant 0 : index
    %418 = vector.load %arg2[%c832, %c0_129] : memref<1096x128xf32, #tpu.memory_space<vmem>>, vector<32x96xf32>
    %cst_130 = arith.constant dense<0.000000e+00> : vector<18x96xf32>
    %419 = tpu.matmul %417, %418, %cst_130 {dimension_numbers = #tpu.dot_dimension_numbers<[1], [0], [0], [1], [0, 0, 1, 1], [], []>} : vector<18x32xf32>, vector<32x96xf32>, vector<18x96xf32> -> vector<18x96xf32>
    %420 = vector.extract_strided_slice %419 {offsets = [0, 0], sizes = [2, 32], strides = [1, 1]} : vector<18x96xf32> to vector<2x32xf32>
    %c864 = arith.constant 864 : index
    %c0_131 = arith.constant 0 : index
    %421 = vector.load %arg2[%c864, %c0_131] : memref<1096x128xf32, #tpu.memory_space<vmem>>, vector<1x32xf32>
    %422 = vector.broadcast %421 : vector<1x32xf32> to vector<2x32xf32>
    %423 = arith.addf %420, %422 : vector<2x32xf32>
    %424 = vector.extract_strided_slice %419 {offsets = [2, 32], sizes = [16, 64], strides = [1, 1]} : vector<18x96xf32> to vector<16x64xf32>
    %c872 = arith.constant 872 : index
    %c0_132 = arith.constant 0 : index
    %425 = vector.load %arg2[%c872, %c0_132] : memref<1096x128xf32, #tpu.memory_space<vmem>>, vector<1x64xf32>
    %426 = vector.broadcast %425 : vector<1x64xf32> to vector<16x64xf32>
    %427 = arith.addf %424, %426 : vector<16x64xf32>
    %428 = vector.extract_strided_slice %427 {offsets = [0, 0], sizes = [16, 32], strides = [1, 1]} : vector<16x64xf32> to vector<16x32xf32>
    %429 = vector.shape_cast %428 : vector<16x32xf32> to vector<2x8x32xf32>
    %430 = vector.extract_strided_slice %427 {offsets = [0, 32], sizes = [16, 32], strides = [1, 1]} : vector<16x64xf32> to vector<16x32xf32>
    %431 = vector.shape_cast %430 : vector<16x32xf32> to vector<2x8x32xf32>
    %432 = vector.shape_cast %423 : vector<2x32xf32> to vector<2x1x32xf32>
    "tpu.trace_start"() <{level = 10 : i32, message = "bqd,bkd->bqk"}> : () -> ()
    %cst_133 = arith.constant dense<0.000000e+00> : vector<2x1x8xf32>
    %433 = tpu.matmul %432, %429, %cst_133 {dimension_numbers = #tpu.dot_dimension_numbers<[2], [2], [1], [1], [0, 0, 0, 1, 1, 1], [0], [0]>} : vector<2x1x32xf32>, vector<2x8x32xf32>, vector<2x1x8xf32> -> vector<2x1x8xf32>
    "tpu.trace_stop"() : () -> ()
    %cst_134 = arith.constant 0.176776692 : f32
    %434 = vector.broadcast %cst_134 : f32 to vector<2x1x8xf32>
    %435 = arith.mulf %433, %434 : vector<2x1x8xf32>
    %cst_135 = arith.constant dense<0xFF800000> : vector<2x1xf32>
    %436 = vector.multi_reduction <maximumf>, %435, %cst_135 [2] : vector<2x1x8xf32> to vector<2x1xf32>
    %437 = vector.shape_cast %436 : vector<2x1xf32> to vector<2x1x1xf32>
    %438 = vector.broadcast %437 : vector<2x1x1xf32> to vector<2x1x8xf32>
    %439 = arith.subf %435, %438 : vector<2x1x8xf32>
    %440 = math.exp %439 : vector<2x1x8xf32>
    %cst_136 = arith.constant dense<0.000000e+00> : vector<2x1xf32>
    %441 = vector.multi_reduction <add>, %440, %cst_136 [2] : vector<2x1x8xf32> to vector<2x1xf32>
    %442 = vector.shape_cast %441 : vector<2x1xf32> to vector<2x1x1xf32>
    %443 = vector.broadcast %442 : vector<2x1x1xf32> to vector<2x1x8xf32>
    %444 = arith.divf %440, %443 : vector<2x1x8xf32>
    "tpu.trace_start"() <{level = 10 : i32, message = "bqk,bkd->bqd"}> : () -> ()
    %cst_137 = arith.constant dense<0.000000e+00> : vector<2x1x32xf32>
    %445 = tpu.matmul %444, %431, %cst_137 {dimension_numbers = #tpu.dot_dimension_numbers<[2], [1], [1], [2], [0, 0, 0, 1, 1, 2], [0], [0]>} : vector<2x1x8xf32>, vector<2x8x32xf32>, vector<2x1x32xf32> -> vector<2x1x32xf32>
    "tpu.trace_stop"() : () -> ()
    %446 = vector.shape_cast %445 : vector<2x1x32xf32> to vector<2x32xf32>
    %c880 = arith.constant 880 : index
    %c0_138 = arith.constant 0 : index
    %447 = vector.load %arg2[%c880, %c0_138] : memref<1096x128xf32, #tpu.memory_space<vmem>>, vector<32x32xf32>
    %cst_139 = arith.constant dense<0.000000e+00> : vector<2x32xf32>
    %448 = tpu.matmul %446, %447, %cst_139 {dimension_numbers = #tpu.dot_dimension_numbers<[1], [0], [0], [1], [0, 0, 1, 1], [], []>} : vector<2x32xf32>, vector<32x32xf32>, vector<2x32xf32> -> vector<2x32xf32>
    %c912 = arith.constant 912 : index
    %c0_140 = arith.constant 0 : index
    %449 = vector.load %arg2[%c912, %c0_140] : memref<1096x128xf32, #tpu.memory_space<vmem>>, vector<1x32xf32>
    %450 = vector.broadcast %449 : vector<1x32xf32> to vector<2x32xf32>
    %451 = arith.addf %448, %450 : vector<2x32xf32>
    %452 = vector.shape_cast %451 : vector<2x32xf32> to vector<2x1x32xf32>
    %453 = arith.addf %378, %452 : vector<2x1x32xf32>
    %cst_141 = arith.constant dense<0.000000e+00> : vector<2x1xf32>
    %454 = vector.multi_reduction <add>, %453, %cst_141 [2] : vector<2x1x32xf32> to vector<2x1xf32>
    %455 = vector.shape_cast %454 : vector<2x1xf32> to vector<2x1x1xf32>
    %cst_142 = arith.constant 3.200000e+01 : f32
    %456 = vector.broadcast %cst_142 : f32 to vector<2x1x1xf32>
    %457 = arith.divf %455, %456 : vector<2x1x1xf32>
    %458 = vector.broadcast %457 : vector<2x1x1xf32> to vector<2x1x32xf32>
    %459 = arith.subf %453, %458 : vector<2x1x32xf32>
    %460 = arith.mulf %459, %459 : vector<2x1x32xf32>
    %cst_143 = arith.constant dense<0.000000e+00> : vector<2x1xf32>
    %461 = vector.multi_reduction <add>, %460, %cst_143 [2] : vector<2x1x32xf32> to vector<2x1xf32>
    %462 = vector.shape_cast %461 : vector<2x1xf32> to vector<2x1x1xf32>
    %cst_144 = arith.constant 3.200000e+01 : f32
    %463 = vector.broadcast %cst_144 : f32 to vector<2x1x1xf32>
    %464 = arith.divf %462, %463 : vector<2x1x1xf32>
    %465 = vector.broadcast %457 : vector<2x1x1xf32> to vector<2x1x32xf32>
    %466 = arith.subf %453, %465 : vector<2x1x32xf32>
    %cst_145 = arith.constant 9.99999974E-6 : f32
    %467 = vector.broadcast %cst_145 : f32 to vector<2x1x1xf32>
    %468 = arith.addf %464, %467 : vector<2x1x1xf32>
    %469 = math.rsqrt %468 : vector<2x1x1xf32>
    %470 = vector.broadcast %469 : vector<2x1x1xf32> to vector<2x1x32xf32>
    %471 = arith.mulf %466, %470 : vector<2x1x32xf32>
    %472 = vector.shape_cast %471 : vector<2x1x32xf32> to vector<2x32xf32>
    %c920 = arith.constant 920 : index
    %c0_146 = arith.constant 0 : index
    %473 = vector.load %arg2[%c920, %c0_146] : memref<1096x128xf32, #tpu.memory_space<vmem>>, vector<32x128xf32>
    %cst_147 = arith.constant dense<0.000000e+00> : vector<2x128xf32>
    %474 = tpu.matmul %472, %473, %cst_147 {dimension_numbers = #tpu.dot_dimension_numbers<[1], [0], [0], [1], [0, 0, 1, 1], [], []>} : vector<2x32xf32>, vector<32x128xf32>, vector<2x128xf32> -> vector<2x128xf32>
    %c952 = arith.constant 952 : index
    %c0_148 = arith.constant 0 : index
    %475 = vector.load %arg2[%c952, %c0_148] : memref<1096x128xf32, #tpu.memory_space<vmem>>, vector<1x128xf32>
    %476 = vector.broadcast %475 : vector<1x128xf32> to vector<2x128xf32>
    %477 = arith.addf %474, %476 : vector<2x128xf32>
    %478 = arith.mulf %477, %477 : vector<2x128xf32>
    %479 = arith.mulf %477, %478 : vector<2x128xf32>
    %cst_149 = arith.constant 4.471500e-02 : f32
    %480 = vector.broadcast %cst_149 : f32 to vector<2x128xf32>
    %481 = arith.mulf %480, %479 : vector<2x128xf32>
    %482 = arith.addf %477, %481 : vector<2x128xf32>
    %cst_150 = arith.constant 0.797884583 : f32
    %483 = vector.broadcast %cst_150 : f32 to vector<2x128xf32>
    %484 = arith.mulf %483, %482 : vector<2x128xf32>
    %485 = math.tanh %484 : vector<2x128xf32>
    %cst_151 = arith.constant 1.000000e+00 : f32
    %486 = vector.broadcast %cst_151 : f32 to vector<2x128xf32>
    %487 = arith.addf %486, %485 : vector<2x128xf32>
    %cst_152 = arith.constant 5.000000e-01 : f32
    %488 = vector.broadcast %cst_152 : f32 to vector<2x128xf32>
    %489 = arith.mulf %488, %487 : vector<2x128xf32>
    %490 = arith.mulf %477, %489 : vector<2x128xf32>
    %c960 = arith.constant 960 : index
    %c0_153 = arith.constant 0 : index
    %491 = vector.load %arg2[%c960, %c0_153] : memref<1096x128xf32, #tpu.memory_space<vmem>>, vector<128x32xf32>
    %cst_154 = arith.constant dense<0.000000e+00> : vector<2x32xf32>
    %492 = tpu.matmul %490, %491, %cst_154 {dimension_numbers = #tpu.dot_dimension_numbers<[1], [0], [0], [1], [0, 0, 1, 1], [], []>} : vector<2x128xf32>, vector<128x32xf32>, vector<2x32xf32> -> vector<2x32xf32>
    %c1088 = arith.constant 1088 : index
    %c0_155 = arith.constant 0 : index
    %493 = vector.load %arg2[%c1088, %c0_155] : memref<1096x128xf32, #tpu.memory_space<vmem>>, vector<1x32xf32>
    %494 = vector.broadcast %493 : vector<1x32xf32> to vector<2x32xf32>
    %495 = arith.addf %492, %494 : vector<2x32xf32>
    %496 = vector.shape_cast %495 : vector<2x32xf32> to vector<2x1x32xf32>
    %497 = arith.addf %453, %496 : vector<2x1x32xf32>
    %498 = vector.shape_cast %497 : vector<2x1x32xf32> to vector<2x32xf32>
    %c0_156 = arith.constant 0 : index
    %c0_157 = arith.constant 0 : index
    %499 = vector.load %arg3[%c0_156, %c0_157] : memref<2x32xf32, #tpu.memory_space<vmem>>, vector<2x32xf32>
    tpu.vector_store %arg3[%c0_156, %c0_157], %498 {strides = array<i32>} : memref<2x32xf32, #tpu.memory_space<vmem>>, vector<2x32xf32>,
    return
  }
}

</mosaic_0001>

<bundles_post_ra>
// kernel: tpu_custom_call.1
= control target key start
LH: loop header
LB: loop body
LE: loop exit
PB: predicated region body
PF: predicated region fallthrough
CT: control target
= control target key end

     0   :  { %8 = vsyncpa [#allocation3], 0  ;;  %s3329_s0 = inlined_call_operand.vmem [shape: f32[32,16], index: 0, kind: input, shape index: {}]   ;;  %s3330_s1 = inlined_call_operand.vmem [shape: f32[2,32], index: 1, kind: input, shape index: {}]   ;;  %s3331_s2 = inlined_call_operand.hbm [shape: f32[1096,128], index: 2, kind: input, shape index: {}]   ;;  %s3332_s3 = inlined_call_operand.hbm [shape: f32[2,32], index: 3, kind: output, shape index: {}]  }
   0x1   :  { %9 = vsyncpa [#allocation4], 0  ;;  %s18_s14 = sshll.u32 %s3331_s2, 4  ;;  %s2759_s15 = smov [#allocation2]   ;;  %s19_s14 = int_to_ptr.hbm [resolvable:$true] %s18_s14 }
   0x2   :  { %s20_s16 = sshll.u32 %s2759_s15, 4  ;;  %s2760_s17 = smov 128   ;;  %s21_s16 = int_to_ptr.vmem [resolvable:$true] %s20_s16 }
   0x3   :  { %s2761_s18 = smov 8  }
   0x4   :  { %26 = dma.hbm_to_vmem [thread:$0]  %s19_s14, 17536, %s21_s16, [#allocation3], %s2760_s17, %s2760_s17, %s2761_s18  }
   0x5   :  { %2755 = dma.done.wait [#allocation3], 17536  }
   0x6   :  { %2756 = vsyncadd [#allocation3], 4294949760  ;;  %v37_v0 = vld [vmem:[#allocation2 + $0x8] sm:$0xff]  ;;  %v36_v1 = vld [vmem:[#allocation2] sm:$0xff]  ;;  %vm40_vm0 = vcmask 130048   ;;  %vm121_vm1 = vcmask 261120  }
   0x7   :  { %67 = vmatpush.msra.mxu0 %v37_v0  ;;  %v31_v2 = vld [vmem:[%s3329_s0] sm:$0xff]  ;;  %v32_v3 = vld [vmem:[%s3329_s0 + $0x8] sm:$0xff]  ;;  %v33_v4 = vld [vmem:[%s3329_s0 + $0x10] sm:$0xff]  ;;  %vm176_vm2 = vcmask 254976   ;;  %v2762_v35 = vmov 32.0   ;;  %s2768_s26 = smov 96  }
   0x8   :  { %v34_v5 = vld [vmem:[%s3329_s0 + $0x18] sm:$0xff]  ;;  %v2846_v31 = vld [vmem:[#allocation2 + $0x18] sm:$0xff]  ;;  %2611 = vrcp.f32 %v2762_v35  ;;  %v2763_v41 = vmov 269488144   ;;  %v2764_v43 = vmov 842150450  }
   0x9   :  { %68 = vmatpush.msra.mxu0 %v36_v1  ;;  %v2590_v8 = vld [vmem:[#allocation2 + $0x10] ss:$0 sm:$0xff]  ;;  %v122_v32 = vsel %vm121_vm1, %v2846_v31, 0.0  ;;  %v195_v42 = vunpack.c.l.s4 %v2763_v41  ;;  %v199_v44 = vunpack.c.l.s4 %v2764_v43  ;;  %v2765_v45 = vmov 1414812756   ;;  %s2767_s0 = smov 32  }
   0xa   :  { %2511 = vmatmul.msk.f32.vlgmr.msra.gmra.mxu0 %vm40_vm0, %v31_v2  ;;  %v203_v46 = vunpack.c.l.s4 %v2765_v45  ;;  %v2766_v47 = vmov 1987475062   ;;  %s2769_s27 = smov 64   ;;  %s2501_s6 = sshll.u32 %s3332_s3, 4  ;;  %s2502_s6 = int_to_ptr.hbm [resolvable:$true] %s2501_s6 }
   0xb   :  { %v207_v48 = vunpack.c.l.s4 %v2766_v47  ;;  %v2853_v50 = vunpack.c.0.s8 %v195_v42  ;;  %v2855_v51 = vunpack.c.0.s8 %v199_v44  ;;  %v452_v47 = vld [vmem:[#allocation2 + $0x38] sm:$0xff] }
   0xc   :  { %v2857_v52 = vunpack.c.0.s8 %v203_v46 }
   0xd   :  { %v2859_v53 = vunpack.c.0.s8 %v207_v48 }
   0xe   :  { %v2612_v36 = vpop.eup %2611 }
   0xf   :  { %v126_v37 = vmul.f32 32.0, %v2612_v36  ;;  %vm130_vm3 = vweird.f32 %v2612_v36 }
  0x11   :  { %v127_v38 = vsub.f32 1.0, %v126_v37 }
  0x12   :  { %2512 = vmatmul.msk.f32.gmra.mxu0 %vm40_vm0, %v32_v3 }
  0x13   :  { %v128_v39 = vmul.f32 %v2612_v36, %v127_v38 }
  0x15   :  { %v129_v40 = vadd.f32 %v2612_v36, %v128_v39 }
  0x17   :  { %v2851_v49 = vsel %vm130_vm3, %v2612_v36, %v129_v40 }
  0x1a   :  { %2513 = vmatmul.msk.f32.gmra.mxu0 %vm40_vm0, %v33_v4 }
  0x22   :  { %2514 = vmatmul.msk.f32.gmra.mxu0 %vm40_vm0, %v34_v5 }
  0x87   :  { %v70_v6 = vpop.f32.mrf.mxu0 }
  0x88   :  { %v2806_v9 = vadd.f32 %v2590_v8, %v70_v6 }
  0x8a   :  { %v85_v12 = vrot.slane %v2806_v9, 2  ;;  %v86_v14 = vrot.slane %v2806_v9, 4  ;;  %v87_v16 = vrot.slane %v2806_v9, 6 }
  0x8f   :  { %v73_v7 = vpop.f32.mrf.mxu0 }
  0x90   :  { %v2825_v19 = vadd.f32 %v2590_v8, %v73_v7 }
  0x92   :  { %v88_v20 = vrot.slane %v2825_v19, 2  ;;  %v89_v21 = vrot.slane %v2825_v19, 4  ;;  %v90_v23 = vrot.slane %v2825_v19, 6 }
  0x97   :  { %v76_v10 = vpop.f32.mrf.mxu0 }
  0x98   :  { %v2808_v11 = vadd.f32 %v2590_v8, %v76_v10 }
  0x9a   :  { %100 = vst.sshfl [vmem:[#allocation1] sm:$0xff pattern:$0x73625140] %v2808_v11  ;;  %v91_v26 = vrot.slane %v2808_v11, 2 }
  0x9b   :  { %151 = vst [vmem:[#allocation1] ss:$4 sm:$0xff] %v2806_v9 }
  0x9c   :  { %153 = vst [vmem:[#allocation1 + $0x1] ss:$4 sm:$0xff] %v85_v12 }
  0x9f   :  { %v79_v13 = vpop.f32.mrf.mxu0 }
  0xa0   :  { %v80_v15 = vadd.f32 %v2590_v8, %v79_v13 }
  0xa1   :  { %v2817_v17 = vld [vmem:[#allocation1 + $0x2] ss:$4 sm:$0xff]  ;;  %v2819_v18 = vld [vmem:[#allocation1 + $0x3] ss:$4 sm:$0xff] }
  0xa2   :  { %155 = vst [vmem:[#allocation1 + $0x2] ss:$4 sm:$0xff] %v86_v14 }
  0xa3   :  { %157 = vst [vmem:[#allocation1 + $0x3] ss:$4 sm:$0xff] %v87_v16 }
  0xa4   :  { %101 = vst.sshfl [vmem:[#allocation1 + $0x20] sm:$0xff pattern:$0x73625140] %v80_v15 }
  0xaa   :  { %v160_v22 = vld.sshfl [vmem:[#allocation1] sm:$0xff pattern:$0x73625140] }
  0xab   :  { %162 = vst [vmem:[#allocation1] ss:$4 sm:$0xff] %v88_v20  ;;  %v2834_v24 = vld [vmem:[#allocation1 + $0x20] ss:$4 sm:$0xff]  ;;  %v173_v25 = vsel %vm121_vm1, %v160_v22, 0.0 }
  0xac   :  { %163 = vst [vmem:[#allocation1 + $0x1] ss:$4 sm:$0xff] %v89_v21  ;;  %174 = vadd.xlane.f32.xlu0 %v173_v25 }
  0xad   :  { %164 = vst [vmem:[#allocation1 + $0x2] ss:$4 sm:$0xff] %v90_v23 }
  0xae   :  { %165 = vst [vmem:[#allocation1 + $0x3] ss:$4 sm:$0xff] %v2808_v11 }
  0xaf   :  { %159 = vst [vmem:[#allocation1 + $0x20] ss:$4 sm:$0xff] %v2825_v19 }
  0xb5   :  { %v167_v27 = vld.sshfl [vmem:[#allocation1] sm:$0xff pattern:$0x73625140] }
  0xb6   :  { %v161_v28 = vld.sshfl [vmem:[#allocation1 + $0x20] sm:$0xff pattern:$0x73625140]  ;;  %v180_v29 = vsel %vm121_vm1, %v167_v27, 0.0 }
  0xb7   :  { %166 = vst [vmem:[#allocation1 + $0x20] ss:$4 sm:$0xff] %v91_v26  ;;  %v177_v30 = vsel %vm176_vm2, %v161_v28, 0.0  ;;  %181 = vadd.xlane.f32.xlu1 %v180_v29 }
  0xb8   :  { %178 = vadd.xlane.f32.xlu0 %v177_v30 }
  0xbe   :  { %v168_v33 = vld.sshfl [vmem:[#allocation1 + $0x20] sm:$0xff pattern:$0x73625140] }
  0xbf   :  { %v183_v34 = vsel %vm176_vm2, %v168_v33, 0.0  ;;  %123 = vadd.xlane.f32.xlu1 %v122_v32 }
  0xc0   :  { %184 = vadd.xlane.f32.xlu2 %v183_v34 }
 0x11f   :  { %v175_v54 = vpop.xlane.xlu0 %174 }
 0x120   :  { %v186_v55 = vmul.f32 %v175_v54, %v2851_v49  ;;  %v451_v54 = vld [vmem:[#allocation2 + $0x30] sm:$0xff] }
 0x122   :  { %v197_v56 = vperm.slane %v186_v55, %v2853_v50  ;;  %v201_v57 = vperm.slane %v186_v55, %v2855_v51  ;;  %v205_v58 = vperm.slane %v186_v55, %v2857_v52  ;;  %v209_v59 = vperm.slane %v186_v55, %v2859_v53 }
 0x124   :  { %v2867_v60 = vsub.f32 %v2806_v9, %v197_v56  ;;  %v2871_v61 = vsub.f32 %v85_v12, %v201_v57  ;;  %v2875_v62 = vsub.f32 %v86_v14, %v205_v58  ;;  %v2879_v63 = vsub.f32 %v87_v16, %v209_v59  ;;  %v450_v57 = vld [vmem:[#allocation2 + $0x28] sm:$0xff] }
 0x126   :  { %v254_v0 = vmul.f32 %v2867_v60, %v2867_v60  ;;  %v255_v1 = vmul.f32 %v2871_v61, %v2871_v61  ;;  %v256_v2 = vmul.f32 %v2875_v62, %v2875_v62  ;;  %v257_v3 = vmul.f32 %v2879_v63, %v2879_v63 }
 0x128   :  { %274 = vst [vmem:[#allocation1] ss:$4 sm:$0xff] %v254_v0 }
 0x129   :  { %276 = vst [vmem:[#allocation1 + $0x1] ss:$4 sm:$0xff] %v255_v1 }
 0x12a   :  { %v182_v4 = vpop.xlane.xlu1 %181  ;;  %278 = vst [vmem:[#allocation1 + $0x2] ss:$4 sm:$0xff] %v256_v2 }
 0x12b   :  { %v179_v5 = vpop.xlane.xlu0 %178  ;;  %v188_v6 = vmul.f32 %v182_v4, %v2851_v49  ;;  %280 = vst [vmem:[#allocation1 + $0x3] ss:$4 sm:$0xff] %v257_v3 }
 0x12c   :  { %v187_v7 = vmul.f32 %v179_v5, %v2851_v49 }
 0x12d   :  { %v217_v8 = vperm.slane %v188_v6, %v2853_v50  ;;  %v221_v9 = vperm.slane %v188_v6, %v2855_v51  ;;  %v225_v10 = vperm.slane %v188_v6, %v2857_v52  ;;  %v229_v12 = vperm.slane %v188_v6, %v2859_v53 }
 0x12e   :  { %v213_v13 = vperm.slane %v187_v7, %v2853_v50 }
 0x12f   :  { %v2898_v14 = vsub.f32 %v88_v20, %v217_v8  ;;  %v2902_v15 = vsub.f32 %v89_v21, %v221_v9  ;;  %v2906_v16 = vsub.f32 %v90_v23, %v225_v10  ;;  %v2912_v25 = vsub.f32 %v2808_v11, %v229_v12 }
 0x130   :  { %v2909_v22 = vsub.f32 %v2825_v19, %v213_v13 }
 0x131   :  { %v259_v27 = vmul.f32 %v2898_v14, %v2898_v14  ;;  %v260_v21 = vmul.f32 %v2902_v15, %v2902_v15  ;;  %v261_v23 = vmul.f32 %v2906_v16, %v2906_v16  ;;  %v262_v32 = vmul.f32 %v2912_v25, %v2912_v25 }
 0x132   :  { %v258_v20 = vmul.f32 %v2909_v22, %v2909_v22  ;;  %v124_v28 = vpop.xlane.xlu1 %123  ;;  %v283_v30 = vld.sshfl [vmem:[#allocation1] sm:$0xff pattern:$0x73625140] }
 0x133   :  { %v185_v29 = vpop.xlane.xlu2 %184  ;;  %v132_v19 = vmul.f32 %v2851_v49, %v124_v28  ;;  %285 = vst [vmem:[#allocation1] ss:$4 sm:$0xff] %v259_v27  ;;  %v296_v35 = vsel %vm121_vm1, %v283_v30, 0.0 }
 0x134   :  { %282 = vst [vmem:[#allocation1 + $0x20] ss:$4 sm:$0xff] %v258_v20  ;;  %v189_v33 = vmul.f32 %v185_v29, %v2851_v49  ;;  %297 = vadd.xlane.f32.xlu2 %v296_v35 }
 0x135   :  { %v2927_v34 = vsub.f32 %v2846_v31, %v132_v19  ;;  %286 = vst [vmem:[#allocation1 + $0x1] ss:$4 sm:$0xff] %v260_v21 }
 0x136   :  { %v233_v36 = vperm.slane %v189_v33, %v2853_v50  ;;  %287 = vst [vmem:[#allocation1 + $0x2] ss:$4 sm:$0xff] %v261_v23  ;;  %v2591_v23 = vld [vmem:[#allocation2 + $0x50] ss:$0 sm:$0xff] }
 0x137   :  { %v134_v37 = vmul.f32 %v2927_v34, %v2927_v34  ;;  %288 = vst [vmem:[#allocation1 + $0x3] ss:$4 sm:$0xff] %v262_v32 }
 0x138   :  { %v2935_v38 = vsub.f32 %v91_v26, %v233_v36  ;;  %v453_v26 = vld [vmem:[#allocation2 + $0x40] sm:$0xff] }
 0x139   :  { %v135_v39 = vsel %vm121_vm1, %v134_v37, 0.0  ;;  %475 = vmatpush.msra.mxu1 %v453_v26 }
 0x13a   :  { %v263_v40 = vmul.f32 %v2935_v38, %v2935_v38  ;;  %136 = vadd.xlane.f32.xlu0 %v135_v39 }
 0x13b   :  { %v284_v41 = vld.sshfl [vmem:[#allocation1 + $0x20] sm:$0xff pattern:$0x73625140]  ;;  %476 = vmatpush.msra.mxu1 %v452_v47 }
 0x13c   :  { %289 = vst [vmem:[#allocation1 + $0x20] ss:$4 sm:$0xff] %v263_v40  ;;  %v299_v42 = vsel %vm176_vm2, %v284_v41, 0.0 }
 0x13d   :  { %300 = vadd.xlane.f32.xlu1 %v299_v42  ;;  %477 = vmatpush.msra.mxu1 %v451_v54 }
 0x13e   :  { %v290_v43 = vld.sshfl [vmem:[#allocation1] sm:$0xff pattern:$0x73625140] }
 0x13f   :  { %v302_v44 = vsel %vm121_vm1, %v290_v43, 0.0  ;;  %478 = vmatpush.msra.mxu1 %v450_v57 }
 0x140   :  { %303 = vadd.xlane.f32.xlu2 %v302_v44 }
 0x143   :  { %v291_v45 = vld.sshfl [vmem:[#allocation1 + $0x20] sm:$0xff pattern:$0x73625140] }
 0x144   :  { %v305_v11 = vsel %vm176_vm2, %v291_v45, 0.0 }
 0x145   :  { %306 = vadd.xlane.f32.xlu0 %v305_v11 }
 0x156   :  { %498 = vrot.lane.b32.xlu1 %v2591_v23, %s2767_s0  ;;  %v2985_v23 = vld [vmem:[#allocation1 + $0x23] ss:$4 sm:$0xff] }
 0x1a7   :  { %v298_v46 = vpop.xlane.xlu2 %297 }
 0x1a8   :  { %v308_v48 = vmul.f32 %v298_v46, %v2851_v49 }
 0x1aa   :  { %v312_v55 = vadd.f32 1e-05, %v308_v48 }
 0x1ac   :  { %2613 = vrsqrt.f32 %v312_v55  ;;  %vm322_vm5 = vweird.f32 %v312_v55 }
 0x1ad   :  { %v137_v56 = vpop.xlane.xlu0 %136 }
 0x1ae   :  { %v138_v58 = vmul.f32 %v137_v56, %v2851_v49 }
 0x1b0   :  { %v139_v59 = vadd.f32 1e-05, %v138_v58  ;;  %v301_v0 = vpop.xlane.xlu1 %300 }
 0x1b1   :  { %v309_v1 = vmul.f32 %v301_v0, %v2851_v49 }
 0x1b2   :  { %2615 = vrsqrt.f32 %v139_v59  ;;  %v2614_v3 = vpop.eup %2613  ;;  %vm146_vm8 = vweird.f32 %v139_v59 }
 0x1b3   :  { %v313_v2 = vadd.f32 1e-05, %v309_v1  ;;  %v304_v4 = vpop.xlane.xlu2 %303  ;;  %v317_v5 = vmul.f32 %v2614_v3, %v312_v55  ;;  %vm323_vm4 = vweird.f32 %v2614_v3 }
 0x1b4   :  { %v310_v6 = vmul.f32 %v304_v4, %v2851_v49  ;;  %vm324_vm6 = vmor %vm322_vm5, %vm323_vm4  ;;  %vm597_vm5 = vcmask 80896  }
 0x1b5   :  { %2617 = vrsqrt.f32 %v313_v2  ;;  %v318_v7 = vmul.f32 %v2614_v3, %v317_v5  ;;  %vm332_vm11 = vweird.f32 %v313_v2 }
 0x1b6   :  { %v2947_v8 = vadd.f32 1e-05, %v310_v6 }
 0x1b7   :  { %v319_v12 = vmul.f32 0.5, %v318_v7 }
 0x1b8   :  { %v2616_v9 = vpop.eup %2615  ;;  %v307_v10 = vpop.xlane.xlu0 %306  ;;  %2619 = vrsqrt.f32 %v2947_v8  ;;  %vm342_vm14 = vweird.f32 %v2947_v8 }
 0x1b9   :  { %v141_v13 = vmul.f32 %v2616_v9, %v139_v59  ;;  %v311_v27 = vmul.f32 %v307_v10, %v2851_v49  ;;  %v320_v21 = vsub.f32 1.5, %v319_v12  ;;  %vm147_vm7 = vweird.f32 %v2616_v9 }
 0x1ba   :  { %vm148_vm9 = vmor %vm146_vm8, %vm147_vm7  ;;  %vm944_vm7 = vcmask 259072  }
 0x1bb   :  { %v2618_v20 = vpop.eup %2617  ;;  %v142_v28 = vmul.f32 %v2616_v9, %v141_v13  ;;  %v2951_v19 = vadd.f32 1e-05, %v311_v27  ;;  %v321_v30 = vmul.f32 %v2614_v3, %v320_v21  ;;  %v2978_v27 = vld [vmem:[#allocation1 + $0x21] ss:$4 sm:$0xff] }
 0x1bc   :  { %v327_v29 = vmul.f32 %v2618_v20, %v313_v2  ;;  %vm333_vm10 = vweird.f32 %v2618_v20 }
 0x1bd   :  { %v143_v32 = vmul.f32 0.5, %v142_v28  ;;  %2621 = vrsqrt.f32 %v2951_v19  ;;  %v325_v36 = vsel %vm324_vm6, %v2614_v3, %v321_v30  ;;  %vm334_vm12 = vmor %vm332_vm11, %vm333_vm10  ;;  %vm352_vm3 = vweird.f32 %v2951_v19 }
 0x1be   :  { %v328_v33 = vmul.f32 %v2618_v20, %v327_v29  ;;  %v2620_v35 = vpop.eup %2619  ;;  %v363_v39 = vperm.slane %v325_v36, %v2853_v50  ;;  %v367_v40 = vperm.slane %v325_v36, %v2855_v51  ;;  %v371_v41 = vperm.slane %v325_v36, %v2857_v52 }
 0x1bf   :  { %v144_v37 = vsub.f32 1.5, %v143_v32  ;;  %v375_v42 = vperm.slane %v325_v36, %v2859_v53  ;;  %v337_v43 = vmul.f32 %v2620_v35, %v2947_v8  ;;  %vm343_vm13 = vweird.f32 %v2620_v35 }
 0x1c0   :  { %v329_v44 = vmul.f32 0.5, %v328_v33  ;;  %v410_v11 = vmul.f32 %v363_v39, %v2867_v60  ;;  %v411_v26 = vmul.f32 %v367_v40, %v2871_v61  ;;  %v412_v46 = vmul.f32 %v371_v41, %v2875_v62  ;;  %vm344_vm15 = vmor %vm342_vm14, %vm343_vm13 }
 0x1c1   :  { %v145_v45 = vmul.f32 %v2616_v9, %v144_v37  ;;  %v413_v47 = vmul.f32 %v375_v42, %v2879_v63  ;;  %v338_v48 = vmul.f32 %v2620_v35, %v337_v43  ;;  %vm665_vm6 = vcmask 1041408  }
 0x1c2   :  { %v330_v54 = vsub.f32 1.5, %v329_v44  ;;  %430 = vst [vmem:[#allocation1] ss:$4 sm:$0xff] %v410_v11 }
 0x1c3   :  { %v149_v55 = vsel %vm148_vm9, %v2616_v9, %v145_v45  ;;  %v2622_v56 = vpop.eup %2621  ;;  %432 = vst [vmem:[#allocation1 + $0x1] ss:$4 sm:$0xff] %v411_v26  ;;  %v339_v58 = vmul.f32 0.5, %v338_v48 }
 0x1c4   :  { %v150_v57 = vmul.f32 %v149_v55, %v2927_v34  ;;  %v331_v59 = vmul.f32 %v2618_v20, %v330_v54  ;;  %v347_v60 = vmul.f32 %v2622_v56, %v2951_v19  ;;  %434 = vst [vmem:[#allocation1 + $0x2] ss:$4 sm:$0xff] %v412_v46  ;;  %vm353_vm0 = vweird.f32 %v2622_v56 }
 0x1c5   :  { %436 = vst [vmem:[#allocation1 + $0x3] ss:$4 sm:$0xff] %v413_v47  ;;  %v340_v61 = vsub.f32 1.5, %v339_v58  ;;  %vm354_vm4 = vmor %vm352_vm3, %vm353_vm0 }
 0x1c6   :  { %2515 = vmatmul.msk.f32.vlgmr.msra.gmra.mxu1 %vm121_vm1, %v150_v57  ;;  %v335_v62 = vsel %vm334_vm12, %v2618_v20, %v331_v59  ;;  %v348_v63 = vmul.f32 %v2622_v56, %v347_v60  ;;  %v2592_v57 = vld [vmem:[#allocation2 + $0x48] ss:$0 sm:$0xff] }
 0x1c7   :  { %v379_v0 = vperm.slane %v335_v62, %v2853_v50  ;;  %v341_v1 = vmul.f32 %v2620_v35, %v340_v61 }
 0x1c8   :  { %v349_v34 = vmul.f32 0.5, %v348_v63  ;;  %v499_v29 = vpop.permute.xlu1 %498 }
 0x1c9   :  { %v414_v2 = vmul.f32 %v379_v0, %v2909_v22  ;;  %v345_v3 = vsel %vm344_vm15, %v2620_v35, %v341_v1 }
 0x1ca   :  { %v350_v4 = vsub.f32 1.5, %v349_v34  ;;  %v383_v5 = vperm.slane %v345_v3, %v2853_v50  ;;  %v387_v6 = vperm.slane %v345_v3, %v2855_v51  ;;  %v391_v7 = vperm.slane %v345_v3, %v2857_v52 }
 0x1cb   :  { %v395_v9 = vperm.slane %v345_v3, %v2859_v53  ;;  %438 = vst [vmem:[#allocation1 + $0x20] ss:$4 sm:$0xff] %v414_v2  ;;  %v2982_v53 = vld [vmem:[#allocation1 + $0x22] ss:$4 sm:$0xff] }
 0x1cc   :  { %v351_v10 = vmul.f32 %v2622_v56, %v350_v4  ;;  %v445_v8 = vld.sshfl [vmem:[#allocation1] sm:$0xff pattern:$0x73625140]  ;;  %v415_v12 = vmul.f32 %v383_v5, %v2898_v14  ;;  %v416_v22 = vmul.f32 %v387_v6, %v2902_v15  ;;  %v417_v13 = vmul.f32 %v391_v7, %v2906_v16  ;;  %v3010_v2 = vld [vmem:[#allocation2 + $0x20] sm:$0xff] }
 0x1cd   :  { %v418_v20 = vmul.f32 %v395_v9, %v2912_v25  ;;  %v907_v3 = vsel %vm121_vm1, %v3010_v2, 0.0 }
 0x1ce   :  { %v355_v21 = vsel %vm354_vm4, %v2622_v56, %v351_v10  ;;  %2516 = vmatmul.msk.f32.gmra.mxu1 %vm121_vm1, %v445_v8  ;;  %440 = vst [vmem:[#allocation1 + $0x21] ss:$4 sm:$0xff] %v415_v12 }
 0x1cf   :  { %v399_v28 = vperm.slane %v355_v21, %v2853_v50  ;;  %442 = vst [vmem:[#allocation1 + $0x22] ss:$4 sm:$0xff] %v416_v22 }
 0x1d0   :  { %444 = vst [vmem:[#allocation1 + $0x23] ss:$4 sm:$0xff] %v417_v13 }
 0x1d1   :  { %v419_v14 = vmul.f32 %v399_v28, %v2935_v38  ;;  %447 = vst [vmem:[#allocation1] ss:$4 sm:$0xff] %v418_v20 }
 0x1d3   :  { %448 = vst [vmem:[#allocation1 + $0x1] ss:$4 sm:$0xff] %v419_v14 }
 0x1d7   :  { %v446_v15 = vld.sshfl [vmem:[#allocation1 + $0x20] sm:$0xff pattern:$0x73625140] }
 0x1d8   :  { %2517 = vmatmul.msk.f32.gmra.mxu1 %vm121_vm1, %v446_v15 }
 0x1da   :  { %v449_v16 = vld.sshfl [vmem:[#allocation1] sm:$0xff pattern:$0x73625140] }
 0x1e0   :  { %2518 = vmatmul.msk.f32.gmra.mxu1 %vm121_vm1, %v449_v16 }
 0x243   :  { %v480_v25 = vpop.f32.mrf.mxu1 }
 0x244   :  { %v494_v59 = vadd.f32 %v2592_v57, %v480_v25 }
 0x24b   :  { %v483_v19 = vpop.f32.mrf.mxu1 }
 0x24c   :  { %v501_v30 = vadd.f32 %v499_v29, %v483_v19 }
 0x24e   :  { %v507_v32 = vrot.slane %v501_v30, 2  ;;  %v508_v33 = vrot.slane %v501_v30, 4  ;;  %v509_v35 = vrot.slane %v501_v30, 6  ;;  %514 = vst [vmem:[#allocation1] ss:$4 sm:$0xff] %v501_v30 }
 0x250   :  { %516 = vst [vmem:[#allocation1 + $0x1] ss:$4 sm:$0xff] %v507_v32 }
 0x251   :  { %518 = vst [vmem:[#allocation1 + $0x2] ss:$4 sm:$0xff] %v508_v33 }
 0x252   :  { %520 = vst [vmem:[#allocation1 + $0x3] ss:$4 sm:$0xff] %v509_v35 }
 0x255   :  { %v486_v38 = vpop.f32.mrf.mxu1 }
 0x256   :  { %v502_v36 = vadd.f32 %v499_v29, %v486_v38 }
 0x258   :  { %v510_v39 = vrot.slane %v502_v36, 2  ;;  %v511_v40 = vrot.slane %v502_v36, 4  ;;  %v512_v41 = vrot.slane %v502_v36, 6  ;;  %522 = vst [vmem:[#allocation1 + $0x20] ss:$4 sm:$0xff] %v502_v36 }
 0x259   :  { %v523_v37 = vld.sshfl [vmem:[#allocation1] sm:$0xff pattern:$0x73625140] }
 0x25a   :  { %525 = vrot.lane.b32.xlu0 %v523_v37, %s2768_s26  ;;  %556 = vst [vmem:[#allocation1] ss:$4 sm:$0xff] %v510_v39 }
 0x25b   :  { %558 = vst [vmem:[#allocation1 + $0x1] ss:$4 sm:$0xff] %v511_v40 }
 0x25c   :  { %560 = vst [vmem:[#allocation1 + $0x2] ss:$4 sm:$0xff] %v512_v41 }
 0x25d   :  { %v489_v42 = vpop.f32.mrf.mxu1 }
 0x25e   :  { %v503_v43 = vadd.f32 %v499_v29, %v489_v42 }
 0x25f   :  { %v524_v44 = vld.sshfl [vmem:[#allocation1 + $0x20] sm:$0xff pattern:$0x73625140] }
 0x260   :  { %v513_v45 = vrot.slane %v503_v43, 2  ;;  %562 = vst [vmem:[#allocation1 + $0x3] ss:$4 sm:$0xff] %v503_v43  ;;  %527 = vrot.lane.b32.xlu2 %v524_v44, %s2768_s26 }
 0x262   :  { %564 = vst [vmem:[#allocation1 + $0x20] ss:$4 sm:$0xff] %v513_v45 }
 0x267   :  { %v565_v11 = vld.sshfl [vmem:[#allocation1] sm:$0xff pattern:$0x73625140] }
 0x268   :  { %646 = vst [vmem:[#allocation1] ss:$4 sm:$0xff] %v501_v30  ;;  %567 = vrot.lane.b32.xlu1 %v565_v11, %s2768_s26 }
 0x269   :  { %648 = vst [vmem:[#allocation1 + $0x1] ss:$4 sm:$0xff] %v507_v32  ;;  %v566_v26 = vld.sshfl [vmem:[#allocation1 + $0x20] sm:$0xff pattern:$0x73625140] }
 0x26a   :  { %650 = vst [vmem:[#allocation1 + $0x2] ss:$4 sm:$0xff] %v508_v33  ;;  %569 = vrot.lane.b32.xlu2 %v566_v26, %s2768_s26 }
 0x26b   :  { %652 = vst [vmem:[#allocation1 + $0x3] ss:$4 sm:$0xff] %v509_v35 }
 0x26c   :  { %654 = vst [vmem:[#allocation1 + $0x20] ss:$4 sm:$0xff] %v502_v36 }
 0x272   :  { %v655_v46 = vld.sshfl [vmem:[#allocation1] sm:$0xff pattern:$0x73625140] }
 0x273   :  { %688 = vst [vmem:[#allocation1] ss:$4 sm:$0xff] %v510_v39  ;;  %v656_v47 = vld.sshfl [vmem:[#allocation1 + $0x20] sm:$0xff pattern:$0x73625140] }
 0x274   :  { %690 = vst [vmem:[#allocation1 + $0x1] ss:$4 sm:$0xff] %v511_v40 }
 0x275   :  { %692 = vst [vmem:[#allocation1 + $0x2] ss:$4 sm:$0xff] %v512_v41 }
 0x276   :  { %694 = vst [vmem:[#allocation1 + $0x3] ss:$4 sm:$0xff] %v503_v43 }
 0x277   :  { %696 = vst [vmem:[#allocation1 + $0x20] ss:$4 sm:$0xff] %v513_v45 }
 0x27d   :  { %v697_v48 = vld.sshfl [vmem:[#allocation1] sm:$0xff pattern:$0x73625140] }
 0x27e   :  { %929 = vst [vmem:[#allocation1] ss:$4 sm:$0xff] %v2817_v17  ;;  %v698_v54 = vld.sshfl [vmem:[#allocation1 + $0x20] sm:$0xff pattern:$0x73625140] }
 0x27f   :  { %931 = vst [vmem:[#allocation1 + $0x1] ss:$4 sm:$0xff] %v2819_v18 }
 0x280   :  { %933 = vst [vmem:[#allocation1 + $0x2] ss:$4 sm:$0xff] %v2834_v24 }
 0x281   :  { %936 = vst [vmem:[#allocation1 + $0x20] ss:$4 sm:$0xff] %v2978_v27 }
 0x282   :  { %938 = vst [vmem:[#allocation1 + $0x21] ss:$4 sm:$0xff] %v2982_v53 }
 0x283   :  { %940 = vst [vmem:[#allocation1 + $0x22] ss:$4 sm:$0xff] %v2985_v23 }
 0x287   :  { %v934_v14 = vld.sshfl [vmem:[#allocation1] sm:$0xff pattern:$0x73625140] }
 0x288   :  { %v945_v15 = vsel %vm944_vm7, %v934_v14, 0.0 }
 0x28a   :  { %v941_v21 = vld.sshfl [vmem:[#allocation1 + $0x20] sm:$0xff pattern:$0x73625140] }
 0x28b   :  { %v948_v28 = vsel %vm944_vm7, %v941_v21, 0.0 }
 0x2ba   :  { %v528_v55 = vpop.permute.xlu2 %527 }
 0x2bb   :  { %2519 = vmatpush.xpose.msk.msra.mxu2 %vm121_vm1, %v528_v55 }
 0x2c4   :  { %v570_v56 = vpop.permute.xlu2 %569 }
 0x2c5   :  { %2522 = vmatpush.xpose.msk.msra.mxu3 %vm121_vm1, %v570_v56 }
 0x2cc   :  { %v526_v58 = vpop.permute.xlu0 %525 }
 0x2cd   :  { %2520 = vmatpush.xpose.msk.msra.mxu2 %vm121_vm1, %v526_v58 }
 0x2d0   :  { %2521 = vmatmul.msk.f32.vlgmr.msra.gmra.mxu2 %vm121_vm1, %v494_v59 }
 0x2da   :  { %v568_v60 = vpop.permute.xlu1 %567 }
 0x2db   :  { %2523 = vmatpush.xpose.msk.msra.mxu3 %vm121_vm1, %v568_v60 }
 0x2de   :  { %2524 = vmatmul.msk.f32.vlgmr.msra.gmra.mxu3 %vm121_vm1, %v494_v59 }
 0x353   :  { %v553_v61 = vpop.f32.mrf.mxu2 }
 0x354   :  { %v595_v62 = vmul.f32 0.17677669, %v553_v61 }
 0x356   :  { %v598_v63 = vsel %vm597_vm5, %v595_v62, -inf }
 0x357   :  { %599 = vmax.xlane.f32.xlu0 %v598_v63 }
 0x361   :  { %v592_v0 = vpop.f32.mrf.mxu3 }
 0x362   :  { %v596_v1 = vmul.f32 0.17677669, %v592_v0 }
 0x364   :  { %v601_v34 = vsel %vm597_vm5, %v596_v1, -inf }
 0x365   :  { %602 = vmax.xlane.f32.xlu2 %v601_v34 }
 0x37d   :  { %659 = vrot.lane.b32.xlu2 %v656_v47, %s2769_s27 }
 0x385   :  { %699 = vrot.lane.b32.xlu2 %v697_v48, %s2769_s27 }
 0x3ae   :  { %908 = vadd.xlane.f32.xlu2 %v907_v3 }
 0x3ca   :  { %v600_v4 = vpop.xlane.xlu0 %599 }
 0x3cb   :  { %v604_v5 = vsub.f32 %v595_v62, %v600_v4 }
 0x3cd   :  { %v606_v6 = vmul.f32 1.442695, %v604_v5 }
 0x3cf   :  { %2623 = vpow2.f32 %v606_v6 }
 0x3d5   :  { %v2624_v7 = vpop.eup %2623 }
 0x3d6   :  { %v610_v9 = vsel %vm597_vm5, %v2624_v7, 0.0 }
 0x3d7   :  { %611 = vadd.xlane.f32.xlu1 %v610_v9 }
 0x3d8   :  { %v603_v10 = vpop.xlane.xlu2 %602 }
 0x3d9   :  { %v605_v8 = vsub.f32 %v596_v1, %v603_v10 }
 0x3db   :  { %v608_v12 = vmul.f32 1.442695, %v605_v8 }
 0x3dd   :  { %2625 = vpow2.f32 %v608_v12 }
 0x3e0   :  { %v660_v22 = vpop.permute.xlu2 %659 }
 0x3e1   :  { %2525 = vmatpush.msk.msrb.mxu2 %vm665_vm6, %v660_v22 }
 0x3e3   :  { %v2626_v13 = vpop.eup %2625 }
 0x3e4   :  { %v613_v20 = vsel %vm597_vm5, %v2626_v13, 0.0 }
 0x3e5   :  { %614 = vadd.xlane.f32.xlu0 %v613_v20 }
 0x3e8   :  { %v700_v16 = vpop.permute.xlu2 %699 }
 0x3f0   :  { %657 = vrot.lane.b32.xlu1 %v655_v46, %s2769_s27 }
 0x3f9   :  { %701 = vrot.lane.b32.xlu0 %v698_v54, %s2769_s27 }
 0x41a   :  { %949 = vadd.xlane.f32.xlu1 %v948_v28 }
 0x421   :  { %v909_v25 = vpop.xlane.xlu2 %908 }
 0x422   :  { %v910_v29 = vmul.f32 %v909_v25, %v2851_v49  ;;  %v731_v25 = vld [vmem:[#allocation2 + $0x68] sm:$0xff] }
 0x423   :  { %946 = vadd.xlane.f32.xlu0 %v945_v15 }
 0x424   :  { %v3023_v19 = vsub.f32 %v3010_v2, %v910_v29  ;;  %v730_v29 = vld [vmem:[#allocation2 + $0x60] sm:$0xff] }
 0x426   :  { %v912_v30 = vmul.f32 %v3023_v19, %v3023_v19 }
 0x428   :  { %v913_v33 = vsel %vm121_vm1, %v912_v30, 0.0 }
 0x429   :  { %914 = vadd.xlane.f32.xlu2 %v913_v33 }
 0x44a   :  { %v612_v32 = vpop.xlane.xlu1 %611 }
 0x44b   :  { %2627 = vrcp.f32 %v612_v32  ;;  %v627_v40 = vand.u32 2147483648, %v612_v32  ;;  %vm621_vm9 = vweird.f32 %v612_v32  ;;  %v625_v42 = vand.u32 2147483647, %v612_v32 }
 0x44d   :  { %v628_v44 = vor.u32 1.1754944e-38, %v627_v40  ;;  %vm626_vm11 = vcmp.eq.f32.partialorder %v625_v42, 8.507059e+37  ;;  %v1105_v40 = vld [vmem:[#allocation2 + $0x130] sm:$0xff] }
 0x451   :  { %v2628_v35 = vpop.eup %2627 }
 0x452   :  { %v617_v38 = vmul.f32 %v2628_v35, %v612_v32  ;;  %vm622_vm8 = vweird.f32 %v2628_v35 }
 0x453   :  { %vm623_vm10 = vmor %vm621_vm9, %vm622_vm8 }
 0x454   :  { %v618_v36 = vsub.f32 1.0, %v617_v38  ;;  %v1108_v38 = vld [vmem:[#allocation2 + $0x148] sm:$0xff] }
 0x455   :  { %1128 = vmatpush.msrb.mxu1 %v1108_v38 }
 0x456   :  { %v619_v37 = vmul.f32 %v2628_v35, %v618_v36  ;;  %v1107_v36 = vld [vmem:[#allocation2 + $0x140] sm:$0xff] }
 0x457   :  { %1129 = vmatpush.msrb.mxu1 %v1107_v36 }
 0x458   :  { %v620_v39 = vadd.f32 %v2628_v35, %v619_v37  ;;  %v615_v41 = vpop.xlane.xlu0 %614  ;;  %v1106_v37 = vld [vmem:[#allocation2 + $0x138] sm:$0xff] }
 0x459   :  { %2629 = vrcp.f32 %v615_v41  ;;  %v642_v55 = vand.u32 2147483648, %v615_v41  ;;  %v640_v56 = vand.u32 2147483647, %v615_v41  ;;  %vm636_vm13 = vweird.f32 %v615_v41  ;;  %1130 = vmatpush.msrb.mxu1 %v1106_v37 }
 0x45a   :  { %v624_v43 = vsel %vm623_vm10, %v2628_v35, %v620_v39  ;;  %v729_v35 = vld [vmem:[#allocation2 + $0x58] sm:$0xff] }
 0x45b   :  { %v629_v45 = vsel %vm626_vm11, %v628_v44, %v624_v43  ;;  %v643_v58 = vor.u32 1.1754944e-38, %v642_v55  ;;  %vm641_vm15 = vcmp.eq.f32.partialorder %v640_v56, 8.507059e+37  ;;  %1131 = vmatpush.msrb.mxu1 %v1105_v40 }
 0x45c   :  { %v630_v47 = vmul.f32 %v2624_v7, %v629_v45 }
 0x45f   :  { %v2630_v11 = vpop.eup %2629 }
 0x460   :  { %v632_v26 = vmul.f32 %v2630_v11, %v615_v41  ;;  %vm637_vm12 = vweird.f32 %v2630_v11 }
 0x461   :  { %vm638_vm14 = vmor %vm636_vm13, %vm637_vm12 }
 0x462   :  { %v658_v46 = vpop.permute.xlu1 %657  ;;  %v633_v48 = vsub.f32 1.0, %v632_v26 }
 0x463   :  { %683 = vmatpush.msrb.mxu2 %v658_v46 }
 0x464   :  { %2526 = vmatmul.msk.f32.vlgmr.msrb.gmra.mxu2 %vm597_vm5, %v630_v47  ;;  %v634_v54 = vmul.f32 %v2630_v11, %v633_v48 }
 0x466   :  { %v635_v57 = vadd.f32 %v2630_v11, %v634_v54 }
 0x468   :  { %v639_v59 = vsel %vm638_vm14, %v2630_v11, %v635_v57 }
 0x469   :  { %v644_v60 = vsel %vm641_vm15, %v643_v58, %v639_v59 }
 0x46a   :  { %v645_v62 = vmul.f32 %v2626_v13, %v644_v60 }
 0x46b   :  { %v702_v61 = vpop.permute.xlu0 %701 }
 0x46c   :  { %2527 = vmatpush.msk.msrb.mxu3 %vm665_vm6, %v702_v61 }
 0x46e   :  { %724 = vmatpush.msrb.mxu3 %v700_v16  ;;  %v732_v16 = vld [vmem:[#allocation2 + $0x70] sm:$0xff] }
 0x46f   :  { %2528 = vmatmul.msk.f32.vlgmr.msrb.gmra.mxu3 %vm597_vm5, %v645_v62  ;;  %753 = vmatpush.msra.mxu2 %v732_v16 }
 0x471   :  { %754 = vmatpush.msra.mxu2 %v731_v25 }
 0x473   :  { %755 = vmatpush.msra.mxu2 %v730_v29 }
 0x475   :  { %756 = vmatpush.msra.mxu2 %v729_v35 }
 0x48d   :  { %v950_v63 = vpop.xlane.xlu1 %949 }
 0x48e   :  { %v952_v0 = vmul.f32 %v950_v63, %v2851_v49 }
 0x490   :  { %v970_v1 = vperm.slane %v952_v0, %v2853_v50  ;;  %v974_v34 = vperm.slane %v952_v0, %v2855_v51  ;;  %v978_v3 = vperm.slane %v952_v0, %v2857_v52 }
 0x492   :  { %v3036_v4 = vsub.f32 %v2978_v27, %v970_v1  ;;  %v3039_v5 = vsub.f32 %v2982_v53, %v974_v34  ;;  %v3042_v6 = vsub.f32 %v2985_v23, %v978_v3 }
 0x494   :  { %v994_v7 = vmul.f32 %v3036_v4, %v3036_v4  ;;  %v995_v9 = vmul.f32 %v3039_v5, %v3039_v5  ;;  %v996_v10 = vmul.f32 %v3042_v6, %v3042_v6 }
 0x496   :  { %1010 = vst [vmem:[#allocation1 + $0x20] ss:$4 sm:$0xff] %v994_v7  ;;  %v947_v8 = vpop.xlane.xlu0 %946 }
 0x497   :  { %1012 = vst [vmem:[#allocation1 + $0x21] ss:$4 sm:$0xff] %v995_v9  ;;  %v951_v27 = vmul.f32 %v947_v8, %v2851_v49 }
 0x498   :  { %1014 = vst [vmem:[#allocation1 + $0x22] ss:$4 sm:$0xff] %v996_v10  ;;  %v2593_v10 = vld [vmem:[#allocation2 + $0x158] ss:$0 sm:$0xff] }
 0x499   :  { %v958_v53 = vperm.slane %v951_v27, %v2853_v50  ;;  %v962_v23 = vperm.slane %v951_v27, %v2855_v51  ;;  %v966_v12 = vperm.slane %v951_v27, %v2857_v52  ;;  %1148 = vrot.lane.b32.xlu2 %v2593_v10, %s2767_s0 }
 0x49b   :  { %v3055_v22 = vsub.f32 %v2817_v17, %v958_v53  ;;  %v3058_v13 = vsub.f32 %v2819_v18, %v962_v23  ;;  %v3061_v20 = vsub.f32 %v2834_v24, %v966_v12 }
 0x49c   :  { %v915_v30 = vpop.xlane.xlu2 %914 }
 0x49d   :  { %v991_v21 = vmul.f32 %v3055_v22, %v3055_v22  ;;  %v992_v28 = vmul.f32 %v3058_v13, %v3058_v13  ;;  %v993_v14 = vmul.f32 %v3061_v20, %v3061_v20  ;;  %v916_v32 = vmul.f32 %v915_v30, %v2851_v49 }
 0x49f   :  { %v1015_v15 = vld.sshfl [vmem:[#allocation1 + $0x20] sm:$0xff pattern:$0x73625140]  ;;  %1003 = vst [vmem:[#allocation1] ss:$4 sm:$0xff] %v991_v21 }
 0x4a0   :  { %v1021_v17 = vsel %vm944_vm7, %v1015_v15, 0.0  ;;  %1005 = vst [vmem:[#allocation1 + $0x1] ss:$4 sm:$0xff] %v992_v28  ;;  %v917_v33 = vadd.f32 1e-05, %v916_v32 }
 0x4a1   :  { %1022 = vadd.xlane.f32.xlu1 %v1021_v17  ;;  %1007 = vst [vmem:[#allocation1 + $0x2] ss:$4 sm:$0xff] %v993_v14 }
 0x4a2   :  { %2631 = vrsqrt.f32 %v917_v33  ;;  %vm924_vm0 = vweird.f32 %v917_v33 }
 0x4a8   :  { %v1008_v18 = vld.sshfl [vmem:[#allocation1] sm:$0xff pattern:$0x73625140]  ;;  %v2632_v39 = vpop.eup %2631 }
 0x4a9   :  { %v1018_v24 = vsel %vm944_vm7, %v1008_v18, 0.0  ;;  %v919_v41 = vmul.f32 %v2632_v39, %v917_v33  ;;  %vm925_vm3 = vweird.f32 %v2632_v39 }
 0x4aa   :  { %1019 = vadd.xlane.f32.xlu0 %v1018_v24  ;;  %vm926_vm4 = vmor %vm924_vm0, %vm925_vm3 }
 0x4ab   :  { %v920_v42 = vmul.f32 %v2632_v39, %v919_v41 }
 0x4ad   :  { %v921_v43 = vmul.f32 0.5, %v920_v42 }
 0x4af   :  { %v922_v44 = vsub.f32 1.5, %v921_v43 }
 0x4b1   :  { %v923_v45 = vmul.f32 %v2632_v39, %v922_v44 }
 0x4b3   :  { %v927_v11 = vsel %vm926_vm4, %v2632_v39, %v923_v45  ;;  %vm1224_vm4 = vcmask 48128  }
 0x4b4   :  { %v928_v26 = vmul.f32 %v927_v11, %v3023_v19 }
 0x4b6   :  { %2533 = vmatmul.msk.f32.vlgmr.msrb.gmra.mxu1 %vm121_vm1, %v928_v26 }
 0x4e7   :  { %v685_v46 = vpop.f32.mrf.mxu2 }
 0x4e8   :  { %2529 = vmatmul.msk.f32.vlgmr.msra.gmra.mxu2 %vm121_vm1, %v685_v46 }
 0x4f2   :  { %v726_v47 = vpop.f32.mrf.mxu3 }
 0x4f3   :  { %2530 = vmatmul.msk.f32.gmra.mxu2 %vm121_vm1, %v726_v47  ;;  %v1149_v33 = vpop.permute.xlu2 %1148 }
 0x514   :  { %v1023_v48 = vpop.xlane.xlu1 %1022 }
 0x515   :  { %v1025_v54 = vmul.f32 %v1023_v48, %v2851_v49 }
 0x517   :  { %v1027_v55 = vadd.f32 1e-05, %v1025_v54 }
 0x519   :  { %2633 = vrsqrt.f32 %v1027_v55  ;;  %vm1044_vm7 = vweird.f32 %v1027_v55 }
 0x51d   :  { %v1020_v56 = vpop.xlane.xlu0 %1019 }
 0x51e   :  { %v1024_v58 = vmul.f32 %v1020_v56, %v2851_v49 }
 0x51f   :  { %v2634_v57 = vpop.eup %2633 }
 0x520   :  { %v1039_v59 = vmul.f32 %v2634_v57, %v1027_v55  ;;  %v1026_v60 = vadd.f32 1e-05, %v1024_v58  ;;  %vm1045_vm5 = vweird.f32 %v2634_v57  ;;  %v813_v58 = vld [vmem:[#allocation2 + $0x98] sm:$0xff] }
 0x521   :  { %vm1046_vm8 = vmor %vm1044_vm7, %vm1045_vm5  ;;  %834 = vmatpush.msra.mxu3 %v813_v58  ;;  %vm1284_vm5 = vcmask 1045504  }
 0x522   :  { %v1040_v19 = vmul.f32 %v2634_v57, %v1039_v59  ;;  %2635 = vrsqrt.f32 %v1026_v60  ;;  %vm1034_vm10 = vweird.f32 %v1026_v60  ;;  %v812_v59 = vld [vmem:[#allocation2 + $0x90] sm:$0xff] }
 0x523   :  { %835 = vmatpush.msra.mxu3 %v812_v59 }
 0x524   :  { %v1041_v61 = vmul.f32 0.5, %v1040_v19  ;;  %v810_v19 = vld [vmem:[#allocation2 + $0x80] sm:$0xff] }
 0x526   :  { %v1042_v62 = vsub.f32 1.5, %v1041_v61 }
 0x528   :  { %v1043_v63 = vmul.f32 %v2634_v57, %v1042_v62  ;;  %v2636_v0 = vpop.eup %2635 }
 0x529   :  { %v1029_v34 = vmul.f32 %v2636_v0, %v1026_v60  ;;  %vm1035_vm9 = vweird.f32 %v2636_v0  ;;  %v811_v60 = vld [vmem:[#allocation2 + $0x88] sm:$0xff] }
 0x52a   :  { %v1047_v1 = vsel %vm1046_vm8, %v2634_v57, %v1043_v63  ;;  %vm1036_vm11 = vmor %vm1034_vm10, %vm1035_vm9  ;;  %836 = vmatpush.msra.mxu3 %v811_v60 }
 0x52b   :  { %v1065_v3 = vperm.slane %v1047_v1, %v2853_v50  ;;  %v1069_v7 = vperm.slane %v1047_v1, %v2855_v51  ;;  %v1073_v9 = vperm.slane %v1047_v1, %v2857_v52  ;;  %v1030_v8 = vmul.f32 %v2636_v0, %v1029_v34 }
 0x52c   :  { %837 = vmatpush.msra.mxu3 %v810_v19 }
 0x52d   :  { %v1083_v27 = vmul.f32 %v1065_v3, %v3036_v4  ;;  %v1084_v53 = vmul.f32 %v1069_v7, %v3039_v5  ;;  %v1085_v23 = vmul.f32 %v1073_v9, %v3042_v6  ;;  %v1031_v12 = vmul.f32 0.5, %v1030_v8  ;;  %v878_v7 = vld [vmem:[#allocation2 + $0x120] sm:$0xff]  ;;  %v877_v9 = vld [vmem:[#allocation2 + $0x118] sm:$0xff] }
 0x52e   :  { %881 = vmatpush.msrb.mxu0 %v878_v7 }
 0x52f   :  { %1098 = vst [vmem:[#allocation1 + $0x3] ss:$4 sm:$0xff] %v1083_v27  ;;  %v1032_v21 = vsub.f32 1.5, %v1031_v12 }
 0x530   :  { %1100 = vst [vmem:[#allocation1 + $0x20] ss:$4 sm:$0xff] %v1084_v53  ;;  %882 = vmatpush.msrb.mxu0 %v877_v9  ;;  %v2595_v53 = vld [vmem:[#allocation2 + $0x150] ss:$0 sm:$0xff] }
 0x531   :  { %1102 = vst [vmem:[#allocation1 + $0x21] ss:$4 sm:$0xff] %v1085_v23  ;;  %v1033_v28 = vmul.f32 %v2636_v0, %v1032_v21 }
 0x533   :  { %v1037_v14 = vsel %vm1036_vm11, %v2636_v0, %v1033_v28  ;;  %v3103_v32 = vpop.f32.mrf.mxu1 }
 0x534   :  { %v1053_v15 = vperm.slane %v1037_v14, %v2853_v50  ;;  %v1057_v4 = vperm.slane %v1037_v14, %v2855_v51  ;;  %v1061_v5 = vperm.slane %v1037_v14, %v2857_v52  ;;  %v2594_v50 = vld [vmem:[#allocation2 + $0x78] ss:$0 sm:$0xff]  ;;  %v1144_v28 = vadd.f32 %v2595_v53, %v3103_v32  ;;  %v871_v32 = vld [vmem:[#allocation2 + $0xe8] sm:$0xff] }
 0x536   :  { %v1080_v6 = vmul.f32 %v1053_v15, %v3055_v22  ;;  %v1081_v17 = vmul.f32 %v1057_v4, %v3058_v13  ;;  %v1082_v18 = vmul.f32 %v1061_v5, %v3061_v20 }
 0x538   :  { %1092 = vst [vmem:[#allocation1] ss:$4 sm:$0xff] %v1080_v6  ;;  %v1104_v16 = vld.sshfl [vmem:[#allocation1 + $0x20] sm:$0xff pattern:$0x73625140] }
 0x539   :  { %1094 = vst [vmem:[#allocation1 + $0x1] ss:$4 sm:$0xff] %v1081_v17 }
 0x53a   :  { %1096 = vst [vmem:[#allocation1 + $0x2] ss:$4 sm:$0xff] %v1082_v18 }
 0x541   :  { %v1103_v24 = vld.sshfl [vmem:[#allocation1] sm:$0xff pattern:$0x73625140] }
 0x542   :  { %2534 = vmatmul.msk.f32.gmra.mxu1 %vm121_vm1, %v1103_v24 }
 0x54a   :  { %2535 = vmatmul.msk.f32.gmra.mxu1 %vm121_vm1, %v1104_v16 }
 0x56b   :  { %v758_v25 = vpop.f32.mrf.mxu2 }
 0x56c   :  { %v759_v51 = vadd.f32 %v2594_v50, %v758_v25 }
 0x56e   :  { %v3094_v52 = vadd.f32 %v759_v51, %v2846_v31  ;;  %v876_v51 = vld [vmem:[#allocation2 + $0x110] sm:$0xff] }
 0x56f   :  { %883 = vmatpush.msrb.mxu0 %v876_v51  ;;  %v1342_v51 = vld [vmem:[#allocation2 + $0x170] sm:$0xff] }
 0x570   :  { %v766_v22 = vsel %vm121_vm1, %v3094_v52, 0.0 }
 0x571   :  { %767 = vadd.xlane.f32.xlu0 %v766_v22  ;;  %v875_v22 = vld [vmem:[#allocation2 + $0x108] sm:$0xff] }
 0x572   :  { %884 = vmatpush.msrb.mxu0 %v875_v22 }
 0x576   :  { %v761_v13 = vpop.f32.mrf.mxu2 }
 0x577   :  { %v762_v20 = vadd.f32 %v2594_v50, %v761_v13  ;;  %v874_v13 = vld [vmem:[#allocation2 + $0x100] sm:$0xff] }
 0x578   :  { %885 = vmatpush.msrb.mxu0 %v874_v13 }
 0x579   :  { %v3099_v29 = vadd.f32 %v762_v20, %v2846_v31  ;;  %v873_v20 = vld [vmem:[#allocation2 + $0xf8] sm:$0xff] }
 0x57a   :  { %886 = vmatpush.msrb.mxu0 %v873_v20 }
 0x57b   :  { %v769_v30 = vsel %vm121_vm1, %v3099_v29, 0.0 }
 0x57c   :  { %770 = vadd.xlane.f32.xlu1 %v769_v30  ;;  %v872_v30 = vld [vmem:[#allocation2 + $0xf0] sm:$0xff] }
 0x57d   :  { %887 = vmatpush.msrb.mxu0 %v872_v30  ;;  %v1341_v30 = vld [vmem:[#allocation2 + $0x168] sm:$0xff] }
 0x57f   :  { %888 = vmatpush.msrb.mxu0 %v871_v32 }
 0x5bf   :  { %v1136_v35 = vpop.f32.mrf.mxu1 }
 0x5c0   :  { %v1151_v38 = vadd.f32 %v1149_v33, %v1136_v35  ;;  %v869_v35 = vld [vmem:[#allocation2 + $0xd8] sm:$0xff] }
 0x5c2   :  { %v1155_v36 = vrot.slane %v1151_v38, 2  ;;  %v1156_v37 = vrot.slane %v1151_v38, 4  ;;  %1159 = vst [vmem:[#allocation1] ss:$4 sm:$0xff] %v1151_v38  ;;  %v1157_v41 = vrot.slane %v1151_v38, 6 }
 0x5c4   :  { %1161 = vst [vmem:[#allocation1 + $0x1] ss:$4 sm:$0xff] %v1155_v36 }
 0x5c5   :  { %1163 = vst [vmem:[#allocation1 + $0x2] ss:$4 sm:$0xff] %v1156_v37 }
 0x5c7   :  { %v1139_v39 = vpop.f32.mrf.mxu1 }
 0x5c8   :  { %v1152_v40 = vadd.f32 %v1149_v33, %v1139_v39  ;;  %v870_v33 = vld [vmem:[#allocation2 + $0xe0] sm:$0xff]  ;;  %v865_v39 = vld [vmem:[#allocation2 + $0xb8] sm:$0xff] }
 0x5c9   :  { %889 = vmatpush.msrb.mxu0 %v870_v33 }
 0x5ca   :  { %v1158_v42 = vrot.slane %v1152_v40, 2 }
 0x5cb   :  { %890 = vmatpush.msrb.mxu0 %v869_v35 }
 0x5cc   :  { %v1164_v31 = vld.sshfl [vmem:[#allocation1] sm:$0xff pattern:$0x73625140] }
 0x5cd   :  { %1192 = vst [vmem:[#allocation1] ss:$4 sm:$0xff] %v1157_v41 }
 0x5ce   :  { %1194 = vst [vmem:[#allocation1 + $0x1] ss:$4 sm:$0xff] %v1152_v40 }
 0x5cf   :  { %1196 = vst [vmem:[#allocation1 + $0x2] ss:$4 sm:$0xff] %v1158_v42 }
 0x5d6   :  { %v1197_v43 = vld.sshfl [vmem:[#allocation1] sm:$0xff pattern:$0x73625140] }
 0x5d7   :  { %1273 = vst [vmem:[#allocation1] ss:$4 sm:$0xff] %v1151_v38  ;;  %v868_v38 = vld [vmem:[#allocation2 + $0xd0] sm:$0xff] }
 0x5d8   :  { %1275 = vst [vmem:[#allocation1 + $0x1] ss:$4 sm:$0xff] %v1155_v36  ;;  %v867_v36 = vld [vmem:[#allocation2 + $0xc8] sm:$0xff]  ;;  %891 = vmatpush.msrb.mxu0 %v868_v38 }
 0x5d9   :  { %1277 = vst [vmem:[#allocation1 + $0x2] ss:$4 sm:$0xff] %v1156_v37  ;;  %v866_v37 = vld [vmem:[#allocation2 + $0xc0] sm:$0xff] }
 0x5da   :  { %892 = vmatpush.msrb.mxu0 %v867_v36 }
 0x5dc   :  { %893 = vmatpush.msrb.mxu0 %v866_v37 }
 0x5de   :  { %894 = vmatpush.msrb.mxu0 %v865_v39 }
 0x5e0   :  { %v3105_v44 = vld.sshfl [vmem:[#allocation1] sm:$0xff pattern:$0x73625140] }
 0x5e1   :  { %1307 = vst [vmem:[#allocation1] ss:$4 sm:$0xff] %v1157_v41  ;;  %v864_v41 = vld [vmem:[#allocation2 + $0xb0] sm:$0xff] }
 0x5e2   :  { %1309 = vst [vmem:[#allocation1 + $0x1] ss:$4 sm:$0xff] %v1152_v40  ;;  %v2596_v40 = vld [vmem:[#allocation2 + $0xa0] ss:$0 sm:$0xff]  ;;  %895 = vmatpush.msrb.mxu0 %v864_v41 }
 0x5e3   :  { %1311 = vst [vmem:[#allocation1 + $0x2] ss:$4 sm:$0xff] %v1158_v42 }
 0x5e4   :  { %v768_v45 = vpop.xlane.xlu0 %767 }
 0x5e5   :  { %v772_v11 = vmul.f32 %v768_v45, %v2851_v49 }
 0x5e7   :  { %v774_v26 = vsub.f32 %v3094_v52, %v772_v11 }
 0x5e9   :  { %v776_v46 = vmul.f32 %v774_v26, %v774_v26 }
 0x5eb   :  { %v778_v47 = vsel %vm121_vm1, %v776_v46, 0.0 }
 0x5ec   :  { %779 = vadd.xlane.f32.xlu0 %v778_v47 }
 0x5ef   :  { %v771_v48 = vpop.xlane.xlu1 %770 }
 0x5f0   :  { %v773_v54 = vmul.f32 %v771_v48, %v2851_v49 }
 0x5f2   :  { %v775_v55 = vsub.f32 %v3099_v29, %v773_v54 }
 0x5f4   :  { %v777_v56 = vmul.f32 %v775_v55, %v775_v55 }
 0x5f6   :  { %v781_v57 = vsel %vm121_vm1, %v777_v56, 0.0 }
 0x5f7   :  { %782 = vadd.xlane.f32.xlu1 %v781_v57 }
 0x600   :  { %1165 = vrot.lane.b32.xlu0 %v1164_v31, %s2768_s26 }
 0x610   :  { %1198 = vrot.lane.b32.xlu1 %v1197_v43, %s2768_s26  ;;  %v863_v43 = vld [vmem:[#allocation2 + $0xa8] sm:$0xff] }
 0x611   :  { %896 = vmatpush.msrb.mxu0 %v863_v43 }
 0x65f   :  { %v780_v61 = vpop.xlane.xlu0 %779 }
 0x660   :  { %v784_v62 = vmul.f32 %v780_v61, %v2851_v49 }
 0x662   :  { %v786_v63 = vadd.f32 1e-05, %v784_v62 }
 0x664   :  { %2637 = vrsqrt.f32 %v786_v63  ;;  %vm794_vm13 = vweird.f32 %v786_v63 }
 0x66a   :  { %v2638_v0 = vpop.eup %2637  ;;  %v783_v34 = vpop.xlane.xlu1 %782 }
 0x66b   :  { %v789_v1 = vmul.f32 %v2638_v0, %v786_v63  ;;  %v785_v3 = vmul.f32 %v783_v34, %v2851_v49  ;;  %vm795_vm12 = vweird.f32 %v2638_v0 }
 0x66c   :  { %vm796_vm14 = vmor %vm794_vm13, %vm795_vm12 }
 0x66d   :  { %v790_v10 = vmul.f32 %v2638_v0, %v789_v1  ;;  %v787_v8 = vadd.f32 1e-05, %v785_v3 }
 0x66f   :  { %v791_v27 = vmul.f32 0.5, %v790_v10  ;;  %2639 = vrsqrt.f32 %v787_v8  ;;  %vm804_vm0 = vweird.f32 %v787_v8 }
 0x671   :  { %v792_v23 = vsub.f32 1.5, %v791_v27 }
 0x672   :  { %v1166_v12 = vpop.permute.xlu0 %1165 }
 0x673   :  { %v793_v21 = vmul.f32 %v2638_v0, %v792_v23  ;;  %2536 = vmatpush.xpose.msk.msrb.mxu2 %vm121_vm1, %v1166_v12 }
 0x675   :  { %v797_v14 = vsel %vm796_vm14, %v2638_v0, %v793_v21  ;;  %v2640_v15 = vpop.eup %2639 }
 0x676   :  { %v808_v4 = vmul.f32 %v797_v14, %v774_v26  ;;  %2537 = vmatmul.msk.f32.vlgmr.msrb.gmra.mxu2 %vm121_vm1, %v1144_v28  ;;  %v799_v5 = vmul.f32 %v2640_v15, %v787_v8  ;;  %vm805_vm15 = vweird.f32 %v2640_v15 }
 0x677   :  { %vm806_vm3 = vmor %vm804_vm0, %vm805_vm15 }
 0x678   :  { %2531 = vmatmul.msk.f32.vlgmr.msra.gmra.mxu3 %vm121_vm1, %v808_v4  ;;  %v800_v6 = vmul.f32 %v2640_v15, %v799_v5 }
 0x67a   :  { %v801_v17 = vmul.f32 0.5, %v800_v6 }
 0x67c   :  { %v802_v18 = vsub.f32 1.5, %v801_v17 }
 0x67e   :  { %v803_v24 = vmul.f32 %v2640_v15, %v802_v18 }
 0x680   :  { %v807_v16 = vsel %vm806_vm3, %v2640_v15, %v803_v24 }
 0x681   :  { %v809_v50 = vmul.f32 %v807_v16, %v775_v55 }
 0x682   :  { %v1199_v25 = vpop.permute.xlu1 %1198 }
 0x683   :  { %2532 = vmatmul.msk.f32.gmra.mxu3 %vm121_vm1, %v809_v50 }
 0x684   :  { %2538 = vmatpush.xpose.msk.msrb.mxu3 %vm121_vm1, %v1199_v25  ;;  %v1343_v25 = vld [vmem:[#allocation2 + $0x178] sm:$0xff] }
 0x685   :  { %1364 = vmatpush.msra.mxu0 %v1343_v25  ;;  %v1487_v25 = vld [vmem:[#allocation2 + $0x218] sm:$0xff] }
 0x687   :  { %1365 = vmatpush.msra.mxu0 %v1342_v51 }
 0x689   :  { %1366 = vmatpush.msra.mxu0 %v1341_v30 }
 0x68b   :  { %2539 = vmatmul.msk.f32.vlgmr.msrb.gmra.mxu3 %vm121_vm1, %v1144_v28 }
 0x6f9   :  { %v1189_v42 = vpop.f32.mrf.mxu2 }
 0x6fa   :  { %v1222_v31 = vmul.f32 0.17677669, %v1189_v42 }
 0x6fb   :  { %v839_v45 = vpop.f32.mrf.mxu3 }
 0x6fc   :  { %v840_v11 = vadd.f32 %v2596_v40, %v839_v45  ;;  %v1225_v26 = vsel %vm1224_vm4, %v1222_v31, -inf }
 0x6fd   :  { %1226 = vmax.xlane.f32.xlu2 %v1225_v26 }
 0x6fe   :  { %v845_v46 = vmul.f32 %v840_v11, %v840_v11 }
 0x700   :  { %v847_v47 = vmul.f32 %v845_v46, %v840_v11 }
 0x702   :  { %v849_v48 = vmul.f32 0.044715, %v847_v47 }
 0x704   :  { %v851_v54 = vadd.f32 %v849_v48, %v840_v11 }
 0x706   :  { %v853_v55 = vmul.f32 0.7978846, %v851_v54  ;;  %v842_v56 = vpop.f32.mrf.mxu3  ;;  %v1340_v54 = vld [vmem:[#allocation2 + $0x160] sm:$0xff] }
 0x707   :  { %v843_v57 = vadd.f32 %v2596_v40, %v842_v56  ;;  %1367 = vmatpush.msra.mxu0 %v1340_v54  ;;  %v1478_v54 = vld [vmem:[#allocation2 + $0x1d0] sm:$0xff] }
 0x708   :  { %2641 = vtanh.f32 %v853_v55 }
 0x709   :  { %v846_v58 = vmul.f32 %v843_v57, %v843_v57 }
 0x70b   :  { %v848_v59 = vmul.f32 %v846_v58, %v843_v57 }
 0x70d   :  { %v850_v19 = vmul.f32 0.044715, %v848_v59  ;;  %v2598_v59 = vld [vmem:[#allocation2 + $0x180] ss:$0 sm:$0xff] }
 0x70e   :  { %v2642_v60 = vpop.eup %2641  ;;  %v1219_v61 = vpop.f32.mrf.mxu3 }
 0x70f   :  { %v857_v62 = vadd.f32 1.0, %v2642_v60  ;;  %v1223_v63 = vmul.f32 0.17677669, %v1219_v61  ;;  %v852_v0 = vadd.f32 %v850_v19, %v843_v57 }
 0x711   :  { %v859_v1 = vmul.f32 0.5, %v857_v62  ;;  %v1228_v34 = vsel %vm1224_vm4, %v1223_v63, -inf  ;;  %v854_v3 = vmul.f32 0.7978846, %v852_v0 }
 0x712   :  { %1229 = vmax.xlane.f32.xlu0 %v1228_v34 }
 0x713   :  { %v861_v7 = vmul.f32 %v859_v1, %v840_v11  ;;  %2643 = vtanh.f32 %v854_v3 }
 0x715   :  { %897 = vmatmul.f32.vlgmr.msrb.gmra.mxu0 %v861_v7 }
 0x719   :  { %v2644_v9 = vpop.eup %2643 }
 0x71a   :  { %v858_v10 = vadd.f32 1.0, %v2644_v9 }
 0x71c   :  { %v860_v8 = vmul.f32 0.5, %v858_v10 }
 0x71e   :  { %v862_v27 = vmul.f32 %v860_v8, %v843_v57 }
 0x720   :  { %900 = vmatmul.f32.gmra.mxu0 %v862_v27 }
 0x726   :  { %1279 = vrot.lane.b32.xlu0 %v3105_v44, %s2769_s27  ;;  %v1312_v44 = vld.sshfl [vmem:[#allocation1] sm:$0xff pattern:$0x73625140] }
 0x770   :  { %v1227_v53 = vpop.xlane.xlu2 %1226 }
 0x771   :  { %v1231_v23 = vsub.f32 %v1222_v31, %v1227_v53 }
 0x773   :  { %v1233_v12 = vmul.f32 1.442695, %v1231_v23 }
 0x775   :  { %2645 = vpow2.f32 %v1233_v12 }
 0x77b   :  { %v2646_v21 = vpop.eup %2645 }
 0x77c   :  { %v1237_v28 = vsel %vm1224_vm4, %v2646_v21, 0.0 }
 0x77d   :  { %1238 = vadd.xlane.f32.xlu1 %v1237_v28  ;;  %v1423_v28 = vld [vmem:[#allocation2 + $0x198] sm:$0xff] }
 0x785   :  { %v1230_v14 = vpop.xlane.xlu0 %1229 }
 0x786   :  { %v1232_v15 = vsub.f32 %v1223_v63, %v1230_v14 }
 0x788   :  { %v1235_v4 = vmul.f32 1.442695, %v1232_v15 }
 0x78a   :  { %2647 = vpow2.f32 %v1235_v4  ;;  %v1422_v4 = vld [vmem:[#allocation2 + $0x190] sm:$0xff] }
 0x790   :  { %v2648_v5 = vpop.eup %2647 }
 0x791   :  { %v1240_v6 = vsel %vm1224_vm4, %v2648_v5, 0.0 }
 0x792   :  { %1241 = vadd.xlane.f32.xlu2 %v1240_v6  ;;  %v3137_v57 = vpop.f32.mrf.mxu0  ;;  %v1421_v6 = vld [vmem:[#allocation2 + $0x188] sm:$0xff] }
 0x798   :  { %v1280_v17 = vpop.permute.xlu0 %1279 }
 0x799   :  { %2540 = vmatpush.msk.msra.mxu2 %vm1284_vm5, %v1280_v17 }
 0x79d   :  { %v3139_v58 = vpop.f32.mrf.mxu0 }
 0x7aa   :  { %1313 = vrot.lane.b32.xlu2 %v1312_v44, %s2769_s27 }
 0x7f0   :  { %v1239_v18 = vpop.xlane.xlu1 %1238 }
 0x7f1   :  { %2649 = vrcp.f32 %v1239_v18  ;;  %v1254_v22 = vand.u32 2147483648, %v1239_v18  ;;  %v1252_v20 = vand.u32 2147483647, %v1239_v18  ;;  %vm1248_vm8 = vweird.f32 %v1239_v18 }
 0x7f3   :  { %v1255_v33 = vor.u32 1.1754944e-38, %v1254_v22  ;;  %vm1253_vm10 = vcmp.eq.f32.partialorder %v1252_v20, 8.507059e+37 }
 0x7f7   :  { %v2650_v24 = vpop.eup %2649 }
 0x7f8   :  { %v1244_v16 = vmul.f32 %v2650_v24, %v1239_v18  ;;  %vm1249_vm7 = vweird.f32 %v2650_v24 }
 0x7f9   :  { %vm1250_vm9 = vmor %vm1248_vm8, %vm1249_vm7 }
 0x7fa   :  { %v1245_v50 = vsub.f32 1.0, %v1244_v16  ;;  %v1488_v16 = vld [vmem:[#allocation2 + $0x220] sm:$0xff] }
 0x7fc   :  { %v1246_v13 = vmul.f32 %v2650_v24, %v1245_v50 }
 0x7fe   :  { %v1247_v32 = vadd.f32 %v2650_v24, %v1246_v13 }
 0x800   :  { %v1251_v35 = vsel %vm1250_vm9, %v2650_v24, %v1247_v32  ;;  %v1489_v24 = vld [vmem:[#allocation2 + $0x228] sm:$0xff] }
 0x801   :  { %v1256_v38 = vsel %vm1253_vm10, %v1255_v33, %v1251_v35  ;;  %1492 = vmatpush.msra.mxu1 %v1489_v24 }
 0x802   :  { %v1257_v36 = vmul.f32 %v2646_v21, %v1256_v38  ;;  %v1424_v21 = vld [vmem:[#allocation2 + $0x1a0] sm:$0xff] }
 0x803   :  { %1445 = vmatpush.msrb.mxu2 %v1424_v21  ;;  %1493 = vmatpush.msra.mxu1 %v1488_v16 }
 0x804   :  { %2541 = vmatmul.msk.f32.vlgmr.msra.gmra.mxu2 %vm1224_vm4, %v1257_v36 }
 0x805   :  { %v1242_v37 = vpop.xlane.xlu2 %1241  ;;  %1446 = vmatpush.msrb.mxu2 %v1423_v28  ;;  %1494 = vmatpush.msra.mxu1 %v1487_v25 }
 0x806   :  { %2651 = vrcp.f32 %v1242_v37  ;;  %v1269_v31 = vand.u32 2147483648, %v1242_v37  ;;  %v1267_v45 = vand.u32 2147483647, %v1242_v37  ;;  %vm1263_vm12 = vweird.f32 %v1242_v37 }
 0x807   :  { %1447 = vmatpush.msrb.mxu2 %v1422_v4 }
 0x808   :  { %v1270_v26 = vor.u32 1.1754944e-38, %v1269_v31  ;;  %vm1268_vm14 = vcmp.eq.f32.partialorder %v1267_v45, 8.507059e+37  ;;  %v1486_v31 = vld [vmem:[#allocation2 + $0x210] sm:$0xff]  ;;  %v1484_v45 = vld [vmem:[#allocation2 + $0x200] sm:$0xff] }
 0x809   :  { %1448 = vmatpush.msrb.mxu2 %v1421_v6  ;;  %1495 = vmatpush.msra.mxu1 %v1486_v31 }
 0x80c   :  { %v2652_v39 = vpop.eup %2651 }
 0x80d   :  { %v1259_v40 = vmul.f32 %v2652_v39, %v1242_v37  ;;  %v1314_v41 = vpop.permute.xlu2 %1313  ;;  %vm1264_vm11 = vweird.f32 %v2652_v39 }
 0x80e   :  { %2542 = vmatpush.msk.msra.mxu3 %vm1284_vm5, %v1314_v41  ;;  %vm1265_vm13 = vmor %vm1263_vm12, %vm1264_vm11 }
 0x80f   :  { %v1260_v42 = vsub.f32 1.0, %v1259_v40 }
 0x811   :  { %v1261_v43 = vmul.f32 %v2652_v39, %v1260_v42 }
 0x813   :  { %v1262_v11 = vadd.f32 %v2652_v39, %v1261_v43  ;;  %v1485_v43 = vld [vmem:[#allocation2 + $0x208] sm:$0xff] }
 0x814   :  { %1496 = vmatpush.msra.mxu1 %v1485_v43 }
 0x815   :  { %v1266_v46 = vsel %vm1265_vm13, %v2652_v39, %v1262_v11  ;;  %v1483_v11 = vld [vmem:[#allocation2 + $0x1f8] sm:$0xff] }
 0x816   :  { %v1271_v47 = vsel %vm1268_vm14, %v1270_v26, %v1266_v46  ;;  %1497 = vmatpush.msra.mxu1 %v1484_v45  ;;  %v1482_v26 = vld [vmem:[#allocation2 + $0x1f0] sm:$0xff]  ;;  %v1481_v46 = vld [vmem:[#allocation2 + $0x1e8] sm:$0xff] }
 0x817   :  { %v1272_v48 = vmul.f32 %v2648_v5, %v1271_v47  ;;  %v1480_v47 = vld [vmem:[#allocation2 + $0x1e0] sm:$0xff] }
 0x818   :  { %1498 = vmatpush.msra.mxu1 %v1483_v11 }
 0x819   :  { %2543 = vmatmul.msk.f32.vlgmr.msra.gmra.mxu3 %vm1224_vm4, %v1272_v48  ;;  %v1479_v48 = vld [vmem:[#allocation2 + $0x1d8] sm:$0xff] }
 0x81a   :  { %1499 = vmatpush.msra.mxu1 %v1482_v26 }
 0x81c   :  { %1500 = vmatpush.msra.mxu1 %v1481_v46 }
 0x81e   :  { %1501 = vmatpush.msra.mxu1 %v1480_v47 }
 0x820   :  { %1502 = vmatpush.msra.mxu1 %v1479_v48 }
 0x822   :  { %1503 = vmatpush.msra.mxu1 %v1478_v54 }
 0x887   :  { %v1304_v55 = vpop.f32.mrf.mxu2 }
 0x888   :  { %2544 = vmatmul.msk.f32.vlgmr.msra.gmra.mxu0 %vm121_vm1, %v1304_v55  ;;  %v1477_v55 = vld [vmem:[#allocation2 + $0x1c8] sm:$0xff] }
 0x889   :  { %1504 = vmatpush.msra.mxu1 %v1477_v55  ;;  %v1608_v55 = vld [vmem:[#allocation2 + $0x250] sm:$0xff] }
 0x88a   :  { %1633 = vmatpush.msrb.mxu3 %v1608_v55 }
 0x89c   :  { %v1337_v56 = vpop.f32.mrf.mxu3 }
 0x89d   :  { %2545 = vmatmul.msk.f32.gmra.mxu0 %vm121_vm1, %v1337_v56  ;;  %v2599_v56 = vld [vmem:[#allocation2 + $0x1a8] ss:$0 sm:$0xff] }
 0x905   :  { %v1369_v60 = vpop.f32.mrf.mxu0 }
 0x906   :  { %v1370_v19 = vadd.f32 %v2598_v59, %v1369_v60 }
 0x908   :  { %v3142_v61 = vadd.f32 %v1370_v19, %v3010_v2  ;;  %v1475_v19 = vld [vmem:[#allocation2 + $0x1b8] sm:$0xff] }
 0x90a   :  { %v1377_v62 = vsel %vm121_vm1, %v3142_v61, 0.0 }
 0x90b   :  { %1378 = vadd.xlane.f32.xlu1 %v1377_v62 }
 0x91a   :  { %v1372_v63 = vpop.f32.mrf.mxu0 }
 0x91b   :  { %v1373_v0 = vadd.f32 %v2598_v59, %v1372_v63  ;;  %v1476_v59 = vld [vmem:[#allocation2 + $0x1c0] sm:$0xff]  ;;  %v1474_v63 = vld [vmem:[#allocation2 + $0x1b0] sm:$0xff] }
 0x91c   :  { %1505 = vmatpush.msra.mxu1 %v1476_v59 }
 0x91d   :  { %v3147_v1 = vadd.f32 %v1373_v0, %v3010_v2 }
 0x91e   :  { %1506 = vmatpush.msra.mxu1 %v1475_v19  ;;  %v1606_v19 = vld [vmem:[#allocation2 + $0x240] sm:$0xff] }
 0x91f   :  { %v1380_v34 = vsel %vm121_vm1, %v3147_v1, 0.0 }
 0x920   :  { %1381 = vadd.xlane.f32.xlu1 %v1380_v34  ;;  %1507 = vmatpush.msra.mxu1 %v1474_v63  ;;  %v1605_v63 = vld [vmem:[#allocation2 + $0x238] sm:$0xff] }
 0x97e   :  { %v1379_v3 = vpop.xlane.xlu1 %1378 }
 0x97f   :  { %v1383_v7 = vmul.f32 %v1379_v3, %v2851_v49 }
 0x981   :  { %v1385_v9 = vsub.f32 %v3142_v61, %v1383_v7 }
 0x983   :  { %v1387_v10 = vmul.f32 %v1385_v9, %v1385_v9 }
 0x985   :  { %v1389_v8 = vsel %vm121_vm1, %v1387_v10, 0.0 }
 0x986   :  { %1390 = vadd.xlane.f32.xlu0 %v1389_v8 }
 0x993   :  { %v1382_v27 = vpop.xlane.xlu1 %1381 }
 0x994   :  { %v1384_v53 = vmul.f32 %v1382_v27, %v2851_v49 }
 0x996   :  { %v1386_v23 = vsub.f32 %v3147_v1, %v1384_v53 }
 0x998   :  { %v1388_v2 = vmul.f32 %v1386_v23, %v1386_v23 }
 0x99a   :  { %v1392_v12 = vsel %vm121_vm1, %v1388_v2, 0.0 }
 0x99b   :  { %1393 = vadd.xlane.f32.xlu1 %v1392_v12 }
 0x9f9   :  { %v1391_v14 = vpop.xlane.xlu0 %1390 }
 0x9fa   :  { %v1395_v15 = vmul.f32 %v1391_v14, %v2851_v49 }
 0x9fc   :  { %v1397_v5 = vadd.f32 1e-05, %v1395_v15 }
 0x9fe   :  { %2653 = vrsqrt.f32 %v1397_v5  ;;  %vm1405_vm0 = vweird.f32 %v1397_v5 }
 0xa04   :  { %v2654_v17 = vpop.eup %2653 }
 0xa05   :  { %v1400_v44 = vmul.f32 %v2654_v17, %v1397_v5  ;;  %vm1406_vm15 = vweird.f32 %v2654_v17 }
 0xa06   :  { %vm1407_vm3 = vmor %vm1405_vm0, %vm1406_vm15 }
 0xa07   :  { %v1401_v18 = vmul.f32 %v2654_v17, %v1400_v44  ;;  %v2600_v44 = vld [vmem:[#allocation2 + $0x230] ss:$0 sm:$0xff] }
 0xa09   :  { %v1402_v50 = vmul.f32 0.5, %v1401_v18 }
 0xa0b   :  { %v1403_v51 = vsub.f32 1.5, %v1402_v50 }
 0xa0d   :  { %v1404_v22 = vmul.f32 %v2654_v17, %v1403_v51  ;;  %v2597_v51 = vld [vmem:[#allocation2 + $0x128] ss:$0 sm:$0xff] }
 0xa0e   :  { %v1394_v20 = vpop.xlane.xlu1 %1393 }
 0xa0f   :  { %v1408_v13 = vsel %vm1407_vm3, %v2654_v17, %v1404_v22  ;;  %v1396_v32 = vmul.f32 %v1394_v20, %v2851_v49  ;;  %v899_v20 = vadd.f32 %v2597_v51, %v3137_v57 }
 0xa10   :  { %v1419_v30 = vmul.f32 %v1408_v13, %v1385_v9 }
 0xa11   :  { %v1398_v33 = vadd.f32 1e-05, %v1396_v32  ;;  %v904_v32 = vadd.f32 %v899_v20, %v3094_v52 }
 0xa12   :  { %2546 = vmatmul.msk.f32.vlgmr.msrb.gmra.mxu2 %vm121_vm1, %v1419_v30 }
 0xa13   :  { %2655 = vrsqrt.f32 %v1398_v33  ;;  %vm1415_vm7 = vweird.f32 %v1398_v33 }
 0xa19   :  { %v2656_v35 = vpop.eup %2655 }
 0xa1a   :  { %v1410_v38 = vmul.f32 %v2656_v35, %v1398_v33  ;;  %vm1416_vm4 = vweird.f32 %v2656_v35  ;;  %v1561_v33 = vsel %vm121_vm1, %v904_v32, 0.0 }
 0xa1b   :  { %vm1417_vm8 = vmor %vm1415_vm7, %vm1416_vm4 }
 0xa1c   :  { %v1411_v36 = vmul.f32 %v2656_v35, %v1410_v38 }
 0xa1e   :  { %v1412_v37 = vmul.f32 0.5, %v1411_v36 }
 0xa20   :  { %v1413_v39 = vsub.f32 1.5, %v1412_v37 }
 0xa22   :  { %v1414_v40 = vmul.f32 %v2656_v35, %v1413_v39 }
 0xa24   :  { %v1418_v41 = vsel %vm1417_vm8, %v2656_v35, %v1414_v40 }
 0xa25   :  { %v1420_v42 = vmul.f32 %v1418_v41, %v1386_v23 }
 0xa27   :  { %2547 = vmatmul.msk.f32.gmra.mxu2 %vm121_vm1, %v1420_v42 }
 0xa95   :  { %v1450_v60 = vpop.f32.mrf.mxu2 }
 0xa96   :  { %v1451_v62 = vadd.f32 %v2599_v56, %v1450_v60 }
 0xa98   :  { %v1456_v0 = vmul.f32 %v1451_v62, %v1451_v62 }
 0xa9a   :  { %v1458_v34 = vmul.f32 %v1456_v0, %v1451_v62 }
 0xa9c   :  { %v1460_v3 = vmul.f32 0.044715, %v1458_v34 }
 0xa9e   :  { %v1462_v7 = vadd.f32 %v1460_v3, %v1451_v62 }
 0xaa0   :  { %v1464_v9 = vmul.f32 0.7978846, %v1462_v7 }
 0xaa2   :  { %2657 = vtanh.f32 %v1464_v9 }
 0xaa8   :  { %v2658_v10 = vpop.eup %2657 }
 0xaa9   :  { %v1468_v8 = vadd.f32 1.0, %v2658_v10 }
 0xaaa   :  { %v1453_v27 = vpop.f32.mrf.mxu2 }
 0xaab   :  { %v1470_v53 = vmul.f32 0.5, %v1468_v8  ;;  %v1454_v23 = vadd.f32 %v2599_v56, %v1453_v27  ;;  %v1607_v56 = vld [vmem:[#allocation2 + $0x248] sm:$0xff] }
 0xaac   :  { %1634 = vmatpush.msrb.mxu3 %v1607_v56 }
 0xaad   :  { %v1472_v2 = vmul.f32 %v1470_v53, %v1451_v62  ;;  %v1457_v12 = vmul.f32 %v1454_v23, %v1454_v23 }
 0xaae   :  { %1635 = vmatpush.msrb.mxu3 %v1606_v19 }
 0xaaf   :  { %1508 = vmatmul.f32.vlgmr.msra.gmra.mxu1 %v1472_v2  ;;  %v1459_v21 = vmul.f32 %v1457_v12, %v1454_v23 }
 0xab0   :  { %1636 = vmatpush.msrb.mxu3 %v1605_v63 }
 0xab1   :  { %v1461_v28 = vmul.f32 0.044715, %v1459_v21 }
 0xab3   :  { %v1463_v14 = vadd.f32 %v1461_v28, %v1454_v23  ;;  %v2601_v28 = vld [vmem:[#allocation2 + $0x260] ss:$0 sm:$0xff] }
 0xab5   :  { %v1465_v15 = vmul.f32 0.7978846, %v1463_v14 }
 0xab7   :  { %2659 = vtanh.f32 %v1465_v15 }
 0xabd   :  { %v2660_v4 = vpop.eup %2659 }
 0xabe   :  { %v1469_v5 = vadd.f32 1.0, %v2660_v4 }
 0xac0   :  { %v1471_v6 = vmul.f32 0.5, %v1469_v5 }
 0xac2   :  { %v1473_v17 = vmul.f32 %v1471_v6, %v1454_v23 }
 0xac4   :  { %1511 = vmatmul.f32.gmra.mxu1 %v1473_v17 }
 0xb2c   :  { %v1509_v18 = vpop.f32.mrf.mxu1 }
 0xb2d   :  { %v1510_v24 = vadd.f32 %v2600_v44, %v1509_v18 }
 0xb2f   :  { %v3162_v16 = vadd.f32 %v1510_v24, %v3142_v61  ;;  %v902_v61 = vadd.f32 %v2597_v51, %v3139_v58 }
 0xb31   :  { %v1517_v50 = vsel %vm121_vm1, %v3162_v16, 0.0  ;;  %v905_v35 = vadd.f32 %v902_v61, %v3099_v29 }
 0xb32   :  { %1518 = vadd.xlane.f32.xlu2 %v1517_v50 }
 0xb33   :  { %v1564_v38 = vsel %vm121_vm1, %v905_v35, 0.0 }
 0xb41   :  { %v1512_v25 = vpop.f32.mrf.mxu1 }
 0xb42   :  { %v1513_v22 = vadd.f32 %v2600_v44, %v1512_v25 }
 0xb44   :  { %v3167_v13 = vadd.f32 %v1513_v22, %v3147_v1 }
 0xb46   :  { %v1520_v30 = vsel %vm121_vm1, %v3167_v13, 0.0 }
 0xb47   :  { %1521 = vadd.xlane.f32.xlu1 %v1520_v30 }
 0xb4f   :  { %1562 = vadd.xlane.f32.xlu1 %v1561_v33 }
 0xb57   :  { %1565 = vadd.xlane.f32.xlu1 %v1564_v38 }
 0xba5   :  { %v1519_v1 = vpop.xlane.xlu2 %1518 }
 0xba6   :  { %v1523_v36 = vmul.f32 %v1519_v1, %v2851_v49 }
 0xba8   :  { %v1525_v57 = vsub.f32 %v3162_v16, %v1523_v36 }
 0xbaa   :  { %v1527_v37 = vmul.f32 %v1525_v57, %v1525_v57 }
 0xbac   :  { %v1529_v39 = vsel %vm121_vm1, %v1527_v37, 0.0 }
 0xbad   :  { %1530 = vadd.xlane.f32.xlu1 %v1529_v39 }
 0xbba   :  { %v1522_v52 = vpop.xlane.xlu1 %1521 }
 0xbbb   :  { %v1524_v58 = vmul.f32 %v1522_v52, %v2851_v49 }
 0xbbd   :  { %v3182_v40 = vsub.f32 %v3167_v13, %v1524_v58 }
 0xbbf   :  { %v1528_v29 = vmul.f32 %v3182_v40, %v3182_v40 }
 0xbc1   :  { %v1532_v41 = vsel %vm121_vm1, %v1528_v29, 0.0 }
 0xbc2   :  { %1533 = vadd.xlane.f32.xlu0 %v1532_v41  ;;  %v1563_v42 = vpop.xlane.xlu1 %1562 }
 0xbc3   :  { %v1567_v31 = vmul.f32 %v1563_v42, %v2851_v49 }
 0xbc5   :  { %v3188_v43 = vsub.f32 %v904_v32, %v1567_v31 }
 0xbc7   :  { %v1571_v45 = vmul.f32 %v3188_v43, %v3188_v43 }
 0xbc9   :  { %v1573_v11 = vsel %vm121_vm1, %v1571_v45, 0.0 }
 0xbca   :  { %1574 = vadd.xlane.f32.xlu1 %v1573_v11  ;;  %v1566_v26 = vpop.xlane.xlu1 %1565 }
 0xbcb   :  { %v1568_v46 = vmul.f32 %v1566_v26, %v2851_v49 }
 0xbcd   :  { %v3194_v47 = vsub.f32 %v905_v35, %v1568_v46  ;;  %v2602_v46 = vld [vmem:[#allocation2 + $0x258] ss:$0 sm:$0xff] }
 0xbcf   :  { %v1572_v48 = vmul.f32 %v3194_v47, %v3194_v47 }
 0xbd1   :  { %v1576_v54 = vsel %vm121_vm1, %v1572_v48, 0.0 }
 0xbd2   :  { %1577 = vadd.xlane.f32.xlu2 %v1576_v54 }
 0xbd6   :  { %1657 = vrot.lane.b32.xlu0 %v2601_v28, %s2767_s0 }
 0xc20   :  { %v1531_v59 = vpop.xlane.xlu1 %1530 }
 0xc21   :  { %v1535_v60 = vmul.f32 %v1531_v59, %v2851_v49 }
 0xc23   :  { %v1537_v62 = vadd.f32 1e-05, %v1535_v60 }
 0xc25   :  { %2661 = vrsqrt.f32 %v1537_v62  ;;  %vm1545_vm10 = vweird.f32 %v1537_v62 }
 0xc2b   :  { %v2662_v0 = vpop.eup %2661 }
 0xc2c   :  { %v1540_v34 = vmul.f32 %v2662_v0, %v1537_v62  ;;  %vm1546_vm9 = vweird.f32 %v2662_v0 }
 0xc2d   :  { %vm1547_vm11 = vmor %vm1545_vm10, %vm1546_vm9  ;;  %vm1720_vm9 = vcmask 64512  }
 0xc2e   :  { %v1541_v3 = vmul.f32 %v2662_v0, %v1540_v34 }
 0xc30   :  { %v1542_v7 = vmul.f32 0.5, %v1541_v3 }
 0xc32   :  { %v1543_v9 = vsub.f32 1.5, %v1542_v7 }
 0xc34   :  { %v1544_v10 = vmul.f32 %v2662_v0, %v1543_v9 }
 0xc35   :  { %v1534_v27 = vpop.xlane.xlu0 %1533 }
 0xc36   :  { %v1548_v8 = vsel %vm1547_vm11, %v2662_v0, %v1544_v10  ;;  %v1536_v23 = vmul.f32 %v1534_v27, %v2851_v49 }
 0xc37   :  { %v1559_v53 = vmul.f32 %v1548_v8, %v1525_v57 }
 0xc38   :  { %v1538_v2 = vadd.f32 1e-05, %v1536_v23 }
 0xc39   :  { %2548 = vmatmul.msk.f32.vlgmr.msrb.gmra.mxu3 %vm121_vm1, %v1559_v53 }
 0xc3a   :  { %2663 = vrsqrt.f32 %v1538_v2  ;;  %vm1555_vm13 = vweird.f32 %v1538_v2 }
 0xc3d   :  { %v1575_v12 = vpop.xlane.xlu1 %1574 }
 0xc3e   :  { %v1579_v21 = vmul.f32 %v1575_v12, %v2851_v49 }
 0xc40   :  { %v2664_v14 = vpop.eup %2663  ;;  %v1581_v15 = vadd.f32 1e-05, %v1579_v21 }
 0xc41   :  { %v1550_v4 = vmul.f32 %v2664_v14, %v1538_v2  ;;  %vm1556_vm12 = vweird.f32 %v2664_v14 }
 0xc42   :  { %2665 = vrsqrt.f32 %v1581_v15  ;;  %vm1557_vm14 = vmor %vm1555_vm13, %vm1556_vm12  ;;  %vm1589_vm0 = vweird.f32 %v1581_v15 }
 0xc43   :  { %v1551_v5 = vmul.f32 %v2664_v14, %v1550_v4 }
 0xc45   :  { %v1552_v6 = vmul.f32 0.5, %v1551_v5  ;;  %v1578_v17 = vpop.xlane.xlu2 %1577 }
 0xc46   :  { %v1580_v44 = vmul.f32 %v1578_v17, %v2851_v49 }
 0xc47   :  { %v1553_v18 = vsub.f32 1.5, %v1552_v6 }
 0xc48   :  { %v2666_v24 = vpop.eup %2665  ;;  %v1582_v50 = vadd.f32 1e-05, %v1580_v44  ;;  %v1658_v42 = vpop.permute.xlu0 %1657 }
 0xc49   :  { %v1584_v25 = vmul.f32 %v2666_v24, %v1581_v15  ;;  %v1554_v51 = vmul.f32 %v2664_v14, %v1553_v18  ;;  %vm1590_vm15 = vweird.f32 %v2666_v24 }
 0xc4a   :  { %2667 = vrsqrt.f32 %v1582_v50  ;;  %vm1591_vm3 = vmor %vm1589_vm0, %vm1590_vm15  ;;  %vm1599_vm7 = vweird.f32 %v1582_v50 }
 0xc4b   :  { %v1585_v22 = vmul.f32 %v2666_v24, %v1584_v25  ;;  %v1558_v20 = vsel %vm1557_vm14, %v2664_v14, %v1554_v51  ;;  %v1824_v51 = vld [vmem:[#allocation2 + $0x280] sm:$0xff] }
 0xc4c   :  { %v1560_v30 = vmul.f32 %v1558_v20, %v3182_v40  ;;  %v1822_v20 = vld [vmem:[#allocation2 + $0x270] sm:$0xff] }
 0xc4d   :  { %v1586_v32 = vmul.f32 0.5, %v1585_v22  ;;  %v1823_v22 = vld [vmem:[#allocation2 + $0x278] sm:$0xff] }
 0xc4e   :  { %2549 = vmatmul.msk.f32.gmra.mxu3 %vm121_vm1, %v1560_v30 }
 0xc4f   :  { %v1587_v61 = vsub.f32 1.5, %v1586_v32 }
 0xc50   :  { %v2668_v33 = vpop.eup %2667 }
 0xc51   :  { %v1594_v35 = vmul.f32 %v2668_v33, %v1582_v50  ;;  %v1588_v38 = vmul.f32 %v2666_v24, %v1587_v61  ;;  %vm1600_vm4 = vweird.f32 %v2668_v33 }
 0xc52   :  { %vm1601_vm8 = vmor %vm1599_vm7, %vm1600_vm4 }
 0xc53   :  { %v1595_v1 = vmul.f32 %v2668_v33, %v1594_v35  ;;  %v1592_v36 = vsel %vm1591_vm3, %v2666_v24, %v1588_v38 }
 0xc54   :  { %v1603_v57 = vmul.f32 %v1592_v36, %v3188_v43 }
 0xc55   :  { %v1596_v37 = vmul.f32 0.5, %v1595_v1 }
 0xc56   :  { %2550 = vmatmul.msk.f32.gmra.mxu3 %vm121_vm1, %v1603_v57 }
 0xc57   :  { %v1597_v39 = vsub.f32 1.5, %v1596_v37 }
 0xc59   :  { %v1598_v52 = vmul.f32 %v2668_v33, %v1597_v39 }
 0xc5b   :  { %v1602_v58 = vsel %vm1601_vm8, %v2668_v33, %v1598_v52 }
 0xc5c   :  { %v1604_v40 = vmul.f32 %v1602_v58, %v3194_v47  ;;  %v1821_v58 = vld [vmem:[#allocation2 + $0x268] sm:$0xff] }
 0xc5e   :  { %2551 = vmatmul.msk.f32.gmra.mxu3 %vm121_vm1, %v1604_v40 }
 0xcbc   :  { %v1638_v29 = vpop.f32.mrf.mxu3 }
 0xcbd   :  { %v1652_v54 = vadd.f32 %v2602_v46, %v1638_v29 }
 0xcd1   :  { %v1641_v41 = vpop.f32.mrf.mxu3 }
 0xcd2   :  { %v1653_v55 = vadd.f32 %v2602_v46, %v1641_v41  ;;  %v2603_v41 = vld [vmem:[#allocation2 + $0x288] ss:$0 sm:$0xff] }
 0xcd9   :  { %v1644_v31 = vpop.f32.mrf.mxu3 }
 0xcda   :  { %v1660_v45 = vadd.f32 %v1658_v42, %v1644_v31 }
 0xcdc   :  { %1663 = vrot.lane.b32.xlu2 %v1660_v45, %s2768_s26 }
 0xce1   :  { %v1647_v43 = vpop.f32.mrf.mxu3 }
 0xce2   :  { %v1661_v11 = vadd.f32 %v1658_v42, %v1647_v43 }
 0xce4   :  { %v2585_v26 = vpack.i.bf16 %v1661_v11, %v1660_v45  ;;  %1691 = vrot.lane.b32.xlu1 %v1661_v11, %s2768_s26 }
 0xd36   :  { %v1664_v48 = vpop.permute.xlu2 %1663 }
 0xd37   :  { %2552 = vmatpush.xpose.msk.msrb.mxu0 %vm121_vm1, %v1664_v48 }
 0xd3a   :  { %2553 = vmatmul.msk.f32.vlgmr.msrb.gmra.mxu0 %vm121_vm1, %v1652_v54 }
 0xd56   :  { %v1692_v47 = vpop.permute.xlu1 %1691 }
 0xd57   :  { %2554 = vmatpush.xpose.msk.msra.mxu2 %vm121_vm1, %v1692_v47 }
 0xd5a   :  { %2555 = vmatmul.msk.f32.vlgmr.msra.gmra.mxu2 %vm121_vm1, %v1653_v55 }
 0xdb7   :  { %v1687_v56 = vpop.f32.mrf.mxu0 }
 0xdb8   :  { %v1718_v59 = vmul.f32 0.17677669, %v1687_v56 }
 0xdba   :  { %v1721_v60 = vsel %vm1720_vm9, %v1718_v59, -inf }
 0xdbb   :  { %1722 = vmax.xlane.f32.xlu0 %v1721_v60 }
 0xddd   :  { %v1715_v19 = vpop.f32.mrf.mxu2 }
 0xdde   :  { %v1719_v62 = vmul.f32 0.17677669, %v1715_v19 }
 0xde0   :  { %v1724_v63 = vsel %vm1720_vm9, %v1719_v62, -inf }
 0xde1   :  { %1725 = vmax.xlane.f32.xlu1 %v1724_v63  ;;  %v1905_v63 = vld [vmem:[#allocation2 + $0x2a8] sm:$0xff] }
 0xde2   :  { %1926 = vmatpush.msrb.mxu1 %v1905_v63 }
 0xdfa   :  { %2586 = vrot.lane.b32.xlu1 %v2585_v26, %s2769_s27 }
 0xe2e   :  { %v1723_v0 = vpop.xlane.xlu0 %1722 }
 0xe2f   :  { %v1727_v34 = vsub.f32 %v1718_v59, %v1723_v0  ;;  %v1904_v0 = vld [vmem:[#allocation2 + $0x2a0] sm:$0xff] }
 0xe30   :  { %1927 = vmatpush.msrb.mxu1 %v1904_v0 }
 0xe31   :  { %v1729_v3 = vmul.f32 1.442695, %v1727_v34  ;;  %v1903_v34 = vld [vmem:[#allocation2 + $0x298] sm:$0xff] }
 0xe32   :  { %1928 = vmatpush.msrb.mxu1 %v1903_v34 }
 0xe33   :  { %2669 = vpow2.f32 %v1729_v3  ;;  %v1902_v3 = vld [vmem:[#allocation2 + $0x290] sm:$0xff] }
 0xe34   :  { %1929 = vmatpush.msrb.mxu1 %v1902_v3 }
 0xe39   :  { %v2670_v7 = vpop.eup %2669 }
 0xe3a   :  { %v1733_v9 = vsel %vm1720_vm9, %v2670_v7, 0.0 }
 0xe3b   :  { %1734 = vadd.xlane.f32.xlu2 %v1733_v9 }
 0xe54   :  { %v1726_v10 = vpop.xlane.xlu1 %1725 }
 0xe55   :  { %v1728_v8 = vsub.f32 %v1719_v62, %v1726_v10 }
 0xe57   :  { %v1731_v27 = vmul.f32 1.442695, %v1728_v8 }
 0xe59   :  { %2671 = vpow2.f32 %v1731_v27 }
 0xe5f   :  { %v2672_v53 = vpop.eup %2671 }
 0xe60   :  { %v1736_v23 = vsel %vm1720_vm9, %v2672_v53, 0.0 }
 0xe61   :  { %1737 = vadd.xlane.f32.xlu0 %v1736_v23 }
 0xe6c   :  { %v2587_v2 = vpop.permute.xlu1 %2586 }
 0xe6d   :  { %v2589_v12 = vunpack.i.h.bf16 %v2587_v2  ;;  %v2588_v21 = vunpack.i.l.bf16 %v2587_v2 }
 0xe6f   :  { %1790 = vmatpush.msra.mxu0 %v2588_v21  ;;  %1816 = vmatpush.msrb.mxu2 %v2589_v12 }
 0xe71   :  { %1845 = vmatpush.msrb.mxu0 %v1824_v51 }
 0xe73   :  { %1846 = vmatpush.msrb.mxu0 %v1823_v22 }
 0xe75   :  { %1847 = vmatpush.msrb.mxu0 %v1822_v20 }
 0xe77   :  { %1848 = vmatpush.msrb.mxu0 %v1821_v58  ;;  %v1956_v58 = vld [vmem:[#allocation2 + $0x2c0] sm:$0xff] }
 0xeae   :  { %v1735_v28 = vpop.xlane.xlu2 %1734 }
 0xeaf   :  { %2673 = vrcp.f32 %v1735_v28  ;;  %v1750_v5 = vand.u32 2147483648, %v1735_v28  ;;  %v1748_v17 = vand.u32 2147483647, %v1735_v28  ;;  %vm1744_vm11 = vweird.f32 %v1735_v28 }
 0xeb1   :  { %v1751_v18 = vor.u32 1.1754944e-38, %v1750_v5  ;;  %vm1749_vm13 = vcmp.eq.f32.partialorder %v1748_v17, 8.507059e+37 }
 0xeb5   :  { %v2674_v14 = vpop.eup %2673 }
 0xeb6   :  { %v1740_v15 = vmul.f32 %v2674_v14, %v1735_v28  ;;  %vm1745_vm10 = vweird.f32 %v2674_v14 }
 0xeb7   :  { %vm1746_vm12 = vmor %vm1744_vm11, %vm1745_vm10 }
 0xeb8   :  { %v1741_v4 = vsub.f32 1.0, %v1740_v15  ;;  %v1969_v15 = vld [vmem:[#allocation2 + $0x328] sm:$0xff] }
 0xeba   :  { %v1742_v6 = vmul.f32 %v2674_v14, %v1741_v4  ;;  %v1968_v4 = vld [vmem:[#allocation2 + $0x320] sm:$0xff] }
 0xebc   :  { %v1743_v44 = vadd.f32 %v2674_v14, %v1742_v6 }
 0xebe   :  { %v1747_v24 = vsel %vm1746_vm12, %v2674_v14, %v1743_v44  ;;  %v1970_v14 = vld [vmem:[#allocation2 + $0x330] sm:$0xff] }
 0xebf   :  { %v1752_v50 = vsel %vm1749_vm13, %v1751_v18, %v1747_v24  ;;  %1973 = vmatpush.msra.mxu3 %v1970_v14  ;;  %vm2001_vm13 = vcmask 253952  }
 0xec0   :  { %v1753_v25 = vmul.f32 %v2670_v7, %v1752_v50 }
 0xec1   :  { %1974 = vmatpush.msra.mxu3 %v1969_v15 }
 0xec2   :  { %2556 = vmatmul.msk.f32.vlgmr.msra.gmra.mxu0 %vm1720_vm9, %v1753_v25 }
 0xec3   :  { %1975 = vmatpush.msra.mxu3 %v1968_v4 }
 0xed4   :  { %v1738_v30 = vpop.xlane.xlu0 %1737 }
 0xed5   :  { %2675 = vrcp.f32 %v1738_v30  ;;  %v1765_v35 = vand.u32 2147483648, %v1738_v30  ;;  %v1763_v1 = vand.u32 2147483647, %v1738_v30  ;;  %vm1759_vm15 = vweird.f32 %v1738_v30 }
 0xed7   :  { %v1766_v57 = vor.u32 1.1754944e-38, %v1765_v35  ;;  %vm1764_vm3 = vcmp.eq.f32.partialorder %v1763_v1, 8.507059e+37  ;;  %v1963_v35 = vld [vmem:[#allocation2 + $0x2f8] sm:$0xff]  ;;  %v1961_v1 = vld [vmem:[#allocation2 + $0x2e8] sm:$0xff] }
 0xedb   :  { %v2676_v32 = vpop.eup %2675 }
 0xedc   :  { %v1755_v61 = vmul.f32 %v2676_v32, %v1738_v30  ;;  %vm1760_vm14 = vweird.f32 %v2676_v32  ;;  %v1967_v30 = vld [vmem:[#allocation2 + $0x318] sm:$0xff] }
 0xedd   :  { %vm1761_vm0 = vmor %vm1759_vm15, %vm1760_vm14  ;;  %1976 = vmatpush.msra.mxu3 %v1967_v30 }
 0xede   :  { %v1756_v33 = vsub.f32 1.0, %v1755_v61  ;;  %v1965_v61 = vld [vmem:[#allocation2 + $0x308] sm:$0xff] }
 0xee0   :  { %v1757_v38 = vmul.f32 %v2676_v32, %v1756_v33  ;;  %v1964_v33 = vld [vmem:[#allocation2 + $0x300] sm:$0xff] }
 0xee2   :  { %v1758_v36 = vadd.f32 %v2676_v32, %v1757_v38  ;;  %v1962_v38 = vld [vmem:[#allocation2 + $0x2f0] sm:$0xff] }
 0xee4   :  { %v1762_v37 = vsel %vm1761_vm0, %v2676_v32, %v1758_v36  ;;  %v1966_v32 = vld [vmem:[#allocation2 + $0x310] sm:$0xff]  ;;  %v1960_v36 = vld [vmem:[#allocation2 + $0x2e0] sm:$0xff] }
 0xee5   :  { %v1767_v39 = vsel %vm1764_vm3, %v1766_v57, %v1762_v37  ;;  %1977 = vmatpush.msra.mxu3 %v1966_v32  ;;  %v1959_v57 = vld [vmem:[#allocation2 + $0x2d8] sm:$0xff]  ;;  %v1958_v37 = vld [vmem:[#allocation2 + $0x2d0] sm:$0xff] }
 0xee6   :  { %v1768_v52 = vmul.f32 %v2672_v53, %v1767_v39  ;;  %v2604_v39 = vld [vmem:[#allocation2 + $0x2b0] ss:$0 sm:$0xff] }
 0xee7   :  { %1978 = vmatpush.msra.mxu3 %v1965_v61 }
 0xee8   :  { %2557 = vmatmul.msk.f32.vlgmr.msrb.gmra.mxu2 %vm1720_vm9, %v1768_v52  ;;  %v1957_v52 = vld [vmem:[#allocation2 + $0x2c8] sm:$0xff] }
 0xee9   :  { %1979 = vmatpush.msra.mxu3 %v1964_v33 }
 0xeeb   :  { %1980 = vmatpush.msra.mxu3 %v1963_v35 }
 0xeed   :  { %1981 = vmatpush.msra.mxu3 %v1962_v38 }
 0xeef   :  { %1982 = vmatpush.msra.mxu3 %v1961_v1 }
 0xef1   :  { %1983 = vmatpush.msra.mxu3 %v1960_v36 }
 0xef3   :  { %1984 = vmatpush.msra.mxu3 %v1959_v57 }
 0xef5   :  { %1985 = vmatpush.msra.mxu3 %v1958_v37 }
 0xef7   :  { %1986 = vmatpush.msra.mxu3 %v1957_v52 }
 0xef9   :  { %1987 = vmatpush.msra.mxu3 %v1956_v58 }
 0xf3f   :  { %v1792_v40 = vpop.f32.mrf.mxu0 }
 0xf40   :  { %2558 = vmatmul.msk.f32.vlgmr.msrb.gmra.mxu0 %vm121_vm1, %v1792_v40 }
 0xf6b   :  { %v1818_v29 = vpop.f32.mrf.mxu2 }
 0xf6c   :  { %2559 = vmatmul.msk.f32.gmra.mxu0 %vm121_vm1, %v1818_v29 }
 0xfbd   :  { %v1850_v42 = vpop.f32.mrf.mxu0 }
 0xfbe   :  { %v1851_v31 = vadd.f32 %v2603_v41, %v1850_v42 }
 0xfc0   :  { %v3227_v45 = vadd.f32 %v1851_v31, %v3162_v16 }
 0xfc2   :  { %v1858_v43 = vsel %vm121_vm1, %v3227_v45, 0.0 }
 0xfc3   :  { %1859 = vadd.xlane.f32.xlu2 %v1858_v43 }
 0xfe9   :  { %v1853_v11 = vpop.f32.mrf.mxu0 }
 0xfea   :  { %v1854_v26 = vadd.f32 %v2603_v41, %v1853_v11  ;;  %v1955_v41 = vld [vmem:[#allocation2 + $0x2b8] sm:$0xff] }
 0xfeb   :  { %1988 = vmatpush.msra.mxu3 %v1955_v41 }
 0xfec   :  { %v3232_v46 = vadd.f32 %v1854_v26, %v3167_v13 }
 0xfee   :  { %v1861_v48 = vsel %vm121_vm1, %v3232_v46, 0.0 }
 0xfef   :  { %1862 = vadd.xlane.f32.xlu0 %v1861_v48  ;;  %v3249_v48 = vld [vmem:[%s3330_s1] sm:$0x3]  ;;  %s2770_s1 = smov [#allocation5]  }
 0xff0   :  { %s2499_s30 = sshll.u32 %s2770_s1, 4  ;;  %s2500_s30 = int_to_ptr.vmem [resolvable:$true] %s2499_s30 }
0x1036   :  { %v1860_v54 = vpop.xlane.xlu2 %1859 }
0x1037   :  { %v1864_v47 = vmul.f32 %v1860_v54, %v2851_v49  ;;  %v2002_v54 = vsel %vm2001_vm13, %v3249_v48, 0.0 }
0x1039   :  { %v1866_v55 = vsub.f32 %v3227_v45, %v1864_v47 }
0x103b   :  { %v1868_v16 = vmul.f32 %v1866_v55, %v1866_v55 }
0x103d   :  { %v1870_v56 = vsel %vm121_vm1, %v1868_v16, 0.0 }
0x103e   :  { %1871 = vadd.xlane.f32.xlu2 %v1870_v56 }
0x1046   :  { %2003 = vadd.xlane.f32.xlu2 %v2002_v54 }
0x1062   :  { %v1863_v59 = vpop.xlane.xlu0 %1862 }
0x1063   :  { %v1865_v60 = vmul.f32 %v1863_v59, %v2851_v49  ;;  %v3254_v59 = vrot.slane %v3249_v48, 1 }
0x1065   :  { %v1867_v19 = vsub.f32 %v3232_v46, %v1865_v60  ;;  %v2005_v60 = vsel %vm2001_vm13, %v3254_v59, 0.0 }
0x1067   :  { %v1869_v13 = vmul.f32 %v1867_v19, %v1867_v19 }
0x1069   :  { %v1873_v62 = vsel %vm121_vm1, %v1869_v13, 0.0 }
0x106a   :  { %1874 = vadd.xlane.f32.xlu0 %v1873_v62 }
0x1072   :  { %2006 = vadd.xlane.f32.xlu0 %v2005_v60 }
0x10b1   :  { %v1872_v7 = vpop.xlane.xlu2 %1871 }
0x10b2   :  { %v1876_v9 = vmul.f32 %v1872_v7, %v2851_v49 }
0x10b4   :  { %v1878_v10 = vadd.f32 1e-05, %v1876_v9 }
0x10b6   :  { %2677 = vrsqrt.f32 %v1878_v10  ;;  %vm1886_vm7 = vweird.f32 %v1878_v10 }
0x10bc   :  { %v2678_v8 = vpop.eup %2677 }
0x10bd   :  { %v1881_v27 = vmul.f32 %v2678_v8, %v1878_v10  ;;  %vm1887_vm4 = vweird.f32 %v2678_v8 }
0x10be   :  { %vm1888_vm8 = vmor %vm1886_vm7, %vm1887_vm4 }
0x10bf   :  { %v1882_v53 = vmul.f32 %v2678_v8, %v1881_v27  ;;  %v2004_v27 = vpop.xlane.xlu2 %2003 }
0x10c1   :  { %v1883_v23 = vmul.f32 0.5, %v1882_v53  ;;  %v2008_v53 = vmul.f32 %v2004_v27, %v2851_v49 }
0x10c3   :  { %v1884_v2 = vsub.f32 1.5, %v1883_v23  ;;  %v2010_v23 = vsub.f32 %v3249_v48, %v2008_v53 }
0x10c5   :  { %v1885_v12 = vmul.f32 %v2678_v8, %v1884_v2  ;;  %v2012_v2 = vmul.f32 %v2010_v23, %v2010_v23 }
0x10c7   :  { %v1889_v21 = vsel %vm1888_vm8, %v2678_v8, %v1885_v12  ;;  %v2014_v12 = vsel %vm2001_vm13, %v2012_v2, 0.0 }
0x10c8   :  { %v1900_v28 = vmul.f32 %v1889_v21, %v1866_v55  ;;  %2015 = vadd.xlane.f32.xlu0 %v2014_v12  ;;  %v2605_v21 = vld [vmem:[#allocation2 + $0x338] ss:$0 sm:$0xff]  ;;  %v2606_v12 = vld [vmem:[#allocation2 + $0x368] ss:$0 sm:$0xff] }
0x10ca   :  { %2560 = vmatmul.msk.f32.vlgmr.msrb.gmra.mxu1 %vm121_vm1, %v1900_v28 }
0x10dd   :  { %v1875_v5 = vpop.xlane.xlu0 %1874 }
0x10de   :  { %v1877_v6 = vmul.f32 %v1875_v5, %v2851_v49 }
0x10e0   :  { %v1879_v17 = vadd.f32 1e-05, %v1877_v6 }
0x10e2   :  { %2679 = vrsqrt.f32 %v1879_v17  ;;  %vm1896_vm11 = vweird.f32 %v1879_v17 }
0x10e5   :  { %v2007_v5 = vpop.xlane.xlu0 %2006 }
0x10e6   :  { %v2009_v6 = vmul.f32 %v2007_v5, %v2851_v49 }
0x10e8   :  { %v2680_v44 = vpop.eup %2679 }
0x10e9   :  { %v1891_v18 = vmul.f32 %v2680_v44, %v1879_v17  ;;  %vm1897_vm10 = vweird.f32 %v2680_v44 }
0x10ea   :  { %vm1898_vm12 = vmor %vm1896_vm11, %vm1897_vm10 }
0x10eb   :  { %v1892_v24 = vmul.f32 %v2680_v44, %v1891_v18  ;;  %v2011_v18 = vsub.f32 %v3254_v59, %v2009_v6 }
0x10ed   :  { %v1893_v50 = vmul.f32 0.5, %v1892_v24 }
0x10ef   :  { %v1894_v25 = vsub.f32 1.5, %v1893_v50 }
0x10f1   :  { %v1895_v51 = vmul.f32 %v2680_v44, %v1894_v25  ;;  %v2013_v25 = vmul.f32 %v2011_v18, %v2011_v18 }
0x10f3   :  { %v1899_v22 = vsel %vm1898_vm12, %v2680_v44, %v1895_v51  ;;  %v2017_v51 = vsel %vm2001_vm13, %v2013_v25, 0.0 }
0x10f4   :  { %v1901_v20 = vmul.f32 %v1899_v22, %v1867_v19 }
0x10f6   :  { %2561 = vmatmul.msk.f32.gmra.mxu1 %vm121_vm1, %v1901_v20 }
0x1147   :  { %v1931_v40 = vpop.f32.mrf.mxu1 }
0x1148   :  { %v1932_v29 = vadd.f32 %v2604_v39, %v1931_v40 }
0x114a   :  { %v1937_v42 = vmul.f32 %v1932_v29, %v1932_v29 }
0x114c   :  { %v1939_v31 = vmul.f32 %v1937_v42, %v1932_v29 }
0x114e   :  { %v1941_v43 = vmul.f32 0.044715, %v1939_v31 }
0x1150   :  { %v1943_v11 = vadd.f32 %v1941_v43, %v1932_v29 }
0x1152   :  { %v1945_v26 = vmul.f32 0.7978846, %v1943_v11 }
0x1154   :  { %2681 = vtanh.f32 %v1945_v26 }
0x115a   :  { %v2682_v47 = vpop.eup %2681 }
0x115b   :  { %v1949_v55 = vadd.f32 1.0, %v2682_v47 }
0x115d   :  { %v1951_v16 = vmul.f32 0.5, %v1949_v55 }
0x115f   :  { %v1953_v56 = vmul.f32 %v1951_v16, %v1932_v29 }
0x1161   :  { %1989 = vmatmul.f32.vlgmr.msra.gmra.mxu3 %v1953_v56 }
0x1173   :  { %v1934_v19 = vpop.f32.mrf.mxu1 }
0x1174   :  { %v1935_v13 = vadd.f32 %v2604_v39, %v1934_v19 }
0x1176   :  { %v1938_v62 = vmul.f32 %v1935_v13, %v1935_v13 }
0x1178   :  { %v1940_v63 = vmul.f32 %v1938_v62, %v1935_v13  ;;  %v2106_v62 = vld [vmem:[#allocation2 + $0x350] sm:$0xff] }
0x117a   :  { %v1942_v0 = vmul.f32 0.044715, %v1940_v63  ;;  %v2105_v63 = vld [vmem:[#allocation2 + $0x348] sm:$0xff] }
0x117c   :  { %v1944_v34 = vadd.f32 %v1942_v0, %v1935_v13  ;;  %v2104_v0 = vld [vmem:[#allocation2 + $0x340] sm:$0xff] }
0x117e   :  { %v1946_v3 = vmul.f32 0.7978846, %v1944_v34 }
0x1180   :  { %2683 = vtanh.f32 %v1946_v3 }
0x1186   :  { %v2684_v7 = vpop.eup %2683 }
0x1187   :  { %v1950_v9 = vadd.f32 1.0, %v2684_v7 }
0x1189   :  { %v1952_v10 = vmul.f32 0.5, %v1950_v9 }
0x118b   :  { %v1954_v8 = vmul.f32 %v1952_v10, %v1935_v13  ;;  %v2107_v13 = vld [vmem:[#allocation2 + $0x358] sm:$0xff] }
0x118c   :  { %2127 = vmatpush.msra.mxu2 %v2107_v13 }
0x118d   :  { %1992 = vmatmul.f32.gmra.mxu3 %v1954_v8 }
0x118e   :  { %2128 = vmatpush.msra.mxu2 %v2106_v62 }
0x1190   :  { %2129 = vmatpush.msra.mxu2 %v2105_v63 }
0x1192   :  { %2130 = vmatpush.msra.mxu2 %v2104_v0 }
0x11e4   :  { %v1990_v28 = vpop.f32.mrf.mxu3 }
0x11e5   :  { %v1991_v14 = vadd.f32 %v2605_v21, %v1990_v28 }
0x11e7   :  { %v1996_v15 = vadd.f32 %v1991_v14, %v3227_v45  ;;  %v2016_v45 = vpop.xlane.xlu0 %2015 }
0x11e8   :  { %v2020_v22 = vmul.f32 %v2016_v45, %v2851_v49 }
0x11e9   :  { %v2046_v4 = vsel %vm121_vm1, %v1996_v15, 0.0 }
0x11ea   :  { %2047 = vadd.xlane.f32.xlu1 %v2046_v4  ;;  %v2022_v20 = vadd.f32 1e-05, %v2020_v22 }
0x11ec   :  { %2685 = vrsqrt.f32 %v2022_v20  ;;  %vm2030_vm14 = vweird.f32 %v2022_v20 }
0x11f2   :  { %v2686_v30 = vpop.eup %2685 }
0x11f3   :  { %v2025_v32 = vmul.f32 %v2686_v30, %v2022_v20  ;;  %vm2031_vm15 = vweird.f32 %v2686_v30 }
0x11f4   :  { %vm2032_vm0 = vmor %vm2030_vm14, %vm2031_vm15 }
0x11f5   :  { %v2026_v61 = vmul.f32 %v2686_v30, %v2025_v32 }
0x11f7   :  { %v2027_v33 = vmul.f32 0.5, %v2026_v61 }
0x11f9   :  { %v2028_v35 = vsub.f32 1.5, %v2027_v33 }
0x1210   :  { %v1993_v17 = vpop.f32.mrf.mxu3 }
0x1211   :  { %v1994_v44 = vadd.f32 %v2605_v21, %v1993_v17 }
0x1213   :  { %v1997_v24 = vadd.f32 %v1994_v44, %v3232_v46  ;;  %v2029_v46 = vmul.f32 %v2686_v30, %v2028_v35 }
0x1215   :  { %v2049_v50 = vsel %vm121_vm1, %v1997_v24, 0.0  ;;  %v2033_v36 = vsel %vm2032_vm0, %v2686_v30, %v2029_v46 }
0x1216   :  { %2050 = vadd.xlane.f32.xlu2 %v2049_v50  ;;  %v2044_v57 = vmul.f32 %v2033_v36, %v2010_v23 }
0x1218   :  { %2092 = vst [vmem:[#allocation1] ss:$9 sm:$0xff] %v2044_v57 }
0x121e   :  { %2018 = vadd.xlane.f32.xlu2 %v2017_v51 }
0x125d   :  { %v2048_v38 = vpop.xlane.xlu1 %2047 }
0x125e   :  { %v2052_v1 = vmul.f32 %v2048_v38, %v2851_v49 }
0x1260   :  { %v2054_v37 = vsub.f32 %v1996_v15, %v2052_v1 }
0x1262   :  { %v2056_v39 = vmul.f32 %v2054_v37, %v2054_v37 }
0x1264   :  { %v2058_v52 = vsel %vm121_vm1, %v2056_v39, 0.0 }
0x1265   :  { %2059 = vadd.xlane.f32.xlu0 %v2058_v52  ;;  %v2607_v52 = vld [vmem:[#allocation2 + $0x360] ss:$0 sm:$0xff] }
0x1279   :  { %2147 = vrot.lane.b32.xlu0 %v2606_v12, %s2767_s0 }
0x1289   :  { %v2051_v58 = vpop.xlane.xlu2 %2050 }
0x128a   :  { %v2053_v40 = vmul.f32 %v2051_v58, %v2851_v49 }
0x128c   :  { %v3272_v29 = vsub.f32 %v1997_v24, %v2053_v40 }
0x128e   :  { %v2057_v41 = vmul.f32 %v3272_v29, %v3272_v29 }
0x1290   :  { %v2061_v42 = vsel %vm121_vm1, %v2057_v41, 0.0 }
0x1291   :  { %2062 = vadd.xlane.f32.xlu2 %v2061_v42  ;;  %v2019_v31 = vpop.xlane.xlu2 %2018 }
0x1292   :  { %v2021_v43 = vmul.f32 %v2019_v31, %v2851_v49 }
0x1294   :  { %v2023_v11 = vadd.f32 1e-05, %v2021_v43 }
0x1296   :  { %2687 = vrsqrt.f32 %v2023_v11  ;;  %vm2040_vm3 = vweird.f32 %v2023_v11 }
0x129c   :  { %v2688_v26 = vpop.eup %2687 }
0x129d   :  { %v2035_v54 = vmul.f32 %v2688_v26, %v2023_v11  ;;  %vm2041_vm4 = vweird.f32 %v2688_v26 }
0x129e   :  { %vm2042_vm7 = vmor %vm2040_vm3, %vm2041_vm4 }
0x129f   :  { %v2036_v47 = vmul.f32 %v2688_v26, %v2035_v54 }
0x12a1   :  { %v2037_v55 = vmul.f32 0.5, %v2036_v47 }
0x12a3   :  { %v2038_v16 = vsub.f32 1.5, %v2037_v55 }
0x12a5   :  { %v2039_v56 = vmul.f32 %v2688_v26, %v2038_v16 }
0x12a7   :  { %v2043_v60 = vsel %vm2042_vm7, %v2688_v26, %v2039_v56 }
0x12a8   :  { %v2045_v19 = vmul.f32 %v2043_v60, %v2011_v18 }
0x12aa   :  { %2094 = vst [vmem:[#allocation1 + $0x1] ss:$9 sm:$0xff] %v2045_v19 }
0x12b1   :  { %v2095_v14 = vld [vmem:[#allocation1] sm:$0xff] }
0x12d8   :  { %v2060_v34 = vpop.xlane.xlu0 %2059 }
0x12d9   :  { %v2064_v3 = vmul.f32 %v2060_v34, %v2851_v49 }
0x12db   :  { %v2066_v7 = vadd.f32 1e-05, %v2064_v3 }
0x12dd   :  { %2689 = vrsqrt.f32 %v2066_v7  ;;  %vm2074_vm10 = vweird.f32 %v2066_v7 }
0x12e3   :  { %v2690_v9 = vpop.eup %2689 }
0x12e4   :  { %v2069_v10 = vmul.f32 %v2690_v9, %v2066_v7  ;;  %vm2075_vm8 = vweird.f32 %v2690_v9 }
0x12e5   :  { %vm2076_vm11 = vmor %vm2074_vm10, %vm2075_vm8 }
0x12e6   :  { %v2070_v8 = vmul.f32 %v2690_v9, %v2069_v10 }
0x12e8   :  { %v2071_v27 = vmul.f32 0.5, %v2070_v8 }
0x12ea   :  { %v2072_v53 = vsub.f32 1.5, %v2071_v27 }
0x12eb   :  { %v2148_v32 = vpop.permute.xlu0 %2147 }
0x12ec   :  { %v2073_v23 = vmul.f32 %v2690_v9, %v2072_v53 }
0x12ee   :  { %v2077_v2 = vsel %vm2076_vm11, %v2690_v9, %v2073_v23 }
0x12ef   :  { %v2088_v21 = vmul.f32 %v2077_v2, %v2054_v37 }
0x12f1   :  { %v2099_v28 = vrot.slane %v2088_v21, 6 }
0x12f3   :  { %v2103_v15 = vsel %vm665_vm6, %v2095_v14, %v2099_v28 }
0x12f4   :  { %2562 = vmatmul.msk.f32.vlgmr.msra.gmra.mxu2 %vm121_vm1, %v2103_v15 }
0x1304   :  { %v2063_v4 = vpop.xlane.xlu2 %2062 }
0x1305   :  { %v2065_v5 = vmul.f32 %v2063_v4, %v2851_v49 }
0x1307   :  { %v2067_v6 = vadd.f32 1e-05, %v2065_v5 }
0x1309   :  { %2691 = vrsqrt.f32 %v2067_v6  ;;  %vm2084_vm14 = vweird.f32 %v2067_v6 }
0x130f   :  { %v2692_v17 = vpop.eup %2691 }
0x1310   :  { %v2079_v44 = vmul.f32 %v2692_v17, %v2067_v6  ;;  %vm2085_vm12 = vweird.f32 %v2692_v17 }
0x1311   :  { %vm2086_vm15 = vmor %vm2084_vm14, %vm2085_vm12  ;;  %vm2327_vm12 = vcmask 1041409  }
0x1312   :  { %v2080_v18 = vmul.f32 %v2692_v17, %v2079_v44 }
0x1314   :  { %v2081_v24 = vmul.f32 0.5, %v2080_v18 }
0x1316   :  { %v2082_v50 = vsub.f32 1.5, %v2081_v24 }
0x1318   :  { %v2083_v25 = vmul.f32 %v2692_v17, %v2082_v50 }
0x131a   :  { %v2087_v51 = vsel %vm2086_vm15, %v2692_v17, %v2083_v25 }
0x131b   :  { %v2089_v45 = vmul.f32 %v2087_v51, %v3272_v29 }
0x131d   :  { %v2100_v22 = vrot.slane %v2089_v45, 6 }
0x131f   :  { %v2101_v20 = vsel %vm665_vm6, %v2099_v28, %v2100_v22  ;;  %vm2217_vm6 = vcmask 57344  }
0x1320   :  { %2563 = vmatmul.msk.f32.gmra.mxu2 %vm121_vm1, %v2101_v20  ;;  %v2320_v20 = vld [vmem:[#allocation2 + $0x380] sm:$0xff] }
0x1328   :  { %2564 = vmatmul.msk.f32.gmra.mxu2 %vm121_vm1, %v2100_v22  ;;  %v2321_v22 = vld [vmem:[#allocation2 + $0x388] sm:$0xff] }
0x1377   :  { %v2132_v30 = vpop.f32.mrf.mxu2 }
0x1378   :  { %v2150_v61 = vadd.f32 %v2148_v32, %v2132_v30  ;;  %v2143_v40 = vadd.f32 %v2607_v52, %v2132_v30  ;;  %v2319_v30 = vld [vmem:[#allocation2 + $0x378] sm:$0xff] }
0x137a   :  { %v2156_v46 = vrot.slane %v2150_v61, 2  ;;  %v2162_v41 = vrot.slane %v2143_v40, 1 }
0x13a3   :  { %v2135_v33 = vpop.f32.mrf.mxu2 }
0x13a4   :  { %v2151_v35 = vadd.f32 %v2148_v32, %v2135_v33 }
0x13a6   :  { %v2157_v38 = vrot.slane %v2151_v35, 2 }
0x13a8   :  { %v2158_v1 = vsel %vm1284_vm5, %v2156_v46, %v2157_v38 }
0x13a9   :  { %2163 = vrot.lane.b32.xlu2 %v2158_v1, %s2768_s26 }
0x13ab   :  { %v2138_v36 = vpop.f32.mrf.mxu2 }
0x13ac   :  { %v2152_v57 = vadd.f32 %v2148_v32, %v2138_v36  ;;  %v2318_v32 = vld [vmem:[#allocation2 + $0x370] sm:$0xff] }
0x13ae   :  { %v2159_v37 = vrot.slane %v2152_v57, 2 }
0x13b0   :  { %v2160_v39 = vsel %vm1284_vm5, %v2157_v38, %v2159_v37  ;;  %v2608_v38 = vld [vmem:[#allocation2 + $0x390] ss:$0 sm:$0xff] }
0x13b1   :  { %2189 = vrot.lane.b32.xlu0 %v2160_v39, %s2768_s26 }
0x1403   :  { %v2164_v58 = vpop.permute.xlu2 %2163 }
0x1404   :  { %2565 = vmatpush.xpose.msk.msra.mxu0 %vm121_vm1, %v2164_v58 }
0x1407   :  { %2566 = vmatmul.msk.f32.vlgmr.msra.gmra.mxu0 %vm121_vm1, %v2143_v40 }
0x1423   :  { %v2190_v29 = vpop.permute.xlu0 %2189 }
0x1424   :  { %2567 = vmatpush.xpose.msk.msra.mxu1 %vm121_vm1, %v2190_v29 }
0x1427   :  { %2568 = vmatmul.msk.f32.vlgmr.msra.gmra.mxu1 %vm121_vm1, %v2162_v41 }
0x1428   :  { %2343 = vmatpush.msrb.mxu1 %v2321_v22  ;;  %v2447_v22 = vld [vmem:[#allocation2 + $0x3e0] sm:$0xff] }
0x142a   :  { %2344 = vmatpush.msrb.mxu1 %v2320_v20  ;;  %v2446_v20 = vld [vmem:[#allocation2 + $0x3d8] sm:$0xff] }
0x142c   :  { %2345 = vmatpush.msrb.mxu1 %v2319_v30  ;;  %v2609_v30 = vld [vmem:[#allocation2 + $0x3b8] ss:$0 sm:$0xff] }
0x142e   :  { %2346 = vmatpush.msrb.mxu1 %v2318_v32  ;;  %v2445_v32 = vld [vmem:[#allocation2 + $0x3d0] sm:$0xff] }
0x1484   :  { %v2186_v42 = vpop.f32.mrf.mxu0 }
0x1485   :  { %v2215_v31 = vmul.f32 0.17677669, %v2186_v42 }
0x1487   :  { %v2218_v43 = vsel %vm2217_vm6, %v2215_v31, -inf }
0x1488   :  { %2219 = vmax.xlane.f32.xlu1 %v2218_v43 }
0x14a1   :  { %2266 = vrot.lane.b32.xlu1 %v2158_v1, %s2769_s27 }
0x14a4   :  { %v2212_v11 = vpop.f32.mrf.mxu1 }
0x14a5   :  { %v2216_v26 = vmul.f32 0.17677669, %v2212_v11 }
0x14a7   :  { %v2221_v54 = vsel %vm2217_vm6, %v2216_v26, -inf }
0x14a8   :  { %2222 = vmax.xlane.f32.xlu0 %v2221_v54  ;;  %v2403_v54 = vld [vmem:[#allocation2 + $0x3b0] sm:$0xff] }
0x14a9   :  { %2426 = vmatpush.msrb.mxu2 %v2403_v54 }
0x14fb   :  { %v2220_v47 = vpop.xlane.xlu1 %2219 }
0x14fc   :  { %v2224_v55 = vsub.f32 %v2215_v31, %v2220_v47  ;;  %v2402_v47 = vld [vmem:[#allocation2 + $0x3a8] sm:$0xff] }
0x14fd   :  { %2427 = vmatpush.msrb.mxu2 %v2402_v47 }
0x14fe   :  { %v2226_v16 = vmul.f32 1.442695, %v2224_v55  ;;  %v2401_v55 = vld [vmem:[#allocation2 + $0x3a0] sm:$0xff] }
0x14ff   :  { %2428 = vmatpush.msrb.mxu2 %v2401_v55 }
0x1500   :  { %2693 = vpow2.f32 %v2226_v16  ;;  %v2400_v16 = vld [vmem:[#allocation2 + $0x398] sm:$0xff] }
0x1501   :  { %2429 = vmatpush.msrb.mxu2 %v2400_v16 }
0x1506   :  { %v2694_v56 = vpop.eup %2693 }
0x1507   :  { %v2230_v60 = vsel %vm2217_vm6, %v2694_v56, 0.0 }
0x1508   :  { %2231 = vadd.xlane.f32.xlu2 %v2230_v60 }
0x1513   :  { %v2267_v19 = vpop.permute.xlu1 %2266 }
0x1514   :  { %2287 = vmatpush.msrb.mxu0 %v2267_v19 }
0x151b   :  { %v2223_v13 = vpop.xlane.xlu0 %2222 }
0x151c   :  { %v2225_v62 = vsub.f32 %v2216_v26, %v2223_v13 }
0x151e   :  { %v2228_v63 = vmul.f32 1.442695, %v2225_v62 }
0x1520   :  { %2695 = vpow2.f32 %v2228_v63  ;;  %v2458_v63 = vld [vmem:[#allocation2 + $0x438] sm:$0xff] }
0x1521   :  { %2461 = vmatpush.msrb.mxu3 %v2458_v63 }
0x1526   :  { %v2696_v0 = vpop.eup %2695 }
0x1527   :  { %v2233_v34 = vsel %vm2217_vm6, %v2696_v0, 0.0 }
0x1528   :  { %2234 = vadd.xlane.f32.xlu1 %v2233_v34 }
0x1541   :  { %2292 = vrot.lane.b32.xlu1 %v2160_v39, %s2769_s27 }
0x157b   :  { %v2232_v3 = vpop.xlane.xlu2 %2231 }
0x157c   :  { %2697 = vrcp.f32 %v2232_v3  ;;  %v2247_v8 = vand.u32 2147483648, %v2232_v3  ;;  %v2245_v53 = vand.u32 2147483647, %v2232_v3  ;;  %vm2241_vm0 = vweird.f32 %v2232_v3 }
0x157e   :  { %v2248_v2 = vor.u32 1.1754944e-38, %v2247_v8  ;;  %vm2246_vm4 = vcmp.eq.f32.partialorder %v2245_v53, 8.507059e+37 }
0x1582   :  { %v2698_v7 = vpop.eup %2697 }
0x1583   :  { %v2237_v9 = vmul.f32 %v2698_v7, %v2232_v3  ;;  %vm2242_vm5 = vweird.f32 %v2698_v7  ;;  %v2456_v3 = vld [vmem:[#allocation2 + $0x428] sm:$0xff] }
0x1584   :  { %vm2243_vm3 = vmor %vm2241_vm0, %vm2242_vm5 }
0x1585   :  { %v2238_v10 = vsub.f32 1.0, %v2237_v9 }
0x1587   :  { %v2239_v27 = vmul.f32 %v2698_v7, %v2238_v10 }
0x1589   :  { %v2240_v23 = vadd.f32 %v2698_v7, %v2239_v27 }
0x158b   :  { %v2244_v12 = vsel %vm2243_vm3, %v2698_v7, %v2240_v23 }
0x158c   :  { %v2249_v21 = vsel %vm2246_vm4, %v2248_v2, %v2244_v12 }
0x158d   :  { %v2250_v28 = vmul.f32 %v2694_v56, %v2249_v21 }
0x158f   :  { %2569 = vmatmul.msk.f32.vlgmr.msrb.gmra.mxu0 %vm1720_vm9, %v2250_v28 }
0x159b   :  { %v2235_v14 = vpop.xlane.xlu1 %2234 }
0x159c   :  { %2699 = vrcp.f32 %v2235_v14  ;;  %v2262_v44 = vand.u32 2147483648, %v2235_v14  ;;  %vm2256_vm8 = vweird.f32 %v2235_v14  ;;  %v2260_v18 = vand.u32 2147483647, %v2235_v14 }
0x159e   :  { %v2263_v50 = vor.u32 1.1754944e-38, %v2262_v44  ;;  %vm2261_vm11 = vcmp.eq.f32.partialorder %v2260_v18, 8.507059e+37  ;;  %v2454_v44 = vld [vmem:[#allocation2 + $0x418] sm:$0xff]  ;;  %v2453_v18 = vld [vmem:[#allocation2 + $0x410] sm:$0xff] }
0x15a2   :  { %v2700_v15 = vpop.eup %2699 }
0x15a3   :  { %v2252_v4 = vmul.f32 %v2700_v15, %v2235_v14  ;;  %vm2257_vm7 = vweird.f32 %v2700_v15 }
0x15a4   :  { %vm2258_vm10 = vmor %vm2256_vm8, %vm2257_vm7 }
0x15a5   :  { %v2253_v5 = vsub.f32 1.0, %v2252_v4 }
0x15a7   :  { %v2254_v6 = vmul.f32 %v2700_v15, %v2253_v5 }
0x15a9   :  { %v2255_v17 = vadd.f32 %v2700_v15, %v2254_v6 }
0x15ab   :  { %v2259_v24 = vsel %vm2258_vm10, %v2700_v15, %v2255_v17  ;;  %v2455_v17 = vld [vmem:[#allocation2 + $0x420] sm:$0xff] }
0x15ac   :  { %v2264_v25 = vsel %vm2261_vm11, %v2263_v50, %v2259_v24  ;;  %v2452_v24 = vld [vmem:[#allocation2 + $0x408] sm:$0xff]  ;;  %v2451_v50 = vld [vmem:[#allocation2 + $0x400] sm:$0xff] }
0x15ad   :  { %v2265_v45 = vmul.f32 %v2696_v0, %v2264_v25  ;;  %v2457_v0 = vld [vmem:[#allocation2 + $0x430] sm:$0xff]  ;;  %v2450_v25 = vld [vmem:[#allocation2 + $0x3f8] sm:$0xff] }
0x15ae   :  { %2462 = vmatpush.msrb.mxu3 %v2457_v0 }
0x15b0   :  { %2463 = vmatpush.msrb.mxu3 %v2456_v3 }
0x15b2   :  { %2464 = vmatpush.msrb.mxu3 %v2455_v17 }
0x15b3   :  { %v2293_v51 = vpop.permute.xlu1 %2292 }
0x15b4   :  { %2313 = vmatpush.msra.mxu0 %v2293_v51  ;;  %2465 = vmatpush.msrb.mxu3 %v2454_v44  ;;  %v2449_v51 = vld [vmem:[#allocation2 + $0x3f0] sm:$0xff] }
0x15b5   :  { %2570 = vmatmul.msk.f32.vlgmr.msra.gmra.mxu0 %vm1720_vm9, %v2265_v45  ;;  %v2448_v45 = vld [vmem:[#allocation2 + $0x3e8] sm:$0xff] }
0x15b6   :  { %2466 = vmatpush.msrb.mxu3 %v2453_v18 }
0x15b8   :  { %2467 = vmatpush.msrb.mxu3 %v2452_v24 }
0x15ba   :  { %2468 = vmatpush.msrb.mxu3 %v2451_v50 }
0x15bc   :  { %2469 = vmatpush.msrb.mxu3 %v2450_v25 }
0x15be   :  { %2470 = vmatpush.msrb.mxu3 %v2449_v51 }
0x15c0   :  { %2471 = vmatpush.msrb.mxu3 %v2448_v45 }
0x15c2   :  { %2472 = vmatpush.msrb.mxu3 %v2447_v22 }
0x15c4   :  { %2473 = vmatpush.msrb.mxu3 %v2446_v20 }
0x15c6   :  { %2474 = vmatpush.msrb.mxu3 %v2445_v32 }
0x160c   :  { %v2289_v61 = vpop.f32.mrf.mxu0 }
0x1632   :  { %v2315_v33 = vpop.f32.mrf.mxu0 }
0x1633   :  { %v2326_v35 = vrot.slane %v2315_v33, 7 }
0x1635   :  { %v2328_v46 = vsel %vm2327_vm12, %v2326_v35, %v2289_v61  ;;  %v2444_v61 = vld [vmem:[#allocation2 + $0x3c8] sm:$0xff] }
0x1636   :  { %2571 = vmatmul.msk.f32.vlgmr.msrb.gmra.mxu1 %vm121_vm1, %v2328_v46  ;;  %v2443_v46 = vld [vmem:[#allocation2 + $0x3c0] sm:$0xff]  ;;  %2475 = vmatpush.msrb.mxu3 %v2444_v61 }
0x1638   :  { %2476 = vmatpush.msrb.mxu3 %v2443_v46 }
0x16b3   :  { %v2348_v1 = vpop.f32.mrf.mxu1 }
0x16b4   :  { %v2349_v36 = vadd.f32 %v2608_v38, %v2348_v1 }
0x16b6   :  { %v2352_v57 = vrot.slane %v2349_v36, 1  ;;  %v3305_v37 = vadd.f32 %v2349_v36, %v3249_v48 }
0x16b8   :  { %v3308_v39 = vadd.f32 %v2352_v57, %v3254_v59  ;;  %v2356_v52 = vsel %vm2001_vm13, %v3305_v37, 0.0 }
0x16b9   :  { %2357 = vadd.xlane.f32.xlu0 %v2356_v52 }
0x16ba   :  { %v2359_v58 = vsel %vm2001_vm13, %v3308_v39, 0.0 }
0x16bb   :  { %2360 = vadd.xlane.f32.xlu2 %v2359_v58 }
0x172c   :  { %v2358_v40 = vpop.xlane.xlu0 %2357 }
0x172d   :  { %v2362_v29 = vmul.f32 %v2358_v40, %v2851_v49 }
0x172e   :  { %v2361_v41 = vpop.xlane.xlu2 %2360 }
0x172f   :  { %v2364_v42 = vsub.f32 %v3305_v37, %v2362_v29  ;;  %v2363_v48 = vmul.f32 %v2361_v41, %v2851_v49 }
0x1731   :  { %v2365_v31 = vsub.f32 %v3308_v39, %v2363_v48  ;;  %v2366_v59 = vmul.f32 %v2364_v42, %v2364_v42 }
0x1733   :  { %v2368_v43 = vsel %vm2001_vm13, %v2366_v59, 0.0  ;;  %v2367_v11 = vmul.f32 %v2365_v31, %v2365_v31 }
0x1734   :  { %2369 = vadd.xlane.f32.xlu1 %v2368_v43 }
0x1735   :  { %v2371_v26 = vsel %vm2001_vm13, %v2367_v11, 0.0 }
0x1736   :  { %2372 = vadd.xlane.f32.xlu0 %v2371_v26 }
0x17a7   :  { %v2370_v56 = vpop.xlane.xlu1 %2369 }
0x17a8   :  { %v2374_v60 = vmul.f32 %v2370_v56, %v2851_v49 }
0x17a9   :  { %v2373_v19 = vpop.xlane.xlu0 %2372 }
0x17aa   :  { %v2376_v13 = vadd.f32 1e-05, %v2374_v60  ;;  %v2375_v62 = vmul.f32 %v2373_v19, %v2851_v49 }
0x17ac   :  { %2701 = vrsqrt.f32 %v2376_v13  ;;  %v2377_v34 = vadd.f32 1e-05, %v2375_v62  ;;  %vm2384_vm13 = vweird.f32 %v2376_v13 }
0x17ae   :  { %2703 = vrsqrt.f32 %v2377_v34  ;;  %vm2394_vm6 = vweird.f32 %v2377_v34 }
0x17b2   :  { %v2702_v7 = vpop.eup %2701 }
0x17b3   :  { %v2379_v9 = vmul.f32 %v2702_v7, %v2376_v13  ;;  %vm2385_vm9 = vweird.f32 %v2702_v7 }
0x17b4   :  { %v2704_v10 = vpop.eup %2703  ;;  %vm2386_vm15 = vmor %vm2384_vm13, %vm2385_vm9 }
0x17b5   :  { %v2380_v8 = vmul.f32 %v2702_v7, %v2379_v9  ;;  %v2389_v27 = vmul.f32 %v2704_v10, %v2377_v34  ;;  %vm2395_vm14 = vweird.f32 %v2704_v10 }
0x17b6   :  { %vm2396_vm5 = vmor %vm2394_vm6, %vm2395_vm14 }
0x17b7   :  { %v2381_v53 = vmul.f32 0.5, %v2380_v8  ;;  %v2390_v23 = vmul.f32 %v2704_v10, %v2389_v27 }
0x17b9   :  { %v2382_v2 = vsub.f32 1.5, %v2381_v53  ;;  %v2391_v12 = vmul.f32 0.5, %v2390_v23 }
0x17bb   :  { %v2383_v49 = vmul.f32 %v2702_v7, %v2382_v2  ;;  %v2392_v21 = vsub.f32 1.5, %v2391_v12 }
0x17bd   :  { %v2387_v28 = vsel %vm2386_vm15, %v2702_v7, %v2383_v49  ;;  %v2393_v14 = vmul.f32 %v2704_v10, %v2392_v21 }
0x17be   :  { %v2398_v15 = vmul.f32 %v2387_v28, %v2364_v42  ;;  %v2610_v42 = vld [vmem:[#allocation2 + $0x440] ss:$0 sm:$0xff] }
0x17bf   :  { %v2397_v4 = vsel %vm2396_vm5, %v2704_v10, %v2393_v14 }
0x17c0   :  { %2408 = vst [vmem:[#allocation1] ss:$9 sm:$0xff] %v2398_v15  ;;  %v2399_v5 = vmul.f32 %v2397_v4, %v2365_v31 }
0x17c2   :  { %2410 = vst [vmem:[#allocation1 + $0x1] ss:$9 sm:$0xff] %v2399_v5 }
0x17c9   :  { %v2411_v6 = vld [vmem:[#allocation1] sm:$0xff] }
0x17ca   :  { %2572 = vmatmul.msk.f32.vlgmr.msrb.gmra.mxu2 %vm121_vm1, %v2411_v6 }
0x184d   :  { %v2431_v33 = vpop.f32.mrf.mxu2 }
0x184e   :  { %v2432_v35 = vadd.f32 %v2609_v30, %v2431_v33 }
0x1850   :  { %v2434_v38 = vmul.f32 %v2432_v35, %v2432_v35 }
0x1852   :  { %v2435_v1 = vmul.f32 %v2434_v38, %v2432_v35 }
0x1854   :  { %v2436_v36 = vmul.f32 0.044715, %v2435_v1 }
0x1856   :  { %v2437_v57 = vadd.f32 %v2436_v36, %v2432_v35 }
0x1858   :  { %v2438_v52 = vmul.f32 0.7978846, %v2437_v57 }
0x185a   :  { %2705 = vtanh.f32 %v2438_v52 }
0x1860   :  { %v2706_v58 = vpop.eup %2705 }
0x1861   :  { %v2440_v40 = vadd.f32 1.0, %v2706_v58 }
0x1863   :  { %v2441_v29 = vmul.f32 0.5, %v2440_v40 }
0x1865   :  { %v2442_v41 = vmul.f32 %v2441_v29, %v2432_v35 }
0x1867   :  { %2477 = vmatmul.f32.vlgmr.msrb.gmra.mxu3 %v2442_v41 }
0x18ea   :  { %v2478_v48 = vpop.f32.mrf.mxu3 }
0x18eb   :  { %v2479_v31 = vadd.f32 %v2610_v42, %v2478_v48 }
0x18ed   :  { %v2482_v59 = vrot.slane %v2479_v31, 1  ;;  %v2484_v43 = vadd.f32 %v2479_v31, %v3305_v37 }
0x18ef   :  { %v2485_v11 = vadd.f32 %v2482_v59, %v3308_v39  ;;  %2488 = vst [vmem:[#allocation1] ss:$9 sm:$0xff] %v2484_v43 }
0x18f1   :  { %2490 = vst [vmem:[#allocation1 + $0x1] ss:$9 sm:$0xff] %v2485_v11 }
0x18f8   :  { %v2491_v26 = vld [vmem:[#allocation1] sm:$0xff] }
0x18f9   :  { %2493 = vst.msk [vmem:[#allocation5] sm:$0x3] %vm176_vm2, %v2491_v26 }
0x18fa   :  { %2504 = dma.vmem_to_hbm [thread:$0]  %s2500_s30, 32, %s2502_s6, [#allocation4]  }
0x18fb   :  { %2757 = dma.done.wait [#allocation4], 32  }
0x18fc   :  { %2758 = vsyncadd [#allocation4], 4294967264 }
0x18fd   :  { %2509 = vsyncpa [#allocation3], 1 }
0x18fe   :  { %2510 = vsyncpa [#allocation4], 1 }

</bundles_post_ra>
